<compile_context>
chip_gen: v7x
topology: tpu7x:2x2x1
jax: 0.10.0
libtpu: 0.0.40
codegen_flags: <defaults>
</compile_context>

<pallas_src>
import math

import jax
import jax.numpy as jnp
from jax.experimental import pallas as pl
from jax.experimental.pallas import tpu as pltpu


NUM_ANCHORS = 12
NUM_CLASSES = 3
NUM_OUTPUTS = NUM_ANCHORS * (5 + NUM_CLASSES)     # 96
C_FEAT = 960                                      # mobilenet_v3_large features
C_RED = 256
C_HEAD = 32
SE_RED = 16
BN_EPS = 1e-5
LANE = 128

VMEM_LIMIT = 32 * 1024 * 1024                     # fits v5e/v6e/v7x scoped VMEM


def _pick_lane_tile(n, target):
    """Largest multiple of 128 <= target that divides n; else the full n."""
    if n <= target:
        return n
    t = (target // LANE) * LANE
    while t >= LANE:
        if n % t == 0:
            return t
        t -= LANE
    return n


# ---------------------------------------------------------------------------
# Kernel 1: fused conv_reduce (1x1, 960->256) + all-taps conv1 matmul (256->288)
#           channel-major: (256,960)@(960,tn) then (288,256)@(256,tn)
# ---------------------------------------------------------------------------

def reduce_taps_kernel(x_ref, wrT_ref, br_ref, w9T_ref, y_ref):
    # x: (960, tn) bf16, wrT: (256, 960) bf16, br: (256, 1) f32, w9T: (288, 256) bf16
    r = jnp.dot(wrT_ref[...], x_ref[...], preferred_element_type=jnp.float32)
    r = (r + br_ref[...]).astype(jnp.bfloat16)          # conv_reduce bias, stays in VMEM
    y = jnp.dot(w9T_ref[...], r, preferred_element_type=jnp.float32)
    y_ref[...] = y.astype(y_ref.dtype)


def pallas_reduce_taps(x_bf, wrT_bf, br_col, w9T_bf, *, tile_n=512):
    B, K, P = x_bf.shape                         # (B, 960, H*W)
    Cr = wrT_bf.shape[0]                         # 256
    N9 = w9T_bf.shape[0]                         # 288
    tn = _pick_lane_tile(P, tile_n)
    flops = 2 * B * P * (K * Cr + Cr * N9)
    bytes_accessed = (2 * B * P * K + 2 * Cr * K + 4 * Cr + 2 * N9 * Cr
                      + 2 * B * P * N9)
    return pl.pallas_call(
        reduce_taps_kernel,
        out_shape=jax.ShapeDtypeStruct((B, N9, P), jnp.bfloat16),
        grid=(B, P // tn),
        in_specs=[
            pl.BlockSpec((None, K, tn), lambda b, i: (b, 0, i)),
            pl.BlockSpec((Cr, K), lambda b, i: (0, 0)),
            pl.BlockSpec((Cr, 1), lambda b, i: (0, 0)),
            pl.BlockSpec((N9, Cr), lambda b, i: (0, 0)),
        ],
        out_specs=pl.BlockSpec((None, N9, tn), lambda b, i: (b, 0, i)),
        compiler_params=pltpu.CompilerParams(
            dimension_semantics=("parallel", "parallel"),
            vmem_limit_bytes=VMEM_LIMIT),
        cost_estimate=pl.CostEstimate(flops=flops, transcendentals=0,
                                      bytes_accessed=bytes_accessed),
    )(x_bf, wrT_bf, br_col, w9T_bf)


# ---------------------------------------------------------------------------
# Kernel 2: fused SE channel-scale + 1x1 conv2 (32 -> 96), channel-major
# ---------------------------------------------------------------------------

def se_scale_conv2_kernel(a_ref, g_ref, w2T_ref, b2_ref, o_ref):
    # a: (32, t) bf16, g: (32, 1) f32 per-batch gate, w2T: (96, 32) bf16,
    # b2: (96, 1) f32, o: (96, t) f32 (lane axis = HW tile -> unmasked stores)
    x = (a_ref[...].astype(jnp.float32) * g_ref[...]).astype(jnp.bfloat16)
    y = jnp.dot(w2T_ref[...], x, preferred_element_type=jnp.float32)
    o_ref[...] = y + b2_ref[...]


def pallas_se_scale_conv2(a_bf, gate_col, w2T_bf, b2_col, *, tile_n=512):
    B, C, P = a_bf.shape                          # (B, 32, H*W)
    No = w2T_bf.shape[0]                          # 96
    t = _pick_lane_tile(P, tile_n)
    flops = 2 * B * P * C * No + 2 * B * P * C
    bytes_accessed = (2 * B * P * C + 4 * B * C + 2 * No * C + 4 * No
                      + 4 * B * P * No)
    return pl.pallas_call(
        se_scale_conv2_kernel,
        out_shape=jax.ShapeDtypeStruct((B, No, P), jnp.float32),
        grid=(B, P // t),
        in_specs=[
            pl.BlockSpec((None, C, t), lambda b, i: (b, 0, i)),
            pl.BlockSpec((None, C, 1), lambda b, i: (b, 0, 0)),
            pl.BlockSpec((No, C), lambda b, i: (0, 0)),
            pl.BlockSpec((No, 1), lambda b, i: (0, 0)),
        ],
        out_specs=pl.BlockSpec((None, No, t), lambda b, i: (b, 0, i)),
        compiler_params=pltpu.CompilerParams(
            dimension_semantics=("parallel", "parallel"),
            vmem_limit_bytes=VMEM_LIMIT),
        cost_estimate=pl.CostEstimate(flops=flops, transcendentals=0,
                                      bytes_accessed=bytes_accessed),
    )(a_bf, gate_col, w2T_bf, b2_col)


# ---------------------------------------------------------------------------
# Model: parameters + forward
# ---------------------------------------------------------------------------

def init_params(key):
    ks = jax.random.split(key, 10)

    def nrm(k, shape, fan_in):
        return jax.random.normal(k, shape, jnp.float32) / math.sqrt(fan_in)

    params = {
        # conv_reduce: 1x1, 960 -> 256  (stored as (Cin, Cout))
        "wr": nrm(ks[0], (C_FEAT, C_RED), C_FEAT),
        "br": 0.01 * jax.random.normal(ks[1], (1, C_RED), jnp.float32),
        # head conv1: 3x3, 256 -> 32  (stored as (3, 3, Cin, Cout))
        "w1": nrm(ks[2], (3, 3, C_RED, C_HEAD), 9 * C_RED),
        "b1": 0.01 * jax.random.normal(ks[3], (1, C_HEAD), jnp.float32),
        # BatchNorm2d(32) eval-mode stats/affine
        "bn_gamma": 1.0 + 0.1 * jax.random.normal(ks[4], (1, C_HEAD), jnp.float32),
        "bn_beta": 0.1 * jax.random.normal(ks[5], (1, C_HEAD), jnp.float32),
        "bn_mean": 0.1 * jax.random.normal(ks[6], (1, C_HEAD), jnp.float32),
        "bn_var": jnp.abs(1.0 + 0.1 * jax.random.normal(ks[7], (1, C_HEAD),
                                                        jnp.float32)),
        # SEBlock(32, reduction=16): Linear(32->2), Linear(2->32), no bias
        "se_w1": nrm(ks[8], (C_HEAD, C_HEAD // SE_RED), C_HEAD),
        "se_w2": nrm(ks[9], (C_HEAD // SE_RED, C_HEAD), C_HEAD // SE_RED),
        # head conv2: 1x1, 32 -> 96
        "w2": nrm(jax.random.fold_in(key, 123), (C_HEAD, NUM_OUTPUTS), C_HEAD),
        "b2": 0.01 * jax.random.normal(jax.random.fold_in(key, 456),
                                       (1, NUM_OUTPUTS), jnp.float32),
    }
    return params


def yolo_face_detector_forward(params, feats_nchw, *, tile_n=512):
    """feats_nchw: (B, 960, H, W) backbone output. Returns (B, 96, H, W)."""
    B, C, H, W = feats_nchw.shape
    assert C == C_FEAT
    HW = H * W

    # NCHW consumed directly (channel-major matmuls) -> no layout transpose.
    x_bf = feats_nchw.reshape(B, C_FEAT, HW).astype(jnp.bfloat16)
    wrT_bf = params["wr"].T.astype(jnp.bfloat16)            # (256, 960)
    br_col = params["br"].reshape(C_RED, 1)                  # (256, 1)

    # Fold eval-mode BN scale into the 3x3 conv weight; shift stays in epilogue.
    bn_scale = params["bn_gamma"][0] / jnp.sqrt(params["bn_var"][0] + BN_EPS)   # (32,)
    bn_shift = (params["b1"][0] - params["bn_mean"][0]) * bn_scale + params["bn_beta"][0]
    w1s = params["w1"] * bn_scale[None, None, None, :]        # (3,3,256,32)
    # all-taps conv1 weight: rows ordered (di, dj, c_out) -> (288, 256)
    w9T_bf = jnp.transpose(w1s, (0, 1, 3, 2)).reshape(
        9 * C_HEAD, C_RED).astype(jnp.bfloat16)

    # Kernel 1: conv_reduce + per-tap conv1 matmul, tiled over HW.
    y = pallas_reduce_taps(x_bf, wrT_bf, br_col, w9T_bf, tile_n=tile_n)  # (B,288,HW)

    # 9 spatially-shifted adds (32-channel, cheap) replace an HBM im2col.
    yt = y.astype(jnp.float32).reshape(B, 3, 3, C_HEAD, H, W)
    yp = jnp.pad(yt, ((0, 0), (0, 0), (0, 0), (0, 0), (1, 1), (1, 1)))
    s = jnp.zeros((B, C_HEAD, H, W), jnp.float32)
    for di in range(3):
        for dj in range(3):
            s = s + yp[:, di, dj, :, di:di + H, dj:dj + W]

    # BN shift (scale already folded) + ReLU.
    a = jnp.maximum(s + bn_shift[None, :, None, None], 0.0)   # (B, 32, H, W)

    # SE squeeze + 32->2->32 FC: ~100 FLOPs, far below MXU granularity -> plain JAX.
    se_mean = jnp.mean(a, axis=(2, 3))                         # (B, 32)
    h = jnp.maximum(se_mean @ params["se_w1"], 0.0)
    gate = jax.nn.sigmoid(h @ params["se_w2"])                 # (B, 32)

    # Kernel 2: fused SE scale + 1x1 conv2 (32 -> 96), channel-major.
    w2T_bf = params["w2"].T.astype(jnp.bfloat16)               # (96, 32)
    b2_col = params["b2"].reshape(NUM_OUTPUTS, 1)              # (96, 1)
    out = pallas_se_scale_conv2(a.reshape(B, C_HEAD, HW).astype(jnp.bfloat16),
                                gate.reshape(B, C_HEAD, 1),
                                w2T_bf, b2_col, tile_n=tile_n)  # (B, 96, HW) f32

    return out.reshape(B, NUM_OUTPUTS, H, W)


def reference_forward(params, feats_nchw):
    """Pure-JAX f32 reference mirroring the PyTorch semantics (eval mode)."""
    B, C, H, W = feats_nchw.shape
    x = jnp.transpose(feats_nchw, (0, 2, 3, 1)).reshape(B * H * W, C)
    x = x @ params["wr"] + params["br"]
    xs = x.reshape(B, H, W, C_RED)
    xp = jnp.pad(xs, ((0, 0), (1, 1), (1, 1), (0, 0)))
    taps = [xp[:, di:di + H, dj:dj + W, :] for di in range(3) for dj in range(3)]
    patches = jnp.stack(taps, axis=3).reshape(B * H * W, 9 * C_RED)
    y = patches @ params["w1"].reshape(9 * C_RED, C_HEAD) + params["b1"]
    y = (y - params["bn_mean"]) / jnp.sqrt(params["bn_var"] + BN_EPS)
    y = y * params["bn_gamma"] + params["bn_beta"]
    y = jnp.maximum(y, 0.0)
    y3 = y.reshape(B, H * W, C_HEAD)
    se = jnp.mean(y3, axis=1)
    se = jnp.maximum(se @ params["se_w1"], 0.0)
    se = jax.nn.sigmoid(se @ params["se_w2"])
    y3 = y3 * se[:, None, :]
    out = y3.reshape(B * H * W, C_HEAD) @ params["w2"] + params["b2"]
    return jnp.transpose(out.reshape(B, H, W, NUM_OUTPUTS), (0, 3, 1, 2))


if __name__ == "__main__":
    key = jax.random.PRNGKey(0)
    k_x, k_p = jax.random.split(key)

    B, H, W = 2, 32, 32                      # 32x32 backbone feature map
    feats = jax.random.normal(k_x, (B, C_FEAT, H, W), jnp.float32)
    params = init_params(k_p)

    fwd = jax.jit(yolo_face_detector_forward)
    out = jax.block_until_ready(fwd(params, feats))
    assert out.shape == (B, NUM_OUTPUTS, H, W), out.shape

    ref = jax.block_until_ready(jax.jit(reference_forward)(params, feats))
    max_err = float(jnp.max(jnp.abs(out - ref)))
    ref_max = float(jnp.max(jnp.abs(ref)))
    tol = 5e-2 * max(1.0, ref_max)           # relative tolerance for bf16 matmuls
    if max_err > tol:
        raise AssertionError(
            f"mismatch vs reference: max_abs_err={max_err:.4g}, tol={tol:.4g}")

    print("KERNEL_OK")
</pallas_src>

<mosaic_0001>
module attributes {stable_mosaic.version = 11 : i64} {
  func.func @reduce_taps_kernel(%arg0: i32, %arg1: i32, %arg2: memref<1x960x512xbf16, #tpu.memory_space<vmem>>, %arg3: memref<256x960xbf16, #tpu.memory_space<vmem>>, %arg4: memref<256x1xf32, #tpu.memory_space<vmem>>, %arg5: memref<288x256xbf16, #tpu.memory_space<vmem>>, %arg6: memref<1x288x512xbf16, #tpu.memory_space<vmem>>) attributes {dimension_semantics = [#tpu.dimension_semantics<parallel>, #tpu.dimension_semantics<parallel>], iteration_bounds = array<i64: 2, 2>, scalar_prefetch = 0 : i64, scratch_operands = 0 : i64, tpu.core_type = #tpu.core_type<tc>, window_params = [{transform_indices = @transform_0, window_bounds = array<i64: 1, 960, 512>}, {pipeline_mode = #tpu.pipeline_mode<synchronous>, transform_indices = @transform_1, window_bounds = array<i64: 256, 960>}, {pipeline_mode = #tpu.pipeline_mode<synchronous>, transform_indices = @transform_2, window_bounds = array<i64: 256, 1>}, {pipeline_mode = #tpu.pipeline_mode<synchronous>, transform_indices = @transform_3, window_bounds = array<i64: 288, 256>}, {transform_indices = @transform_4, window_bounds = array<i64: 1, 288, 512>}]} {
    %c0 = arith.constant 0 : index
    %c0_0 = arith.constant 0 : index
    %0 = vector.load %arg3[%c0, %c0_0] : memref<256x960xbf16, #tpu.memory_space<vmem>>, vector<256x960xbf16>
    %c0_1 = arith.constant 0 : index
    %c0_2 = arith.constant 0 : index
    %c0_3 = arith.constant 0 : index
    %1 = vector.load %arg2[%c0_1, %c0_2, %c0_3] : memref<1x960x512xbf16, #tpu.memory_space<vmem>>, vector<1x960x512xbf16>
    %2 = vector.shape_cast %1 : vector<1x960x512xbf16> to vector<960x512xbf16>
    %cst = arith.constant dense<0.000000e+00> : vector<256x512xf32>
    %3 = tpu.matmul %0, %2, %cst {dimension_numbers = #tpu.dot_dimension_numbers<[1], [0], [0], [1], [0, 0, 1, 1], [], []>} : vector<256x960xbf16>, vector<960x512xbf16>, vector<256x512xf32> -> vector<256x512xf32>
    %c0_4 = arith.constant 0 : index
    %c0_5 = arith.constant 0 : index
    %4 = vector.load %arg4[%c0_4, %c0_5] : memref<256x1xf32, #tpu.memory_space<vmem>>, vector<256x1xf32>
    %5 = vector.broadcast %4 : vector<256x1xf32> to vector<256x512xf32>
    %6 = arith.addf %3, %5 : vector<256x512xf32>
    %7 = arith.truncf %6 : vector<256x512xf32> to vector<256x512xbf16>
    %c0_6 = arith.constant 0 : index
    %c0_7 = arith.constant 0 : index
    %8 = vector.load %arg5[%c0_6, %c0_7] : memref<288x256xbf16, #tpu.memory_space<vmem>>, vector<288x256xbf16>
    %cst_8 = arith.constant dense<0.000000e+00> : vector<288x512xf32>
    %9 = tpu.matmul %8, %7, %cst_8 {dimension_numbers = #tpu.dot_dimension_numbers<[1], [0], [0], [1], [0, 0, 1, 1], [], []>} : vector<288x256xbf16>, vector<256x512xbf16>, vector<288x512xf32> -> vector<288x512xf32>
    %10 = arith.truncf %9 : vector<288x512xf32> to vector<288x512xbf16>
    %c0_9 = arith.constant 0 : index
    %c0_10 = arith.constant 0 : index
    %c0_11 = arith.constant 0 : index
    %11 = vector.load %arg6[%c0_9, %c0_10, %c0_11] : memref<1x288x512xbf16, #tpu.memory_space<vmem>>, vector<1x288x512xbf16>
    %12 = vector.shape_cast %11 : vector<1x288x512xbf16> to vector<288x512xbf16>
    %13 = vector.shape_cast %10 : vector<288x512xbf16> to vector<1x288x512xbf16>
    tpu.vector_store %arg6[%c0_9, %c0_10, %c0_11], %13 {strides = array<i32>} : memref<1x288x512xbf16, #tpu.memory_space<vmem>>, vector<1x288x512xbf16>,
    return
  }
  func.func @transform_0(%arg0: i32, %arg1: i32) -> (i32, i32, i32) {
    %c0_i32 = arith.constant 0 : i32
    %c0_i32_0 = arith.constant 0 : i32
    return %arg0, %c0_i32, %arg1 : i32, i32, i32
  }
  func.func @transform_1(%arg0: i32, %arg1: i32) -> (i32, i32) {
    %c0_i32 = arith.constant 0 : i32
    %c0_i32_0 = arith.constant 0 : i32
    %c0_i32_1 = arith.constant 0 : i32
    return %c0_i32, %c0_i32_0 : i32, i32
  }
  func.func @transform_2(%arg0: i32, %arg1: i32) -> (i32, i32) {
    %c0_i32 = arith.constant 0 : i32
    %c0_i32_0 = arith.constant 0 : i32
    %c0_i32_1 = arith.constant 0 : i32
    return %c0_i32, %c0_i32_0 : i32, i32
  }
  func.func @transform_3(%arg0: i32, %arg1: i32) -> (i32, i32) {
    %c0_i32 = arith.constant 0 : i32
    %c0_i32_0 = arith.constant 0 : i32
    %c0_i32_1 = arith.constant 0 : i32
    return %c0_i32, %c0_i32_0 : i32, i32
  }
  func.func @transform_4(%arg0: i32, %arg1: i32) -> (i32, i32, i32) {
    %c0_i32 = arith.constant 0 : i32
    %c0_i32_0 = arith.constant 0 : i32
    return %arg0, %c0_i32, %arg1 : i32, i32, i32
  }
}

module attributes {stable_mosaic.version = 11 : i64} {
  func.func @se_scale_conv2_kernel(%arg0: i32, %arg1: i32, %arg2: memref<1x32x512xbf16, #tpu.memory_space<vmem>>, %arg3: memref<1x32x1xf32, #tpu.memory_space<vmem>>, %arg4: memref<96x32xbf16, #tpu.memory_space<vmem>>, %arg5: memref<96x1xf32, #tpu.memory_space<vmem>>, %arg6: memref<1x96x512xf32, #tpu.memory_space<vmem>>) attributes {dimension_semantics = [#tpu.dimension_semantics<parallel>, #tpu.dimension_semantics<parallel>], iteration_bounds = array<i64: 2, 2>, scalar_prefetch = 0 : i64, scratch_operands = 0 : i64, tpu.core_type = #tpu.core_type<tc>, window_params = [{transform_indices = @transform_0, window_bounds = array<i64: 1, 32, 512>}, {transform_indices = @transform_1, window_bounds = array<i64: 1, 32, 1>}, {pipeline_mode = #tpu.pipeline_mode<synchronous>, transform_indices = @transform_2, window_bounds = array<i64: 96, 32>}, {pipeline_mode = #tpu.pipeline_mode<synchronous>, transform_indices = @transform_3, window_bounds = array<i64: 96, 1>}, {transform_indices = @transform_4, window_bounds = array<i64: 1, 96, 512>}]} {
    %c0 = arith.constant 0 : index
    %c0_0 = arith.constant 0 : index
    %c0_1 = arith.constant 0 : index
    %0 = vector.load %arg2[%c0, %c0_0, %c0_1] : memref<1x32x512xbf16, #tpu.memory_space<vmem>>, vector<1x32x512xbf16>
    %1 = vector.shape_cast %0 : vector<1x32x512xbf16> to vector<32x512xbf16>
    %2 = arith.extf %1 : vector<32x512xbf16> to vector<32x512xf32>
    %c0_2 = arith.constant 0 : index
    %c0_3 = arith.constant 0 : index
    %c0_4 = arith.constant 0 : index
    %3 = vector.load %arg3[%c0_2, %c0_3, %c0_4] : memref<1x32x1xf32, #tpu.memory_space<vmem>>, vector<1x32x1xf32>
    %4 = vector.shape_cast %3 : vector<1x32x1xf32> to vector<32x1xf32>
    %5 = vector.broadcast %4 : vector<32x1xf32> to vector<32x512xf32>
    %6 = arith.mulf %2, %5 : vector<32x512xf32>
    %7 = arith.truncf %6 : vector<32x512xf32> to vector<32x512xbf16>
    %c0_5 = arith.constant 0 : index
    %c0_6 = arith.constant 0 : index
    %8 = vector.load %arg4[%c0_5, %c0_6] : memref<96x32xbf16, #tpu.memory_space<vmem>>, vector<96x32xbf16>
    %cst = arith.constant dense<0.000000e+00> : vector<96x512xf32>
    %9 = tpu.matmul %8, %7, %cst {dimension_numbers = #tpu.dot_dimension_numbers<[1], [0], [0], [1], [0, 0, 1, 1], [], []>} : vector<96x32xbf16>, vector<32x512xbf16>, vector<96x512xf32> -> vector<96x512xf32>
    %c0_7 = arith.constant 0 : index
    %c0_8 = arith.constant 0 : index
    %10 = vector.load %arg5[%c0_7, %c0_8] : memref<96x1xf32, #tpu.memory_space<vmem>>, vector<96x1xf32>
    %11 = vector.broadcast %10 : vector<96x1xf32> to vector<96x512xf32>
    %12 = arith.addf %9, %11 : vector<96x512xf32>
    %c0_9 = arith.constant 0 : index
    %c0_10 = arith.constant 0 : index
    %c0_11 = arith.constant 0 : index
    %13 = vector.load %arg6[%c0_9, %c0_10, %c0_11] : memref<1x96x512xf32, #tpu.memory_space<vmem>>, vector<1x96x512xf32>
    %14 = vector.shape_cast %13 : vector<1x96x512xf32> to vector<96x512xf32>
    %15 = vector.shape_cast %12 : vector<96x512xf32> to vector<1x96x512xf32>
    tpu.vector_store %arg6[%c0_9, %c0_10, %c0_11], %15 {strides = array<i32>} : memref<1x96x512xf32, #tpu.memory_space<vmem>>, vector<1x96x512xf32>,
    return
  }
  func.func @transform_0(%arg0: i32, %arg1: i32) -> (i32, i32, i32) {
    %c0_i32 = arith.constant 0 : i32
    %c0_i32_0 = arith.constant 0 : i32
    return %arg0, %c0_i32, %arg1 : i32, i32, i32
  }
  func.func @transform_1(%arg0: i32, %arg1: i32) -> (i32, i32, i32) {
    %c0_i32 = arith.constant 0 : i32
    %c0_i32_0 = arith.constant 0 : i32
    %c0_i32_1 = arith.constant 0 : i32
    return %arg0, %c0_i32, %c0_i32_0 : i32, i32, i32
  }
  func.func @transform_2(%arg0: i32, %arg1: i32) -> (i32, i32) {
    %c0_i32 = arith.constant 0 : i32
    %c0_i32_0 = arith.constant 0 : i32
    %c0_i32_1 = arith.constant 0 : i32
    return %c0_i32, %c0_i32_0 : i32, i32
  }
  func.func @transform_3(%arg0: i32, %arg1: i32) -> (i32, i32) {
    %c0_i32 = arith.constant 0 : i32
    %c0_i32_0 = arith.constant 0 : i32
    %c0_i32_1 = arith.constant 0 : i32
    return %c0_i32, %c0_i32_0 : i32, i32
  }
  func.func @transform_4(%arg0: i32, %arg1: i32) -> (i32, i32, i32) {
    %c0_i32 = arith.constant 0 : i32
    %c0_i32_0 = arith.constant 0 : i32
    return %arg0, %c0_i32, %arg1 : i32, i32, i32
  }
}

</mosaic_0001>

<bundles_post_ra>
// kernel: yolo_face_detector_forward.2
= control target key start
LH: loop header
LB: loop body
LE: loop exit
PB: predicated region body
PF: predicated region fallthrough
CT: control target
= control target key end

     0   :  { %s7806_s15 = smov 0   ;;  %s7808_s16 = smov 0   ;;  %s9476_s0 = inlined_call_operand.vmem [shape: bf16[2,960,1024], index: 0, kind: input, shape index: {}]   ;;  %s9477_s1 = inlined_call_operand.vmem [shape: bf16[256,960], index: 1, kind: input, shape index: {}]   ;;  %s9478_s2 = inlined_call_operand.vmem [shape: f32[256,1], index: 2, kind: input, shape index: {}]   ;;  %s9479_s3 = inlined_call_operand.vmem [shape: bf16[288,256], index: 3, kind: input, shape index: {}]   ;;  %s9480_s4 = inlined_call_operand.vmem [shape: bf16[2,288,1024], index: 4, kind: output, shape index: {}]  }
   0x1   :  { %s7810_s17 = smov 0   ;;  %s7812_s18 = smov 0  }
   0x2   :  { %s7814_s19 = smov 0   ;;  %s7816_s20 = smov 0  }
   0x3   :  { %s7818_s21 = smov 0  }
   0x4 LB: > { %s23_s22 = sadd.s32 1, %s7770_s19  ;;  %s26_s23 = sadd.s32 1, %s7774_s20  ;;  %s7778_s21 = sphi %s7818_s21, %s14_s21   ;;  %s7774_s20 = sphi %s7816_s20, %s9487_s20   ;;  %s7770_s19 = sphi %s7814_s19, %s9486_s19   ;;  %s7766_s18 = sphi %s7812_s18, %s9485_s18   ;;  %s7762_s17 = sphi %s7810_s17, %s9484_s17   ;;  %s7758_s16 = sphi %s7808_s16, %s9483_s16   ;;  %s7754_s15 = sphi %s7806_s15, %s9482_s15  }
   0x5   : > { %p24_p0 = scmp.ge.s32.totalorder %s23_s22, 2  ;;  %s6143_s24 = sadd.s32 4294967295, %s7778_s21  }
   0x6   : > { %p42_p1 = scmp.ne.s32.totalorder %s7758_s16, %s7754_s15  ;;  %p43_p2 = scmp.eq.s32.totalorder %s7778_s21, 0 }
   0x7   : > { %s9489_s22 = smov (%p24_p0, %s23_s22), 0  ;;  %s9491_s23 = smov (!%p24_p0, %s26_s23), %s7774_s20 }
   0x8   : > { %p28_p3 = scmp.ge.s32.totalorder %s9491_s23, 2  ;;  %p137_p4 = scmp.eq.s32.totalorder %s6143_s24, 3 }
   0x9   : > { %s31_s25 = ssub.s32 %s7770_s19, %s9489_s22  ;;  %p44_p5 = por %p43_p2, %p42_p1 }
   0xa   : > { %s9493_s23 = smov (%p28_p3, %s9491_s23), 0  ;;  %p7854_p6 = por %p137_p4, %p42_p1 }
   0xb   : > { %s30_s27 = ssub.s32 %s7774_s20, %s9493_s23  ;;  %s35_s29 = sadd.s32 1, %s7758_s16 }
   0xc   : > { %s32_s28 = sor.u32 %s31_s25, %s30_s27  ;;  %p6146_p8 = scmp.ge.s32.totalorder %s7778_s21, 4 }
   0xd   : > { %p33_p7 = scmp.eq.s32.totalorder %s32_s28, 0 }
   0xe   : > { %168 = sbr.rel (%p6146_p8) target bundleno = 149 (0x95), region = 28 }
   0xf   : > { %s7862_s30 = scalar_select %p33_p7, %s7758_s16, %s35_s29  }
  0x15   : > { %171 = sbr.rel (!%p44_p5) target bundleno = 149 (0x95), region = 32  ;;  %s173_s5 = sand.u32 (%p44_p5), 1, %s7758_s16  }
  0x16   : > { %s7246_s6 = smul.u32 (%p44_p5), 1920, %s173_s5  ;;  %s6147_s7 = sshll.u32 (%p44_p5), %s7770_s19, 2 }
  0x17   : > { %s7247_s8 = smul.u32 (%p44_p5), 960, %s7774_s20 }
  0x18   : > { %s7876_s14 = scalar_lea.vmem (%p44_p5), [#allocation2], %s7246_s6 }
  0x19   : > { %s178_s9 = sadd.s32 (%p44_p5), %s7247_s8, %s6147_s7 }
  0x1a   : > { %s6148_s10 = sshll.u32 (%p44_p5), %s178_s9, 2 }
  0x1b   : > { %s7871_s13 = scalar_lea.vmem (%p44_p5), %s9476_s0, %s6148_s10 }
  0x1c   : > { %v193_v0 = vld [vmem:[%s7871_s13] sm:$0xff]  ;;  %v195_v1 = vld [vmem:[%s7871_s13 + $0x8] sm:$0xff] }
  0x1d   : > { %v197_v2 = vld [vmem:[%s7871_s13 + $0x20] sm:$0xff]  ;;  %194 = vst [vmem:[%s7876_s14] sm:$0xff] %v193_v0  ;;  %196 = vst [vmem:[%s7876_s14 + $0x8] sm:$0xff] %v195_v1  ;;  %v199_v3 = vld [vmem:[%s7871_s13 + $0x28] sm:$0xff] }
  0x1e   : > { %198 = vst [vmem:[%s7876_s14 + $0x10] sm:$0xff] %v197_v2  ;;  %v201_v4 = vld [vmem:[%s7871_s13 + $0x40] sm:$0xff]  ;;  %v203_v5 = vld [vmem:[%s7871_s13 + $0x48] sm:$0xff]  ;;  %200 = vst [vmem:[%s7876_s14 + $0x18] sm:$0xff] %v199_v3 }
  0x1f   : > { %202 = vst [vmem:[%s7876_s14 + $0x20] sm:$0xff] %v201_v4  ;;  %204 = vst [vmem:[%s7876_s14 + $0x28] sm:$0xff] %v203_v5  ;;  %v205_v6 = vld [vmem:[%s7871_s13 + $0x60] sm:$0xff]  ;;  %v207_v7 = vld [vmem:[%s7871_s13 + $0x68] sm:$0xff] }
  0x20   : > { %v209_v8 = vld [vmem:[%s7871_s13 + $0x80] sm:$0xff]  ;;  %206 = vst [vmem:[%s7876_s14 + $0x30] sm:$0xff] %v205_v6  ;;  %208 = vst [vmem:[%s7876_s14 + $0x38] sm:$0xff] %v207_v7  ;;  %v211_v9 = vld [vmem:[%s7871_s13 + $0x88] sm:$0xff] }
  0x21   : > { %210 = vst [vmem:[%s7876_s14 + $0x40] sm:$0xff] %v209_v8  ;;  %v213_v10 = vld [vmem:[%s7871_s13 + $0xa0] sm:$0xff]  ;;  %v215_v11 = vld [vmem:[%s7871_s13 + $0xa8] sm:$0xff]  ;;  %212 = vst [vmem:[%s7876_s14 + $0x48] sm:$0xff] %v211_v9 }
  0x22   : > { %214 = vst [vmem:[%s7876_s14 + $0x50] sm:$0xff] %v213_v10  ;;  %216 = vst [vmem:[%s7876_s14 + $0x58] sm:$0xff] %v215_v11  ;;  %v217_v12 = vld [vmem:[%s7871_s13 + $0xc0] sm:$0xff]  ;;  %v219_v13 = vld [vmem:[%s7871_s13 + $0xc8] sm:$0xff] }
  0x23   : > { %v221_v14 = vld [vmem:[%s7871_s13 + $0xe0] sm:$0xff]  ;;  %218 = vst [vmem:[%s7876_s14 + $0x60] sm:$0xff] %v217_v12  ;;  %220 = vst [vmem:[%s7876_s14 + $0x68] sm:$0xff] %v219_v13  ;;  %v223_v15 = vld [vmem:[%s7871_s13 + $0xe8] sm:$0xff] }
  0x24   : > { %222 = vst [vmem:[%s7876_s14 + $0x70] sm:$0xff] %v221_v14  ;;  %v225_v16 = vld [vmem:[%s7871_s13 + $0x100] sm:$0xff]  ;;  %v227_v17 = vld [vmem:[%s7871_s13 + $0x108] sm:$0xff]  ;;  %224 = vst [vmem:[%s7876_s14 + $0x78] sm:$0xff] %v223_v15 }
  0x25   : > { %226 = vst [vmem:[%s7876_s14 + $0x80] sm:$0xff] %v225_v16  ;;  %228 = vst [vmem:[%s7876_s14 + $0x88] sm:$0xff] %v227_v17  ;;  %v229_v18 = vld [vmem:[%s7871_s13 + $0x120] sm:$0xff]  ;;  %v231_v19 = vld [vmem:[%s7871_s13 + $0x128] sm:$0xff] }
  0x26   : > { %v233_v20 = vld [vmem:[%s7871_s13 + $0x140] sm:$0xff]  ;;  %230 = vst [vmem:[%s7876_s14 + $0x90] sm:$0xff] %v229_v18  ;;  %232 = vst [vmem:[%s7876_s14 + $0x98] sm:$0xff] %v231_v19  ;;  %v235_v21 = vld [vmem:[%s7871_s13 + $0x148] sm:$0xff] }
  0x27   : > { %234 = vst [vmem:[%s7876_s14 + $0xa0] sm:$0xff] %v233_v20  ;;  %v237_v22 = vld [vmem:[%s7871_s13 + $0x160] sm:$0xff]  ;;  %v239_v23 = vld [vmem:[%s7871_s13 + $0x168] sm:$0xff]  ;;  %236 = vst [vmem:[%s7876_s14 + $0xa8] sm:$0xff] %v235_v21 }
  0x28   : > { %238 = vst [vmem:[%s7876_s14 + $0xb0] sm:$0xff] %v237_v22  ;;  %240 = vst [vmem:[%s7876_s14 + $0xb8] sm:$0xff] %v239_v23  ;;  %v241_v24 = vld [vmem:[%s7871_s13 + $0x180] sm:$0xff]  ;;  %v243_v25 = vld [vmem:[%s7871_s13 + $0x188] sm:$0xff] }
  0x29   : > { %v245_v26 = vld [vmem:[%s7871_s13 + $0x1a0] sm:$0xff]  ;;  %242 = vst [vmem:[%s7876_s14 + $0xc0] sm:$0xff] %v241_v24  ;;  %244 = vst [vmem:[%s7876_s14 + $0xc8] sm:$0xff] %v243_v25  ;;  %v247_v27 = vld [vmem:[%s7871_s13 + $0x1a8] sm:$0xff] }
  0x2a   : > { %246 = vst [vmem:[%s7876_s14 + $0xd0] sm:$0xff] %v245_v26  ;;  %v249_v28 = vld [vmem:[%s7871_s13 + $0x1c0] sm:$0xff]  ;;  %v251_v29 = vld [vmem:[%s7871_s13 + $0x1c8] sm:$0xff]  ;;  %248 = vst [vmem:[%s7876_s14 + $0xd8] sm:$0xff] %v247_v27 }
  0x2b   : > { %250 = vst [vmem:[%s7876_s14 + $0xe0] sm:$0xff] %v249_v28  ;;  %252 = vst [vmem:[%s7876_s14 + $0xe8] sm:$0xff] %v251_v29  ;;  %v253_v30 = vld [vmem:[%s7871_s13 + $0x1e0] sm:$0xff]  ;;  %v255_v31 = vld [vmem:[%s7871_s13 + $0x1e8] sm:$0xff] }
  0x2c   : > { %v257_v32 = vld [vmem:[%s7871_s13 + $0x200] sm:$0xff]  ;;  %254 = vst [vmem:[%s7876_s14 + $0xf0] sm:$0xff] %v253_v30  ;;  %256 = vst [vmem:[%s7876_s14 + $0xf8] sm:$0xff] %v255_v31  ;;  %v259_v33 = vld [vmem:[%s7871_s13 + $0x208] sm:$0xff] }
  0x2d   : > { %258 = vst [vmem:[%s7876_s14 + $0x100] sm:$0xff] %v257_v32  ;;  %v261_v34 = vld [vmem:[%s7871_s13 + $0x220] sm:$0xff]  ;;  %v263_v35 = vld [vmem:[%s7871_s13 + $0x228] sm:$0xff]  ;;  %260 = vst [vmem:[%s7876_s14 + $0x108] sm:$0xff] %v259_v33 }
  0x2e   : > { %262 = vst [vmem:[%s7876_s14 + $0x110] sm:$0xff] %v261_v34  ;;  %264 = vst [vmem:[%s7876_s14 + $0x118] sm:$0xff] %v263_v35  ;;  %v265_v36 = vld [vmem:[%s7871_s13 + $0x240] sm:$0xff]  ;;  %v267_v37 = vld [vmem:[%s7871_s13 + $0x248] sm:$0xff] }
  0x2f   : > { %v269_v38 = vld [vmem:[%s7871_s13 + $0x260] sm:$0xff]  ;;  %266 = vst [vmem:[%s7876_s14 + $0x120] sm:$0xff] %v265_v36  ;;  %268 = vst [vmem:[%s7876_s14 + $0x128] sm:$0xff] %v267_v37  ;;  %v271_v39 = vld [vmem:[%s7871_s13 + $0x268] sm:$0xff] }
  0x30   : > { %270 = vst [vmem:[%s7876_s14 + $0x130] sm:$0xff] %v269_v38  ;;  %v273_v40 = vld [vmem:[%s7871_s13 + $0x280] sm:$0xff]  ;;  %v275_v41 = vld [vmem:[%s7871_s13 + $0x288] sm:$0xff]  ;;  %272 = vst [vmem:[%s7876_s14 + $0x138] sm:$0xff] %v271_v39 }
  0x31   : > { %274 = vst [vmem:[%s7876_s14 + $0x140] sm:$0xff] %v273_v40  ;;  %276 = vst [vmem:[%s7876_s14 + $0x148] sm:$0xff] %v275_v41  ;;  %v277_v42 = vld [vmem:[%s7871_s13 + $0x2a0] sm:$0xff]  ;;  %v279_v43 = vld [vmem:[%s7871_s13 + $0x2a8] sm:$0xff] }
  0x32   : > { %v281_v44 = vld [vmem:[%s7871_s13 + $0x2c0] sm:$0xff]  ;;  %278 = vst [vmem:[%s7876_s14 + $0x150] sm:$0xff] %v277_v42  ;;  %280 = vst [vmem:[%s7876_s14 + $0x158] sm:$0xff] %v279_v43  ;;  %v283_v45 = vld [vmem:[%s7871_s13 + $0x2c8] sm:$0xff] }
  0x33   : > { %282 = vst [vmem:[%s7876_s14 + $0x160] sm:$0xff] %v281_v44  ;;  %v285_v46 = vld [vmem:[%s7871_s13 + $0x2e0] sm:$0xff]  ;;  %v287_v47 = vld [vmem:[%s7871_s13 + $0x2e8] sm:$0xff]  ;;  %284 = vst [vmem:[%s7876_s14 + $0x168] sm:$0xff] %v283_v45 }
  0x34   : > { %286 = vst [vmem:[%s7876_s14 + $0x170] sm:$0xff] %v285_v46  ;;  %288 = vst [vmem:[%s7876_s14 + $0x178] sm:$0xff] %v287_v47  ;;  %v289_v48 = vld [vmem:[%s7871_s13 + $0x300] sm:$0xff]  ;;  %v291_v49 = vld [vmem:[%s7871_s13 + $0x308] sm:$0xff] }
  0x35   : > { %v293_v50 = vld [vmem:[%s7871_s13 + $0x320] sm:$0xff]  ;;  %290 = vst [vmem:[%s7876_s14 + $0x180] sm:$0xff] %v289_v48  ;;  %292 = vst [vmem:[%s7876_s14 + $0x188] sm:$0xff] %v291_v49  ;;  %v295_v51 = vld [vmem:[%s7871_s13 + $0x328] sm:$0xff] }
  0x36   : > { %294 = vst [vmem:[%s7876_s14 + $0x190] sm:$0xff] %v293_v50  ;;  %v297_v52 = vld [vmem:[%s7871_s13 + $0x340] sm:$0xff]  ;;  %v299_v53 = vld [vmem:[%s7871_s13 + $0x348] sm:$0xff]  ;;  %296 = vst [vmem:[%s7876_s14 + $0x198] sm:$0xff] %v295_v51 }
  0x37   : > { %298 = vst [vmem:[%s7876_s14 + $0x1a0] sm:$0xff] %v297_v52  ;;  %300 = vst [vmem:[%s7876_s14 + $0x1a8] sm:$0xff] %v299_v53  ;;  %v301_v54 = vld [vmem:[%s7871_s13 + $0x360] sm:$0xff]  ;;  %v303_v55 = vld [vmem:[%s7871_s13 + $0x368] sm:$0xff] }
  0x38   : > { %v305_v56 = vld [vmem:[%s7871_s13 + $0x380] sm:$0xff]  ;;  %302 = vst [vmem:[%s7876_s14 + $0x1b0] sm:$0xff] %v301_v54  ;;  %304 = vst [vmem:[%s7876_s14 + $0x1b8] sm:$0xff] %v303_v55  ;;  %v307_v57 = vld [vmem:[%s7871_s13 + $0x388] sm:$0xff] }
  0x39   : > { %306 = vst [vmem:[%s7876_s14 + $0x1c0] sm:$0xff] %v305_v56  ;;  %v309_v58 = vld [vmem:[%s7871_s13 + $0x3a0] sm:$0xff]  ;;  %v311_v59 = vld [vmem:[%s7871_s13 + $0x3a8] sm:$0xff]  ;;  %308 = vst [vmem:[%s7876_s14 + $0x1c8] sm:$0xff] %v307_v57 }
  0x3a   : > { %310 = vst [vmem:[%s7876_s14 + $0x1d0] sm:$0xff] %v309_v58  ;;  %312 = vst [vmem:[%s7876_s14 + $0x1d8] sm:$0xff] %v311_v59  ;;  %v313_v60 = vld [vmem:[%s7871_s13 + $0x3c0] sm:$0xff]  ;;  %v315_v61 = vld [vmem:[%s7871_s13 + $0x3c8] sm:$0xff] }
  0x3b   : > { %v317_v62 = vld [vmem:[%s7871_s13 + $0x3e0] sm:$0xff]  ;;  %314 = vst [vmem:[%s7876_s14 + $0x1e0] sm:$0xff] %v313_v60  ;;  %316 = vst [vmem:[%s7876_s14 + $0x1e8] sm:$0xff] %v315_v61  ;;  %v319_v63 = vld [vmem:[%s7871_s13 + $0x3e8] sm:$0xff] }
  0x3c   : > { %318 = vst [vmem:[%s7876_s14 + $0x1f0] sm:$0xff] %v317_v62  ;;  %v321_v0 = vld [vmem:[%s7871_s13 + $0x400] sm:$0xff]  ;;  %v323_v1 = vld [vmem:[%s7871_s13 + $0x408] sm:$0xff]  ;;  %320 = vst [vmem:[%s7876_s14 + $0x1f8] sm:$0xff] %v319_v63 }
  0x3d   : > { %322 = vst [vmem:[%s7876_s14 + $0x200] sm:$0xff] %v321_v0  ;;  %324 = vst [vmem:[%s7876_s14 + $0x208] sm:$0xff] %v323_v1  ;;  %v325_v2 = vld [vmem:[%s7871_s13 + $0x420] sm:$0xff]  ;;  %v327_v3 = vld [vmem:[%s7871_s13 + $0x428] sm:$0xff] }
  0x3e   : > { %v329_v4 = vld [vmem:[%s7871_s13 + $0x440] sm:$0xff]  ;;  %326 = vst [vmem:[%s7876_s14 + $0x210] sm:$0xff] %v325_v2  ;;  %328 = vst [vmem:[%s7876_s14 + $0x218] sm:$0xff] %v327_v3  ;;  %v331_v5 = vld [vmem:[%s7871_s13 + $0x448] sm:$0xff] }
  0x3f   : > { %330 = vst [vmem:[%s7876_s14 + $0x220] sm:$0xff] %v329_v4  ;;  %v333_v6 = vld [vmem:[%s7871_s13 + $0x460] sm:$0xff]  ;;  %v335_v7 = vld [vmem:[%s7871_s13 + $0x468] sm:$0xff]  ;;  %332 = vst [vmem:[%s7876_s14 + $0x228] sm:$0xff] %v331_v5 }
  0x40   : > { %334 = vst [vmem:[%s7876_s14 + $0x230] sm:$0xff] %v333_v6  ;;  %336 = vst [vmem:[%s7876_s14 + $0x238] sm:$0xff] %v335_v7  ;;  %v337_v8 = vld [vmem:[%s7871_s13 + $0x480] sm:$0xff]  ;;  %v339_v9 = vld [vmem:[%s7871_s13 + $0x488] sm:$0xff] }
  0x41   : > { %v341_v10 = vld [vmem:[%s7871_s13 + $0x4a0] sm:$0xff]  ;;  %338 = vst [vmem:[%s7876_s14 + $0x240] sm:$0xff] %v337_v8  ;;  %340 = vst [vmem:[%s7876_s14 + $0x248] sm:$0xff] %v339_v9  ;;  %v343_v11 = vld [vmem:[%s7871_s13 + $0x4a8] sm:$0xff] }
  0x42   : > { %342 = vst [vmem:[%s7876_s14 + $0x250] sm:$0xff] %v341_v10  ;;  %v345_v12 = vld [vmem:[%s7871_s13 + $0x4c0] sm:$0xff]  ;;  %v347_v13 = vld [vmem:[%s7871_s13 + $0x4c8] sm:$0xff]  ;;  %344 = vst [vmem:[%s7876_s14 + $0x258] sm:$0xff] %v343_v11 }
  0x43   : > { %346 = vst [vmem:[%s7876_s14 + $0x260] sm:$0xff] %v345_v12  ;;  %348 = vst [vmem:[%s7876_s14 + $0x268] sm:$0xff] %v347_v13  ;;  %v349_v14 = vld [vmem:[%s7871_s13 + $0x4e0] sm:$0xff]  ;;  %v351_v15 = vld [vmem:[%s7871_s13 + $0x4e8] sm:$0xff] }
  0x44   : > { %v353_v16 = vld [vmem:[%s7871_s13 + $0x500] sm:$0xff]  ;;  %350 = vst [vmem:[%s7876_s14 + $0x270] sm:$0xff] %v349_v14  ;;  %352 = vst [vmem:[%s7876_s14 + $0x278] sm:$0xff] %v351_v15  ;;  %v355_v17 = vld [vmem:[%s7871_s13 + $0x508] sm:$0xff] }
  0x45   : > { %354 = vst [vmem:[%s7876_s14 + $0x280] sm:$0xff] %v353_v16  ;;  %v357_v18 = vld [vmem:[%s7871_s13 + $0x520] sm:$0xff]  ;;  %v359_v19 = vld [vmem:[%s7871_s13 + $0x528] sm:$0xff]  ;;  %356 = vst [vmem:[%s7876_s14 + $0x288] sm:$0xff] %v355_v17 }
  0x46   : > { %358 = vst [vmem:[%s7876_s14 + $0x290] sm:$0xff] %v357_v18  ;;  %360 = vst [vmem:[%s7876_s14 + $0x298] sm:$0xff] %v359_v19  ;;  %v361_v20 = vld [vmem:[%s7871_s13 + $0x540] sm:$0xff]  ;;  %v363_v21 = vld [vmem:[%s7871_s13 + $0x548] sm:$0xff] }
  0x47   : > { %v365_v22 = vld [vmem:[%s7871_s13 + $0x560] sm:$0xff]  ;;  %362 = vst [vmem:[%s7876_s14 + $0x2a0] sm:$0xff] %v361_v20  ;;  %364 = vst [vmem:[%s7876_s14 + $0x2a8] sm:$0xff] %v363_v21  ;;  %v367_v23 = vld [vmem:[%s7871_s13 + $0x568] sm:$0xff] }
  0x48   : > { %366 = vst [vmem:[%s7876_s14 + $0x2b0] sm:$0xff] %v365_v22  ;;  %v369_v24 = vld [vmem:[%s7871_s13 + $0x580] sm:$0xff]  ;;  %v371_v25 = vld [vmem:[%s7871_s13 + $0x588] sm:$0xff]  ;;  %368 = vst [vmem:[%s7876_s14 + $0x2b8] sm:$0xff] %v367_v23 }
  0x49   : > { %370 = vst [vmem:[%s7876_s14 + $0x2c0] sm:$0xff] %v369_v24  ;;  %372 = vst [vmem:[%s7876_s14 + $0x2c8] sm:$0xff] %v371_v25  ;;  %v373_v26 = vld [vmem:[%s7871_s13 + $0x5a0] sm:$0xff]  ;;  %v375_v27 = vld [vmem:[%s7871_s13 + $0x5a8] sm:$0xff] }
  0x4a   : > { %v377_v28 = vld [vmem:[%s7871_s13 + $0x5c0] sm:$0xff]  ;;  %374 = vst [vmem:[%s7876_s14 + $0x2d0] sm:$0xff] %v373_v26  ;;  %376 = vst [vmem:[%s7876_s14 + $0x2d8] sm:$0xff] %v375_v27  ;;  %v379_v29 = vld [vmem:[%s7871_s13 + $0x5c8] sm:$0xff] }
  0x4b   : > { %378 = vst [vmem:[%s7876_s14 + $0x2e0] sm:$0xff] %v377_v28  ;;  %v381_v30 = vld [vmem:[%s7871_s13 + $0x5e0] sm:$0xff]  ;;  %v383_v31 = vld [vmem:[%s7871_s13 + $0x5e8] sm:$0xff]  ;;  %380 = vst [vmem:[%s7876_s14 + $0x2e8] sm:$0xff] %v379_v29 }
  0x4c   : > { %382 = vst [vmem:[%s7876_s14 + $0x2f0] sm:$0xff] %v381_v30  ;;  %384 = vst [vmem:[%s7876_s14 + $0x2f8] sm:$0xff] %v383_v31  ;;  %v385_v32 = vld [vmem:[%s7871_s13 + $0x600] sm:$0xff]  ;;  %v387_v33 = vld [vmem:[%s7871_s13 + $0x608] sm:$0xff] }
  0x4d   : > { %v389_v34 = vld [vmem:[%s7871_s13 + $0x620] sm:$0xff]  ;;  %386 = vst [vmem:[%s7876_s14 + $0x300] sm:$0xff] %v385_v32  ;;  %388 = vst [vmem:[%s7876_s14 + $0x308] sm:$0xff] %v387_v33  ;;  %v391_v35 = vld [vmem:[%s7871_s13 + $0x628] sm:$0xff] }
  0x4e   : > { %390 = vst [vmem:[%s7876_s14 + $0x310] sm:$0xff] %v389_v34  ;;  %v393_v36 = vld [vmem:[%s7871_s13 + $0x640] sm:$0xff]  ;;  %v395_v37 = vld [vmem:[%s7871_s13 + $0x648] sm:$0xff]  ;;  %392 = vst [vmem:[%s7876_s14 + $0x318] sm:$0xff] %v391_v35 }
  0x4f   : > { %394 = vst [vmem:[%s7876_s14 + $0x320] sm:$0xff] %v393_v36  ;;  %396 = vst [vmem:[%s7876_s14 + $0x328] sm:$0xff] %v395_v37  ;;  %v397_v38 = vld [vmem:[%s7871_s13 + $0x660] sm:$0xff]  ;;  %v399_v39 = vld [vmem:[%s7871_s13 + $0x668] sm:$0xff] }
  0x50   : > { %v401_v40 = vld [vmem:[%s7871_s13 + $0x680] sm:$0xff]  ;;  %398 = vst [vmem:[%s7876_s14 + $0x330] sm:$0xff] %v397_v38  ;;  %400 = vst [vmem:[%s7876_s14 + $0x338] sm:$0xff] %v399_v39  ;;  %v403_v41 = vld [vmem:[%s7871_s13 + $0x688] sm:$0xff] }
  0x51   : > { %402 = vst [vmem:[%s7876_s14 + $0x340] sm:$0xff] %v401_v40  ;;  %v405_v42 = vld [vmem:[%s7871_s13 + $0x6a0] sm:$0xff]  ;;  %v407_v43 = vld [vmem:[%s7871_s13 + $0x6a8] sm:$0xff]  ;;  %404 = vst [vmem:[%s7876_s14 + $0x348] sm:$0xff] %v403_v41 }
  0x52   : > { %406 = vst [vmem:[%s7876_s14 + $0x350] sm:$0xff] %v405_v42  ;;  %408 = vst [vmem:[%s7876_s14 + $0x358] sm:$0xff] %v407_v43  ;;  %v409_v44 = vld [vmem:[%s7871_s13 + $0x6c0] sm:$0xff]  ;;  %v411_v45 = vld [vmem:[%s7871_s13 + $0x6c8] sm:$0xff] }
  0x53   : > { %v413_v46 = vld [vmem:[%s7871_s13 + $0x6e0] sm:$0xff]  ;;  %410 = vst [vmem:[%s7876_s14 + $0x360] sm:$0xff] %v409_v44  ;;  %412 = vst [vmem:[%s7876_s14 + $0x368] sm:$0xff] %v411_v45  ;;  %v415_v47 = vld [vmem:[%s7871_s13 + $0x6e8] sm:$0xff] }
  0x54   : > { %414 = vst [vmem:[%s7876_s14 + $0x370] sm:$0xff] %v413_v46  ;;  %v417_v48 = vld [vmem:[%s7871_s13 + $0x700] sm:$0xff]  ;;  %v419_v49 = vld [vmem:[%s7871_s13 + $0x708] sm:$0xff]  ;;  %416 = vst [vmem:[%s7876_s14 + $0x378] sm:$0xff] %v415_v47 }
  0x55   : > { %418 = vst [vmem:[%s7876_s14 + $0x380] sm:$0xff] %v417_v48  ;;  %420 = vst [vmem:[%s7876_s14 + $0x388] sm:$0xff] %v419_v49  ;;  %v421_v50 = vld [vmem:[%s7871_s13 + $0x720] sm:$0xff]  ;;  %v423_v51 = vld [vmem:[%s7871_s13 + $0x728] sm:$0xff] }
  0x56   : > { %v425_v52 = vld [vmem:[%s7871_s13 + $0x740] sm:$0xff]  ;;  %422 = vst [vmem:[%s7876_s14 + $0x390] sm:$0xff] %v421_v50  ;;  %424 = vst [vmem:[%s7876_s14 + $0x398] sm:$0xff] %v423_v51  ;;  %v427_v53 = vld [vmem:[%s7871_s13 + $0x748] sm:$0xff] }
  0x57   : > { %426 = vst [vmem:[%s7876_s14 + $0x3a0] sm:$0xff] %v425_v52  ;;  %v429_v54 = vld [vmem:[%s7871_s13 + $0x760] sm:$0xff]  ;;  %v431_v55 = vld [vmem:[%s7871_s13 + $0x768] sm:$0xff]  ;;  %428 = vst [vmem:[%s7876_s14 + $0x3a8] sm:$0xff] %v427_v53 }
  0x58   : > { %430 = vst [vmem:[%s7876_s14 + $0x3b0] sm:$0xff] %v429_v54  ;;  %432 = vst [vmem:[%s7876_s14 + $0x3b8] sm:$0xff] %v431_v55  ;;  %v433_v56 = vld [vmem:[%s7871_s13 + $0x780] sm:$0xff]  ;;  %v435_v57 = vld [vmem:[%s7871_s13 + $0x788] sm:$0xff] }
  0x59   : > { %v437_v58 = vld [vmem:[%s7871_s13 + $0x7a0] sm:$0xff]  ;;  %434 = vst [vmem:[%s7876_s14 + $0x3c0] sm:$0xff] %v433_v56  ;;  %436 = vst [vmem:[%s7876_s14 + $0x3c8] sm:$0xff] %v435_v57  ;;  %v439_v59 = vld [vmem:[%s7871_s13 + $0x7a8] sm:$0xff] }
  0x5a   : > { %438 = vst [vmem:[%s7876_s14 + $0x3d0] sm:$0xff] %v437_v58  ;;  %v441_v60 = vld [vmem:[%s7871_s13 + $0x7c0] sm:$0xff]  ;;  %v443_v61 = vld [vmem:[%s7871_s13 + $0x7c8] sm:$0xff]  ;;  %440 = vst [vmem:[%s7876_s14 + $0x3d8] sm:$0xff] %v439_v59 }
  0x5b   : > { %442 = vst [vmem:[%s7876_s14 + $0x3e0] sm:$0xff] %v441_v60  ;;  %444 = vst [vmem:[%s7876_s14 + $0x3e8] sm:$0xff] %v443_v61  ;;  %v445_v62 = vld [vmem:[%s7871_s13 + $0x7e0] sm:$0xff]  ;;  %v447_v63 = vld [vmem:[%s7871_s13 + $0x7e8] sm:$0xff] }
  0x5c   : > { %v449_v0 = vld [vmem:[%s7871_s13 + $0x800] sm:$0xff]  ;;  %446 = vst [vmem:[%s7876_s14 + $0x3f0] sm:$0xff] %v445_v62  ;;  %448 = vst [vmem:[%s7876_s14 + $0x3f8] sm:$0xff] %v447_v63  ;;  %v451_v1 = vld [vmem:[%s7871_s13 + $0x808] sm:$0xff] }
  0x5d   : > { %450 = vst [vmem:[%s7876_s14 + $0x400] sm:$0xff] %v449_v0  ;;  %v453_v2 = vld [vmem:[%s7871_s13 + $0x820] sm:$0xff]  ;;  %v455_v3 = vld [vmem:[%s7871_s13 + $0x828] sm:$0xff]  ;;  %452 = vst [vmem:[%s7876_s14 + $0x408] sm:$0xff] %v451_v1 }
  0x5e   : > { %454 = vst [vmem:[%s7876_s14 + $0x410] sm:$0xff] %v453_v2  ;;  %456 = vst [vmem:[%s7876_s14 + $0x418] sm:$0xff] %v455_v3  ;;  %v457_v4 = vld [vmem:[%s7871_s13 + $0x840] sm:$0xff]  ;;  %v459_v5 = vld [vmem:[%s7871_s13 + $0x848] sm:$0xff] }
  0x5f   : > { %v461_v6 = vld [vmem:[%s7871_s13 + $0x860] sm:$0xff]  ;;  %458 = vst [vmem:[%s7876_s14 + $0x420] sm:$0xff] %v457_v4  ;;  %460 = vst [vmem:[%s7876_s14 + $0x428] sm:$0xff] %v459_v5  ;;  %v463_v7 = vld [vmem:[%s7871_s13 + $0x868] sm:$0xff] }
  0x60   : > { %462 = vst [vmem:[%s7876_s14 + $0x430] sm:$0xff] %v461_v6  ;;  %v465_v8 = vld [vmem:[%s7871_s13 + $0x880] sm:$0xff]  ;;  %v467_v9 = vld [vmem:[%s7871_s13 + $0x888] sm:$0xff]  ;;  %464 = vst [vmem:[%s7876_s14 + $0x438] sm:$0xff] %v463_v7 }
  0x61   : > { %466 = vst [vmem:[%s7876_s14 + $0x440] sm:$0xff] %v465_v8  ;;  %468 = vst [vmem:[%s7876_s14 + $0x448] sm:$0xff] %v467_v9  ;;  %v469_v10 = vld [vmem:[%s7871_s13 + $0x8a0] sm:$0xff]  ;;  %v471_v11 = vld [vmem:[%s7871_s13 + $0x8a8] sm:$0xff] }
  0x62   : > { %v473_v12 = vld [vmem:[%s7871_s13 + $0x8c0] sm:$0xff]  ;;  %470 = vst [vmem:[%s7876_s14 + $0x450] sm:$0xff] %v469_v10  ;;  %472 = vst [vmem:[%s7876_s14 + $0x458] sm:$0xff] %v471_v11  ;;  %v475_v13 = vld [vmem:[%s7871_s13 + $0x8c8] sm:$0xff] }
  0x63   : > { %474 = vst [vmem:[%s7876_s14 + $0x460] sm:$0xff] %v473_v12  ;;  %v477_v14 = vld [vmem:[%s7871_s13 + $0x8e0] sm:$0xff]  ;;  %v479_v15 = vld [vmem:[%s7871_s13 + $0x8e8] sm:$0xff]  ;;  %476 = vst [vmem:[%s7876_s14 + $0x468] sm:$0xff] %v475_v13 }
  0x64   : > { %478 = vst [vmem:[%s7876_s14 + $0x470] sm:$0xff] %v477_v14  ;;  %480 = vst [vmem:[%s7876_s14 + $0x478] sm:$0xff] %v479_v15  ;;  %v481_v16 = vld [vmem:[%s7871_s13 + $0x900] sm:$0xff]  ;;  %v483_v17 = vld [vmem:[%s7871_s13 + $0x908] sm:$0xff] }
  0x65   : > { %v485_v18 = vld [vmem:[%s7871_s13 + $0x920] sm:$0xff]  ;;  %482 = vst [vmem:[%s7876_s14 + $0x480] sm:$0xff] %v481_v16  ;;  %484 = vst [vmem:[%s7876_s14 + $0x488] sm:$0xff] %v483_v17  ;;  %v487_v19 = vld [vmem:[%s7871_s13 + $0x928] sm:$0xff] }
  0x66   : > { %486 = vst [vmem:[%s7876_s14 + $0x490] sm:$0xff] %v485_v18  ;;  %v489_v20 = vld [vmem:[%s7871_s13 + $0x940] sm:$0xff]  ;;  %v491_v21 = vld [vmem:[%s7871_s13 + $0x948] sm:$0xff]  ;;  %488 = vst [vmem:[%s7876_s14 + $0x498] sm:$0xff] %v487_v19 }
  0x67   : > { %490 = vst [vmem:[%s7876_s14 + $0x4a0] sm:$0xff] %v489_v20  ;;  %492 = vst [vmem:[%s7876_s14 + $0x4a8] sm:$0xff] %v491_v21  ;;  %v493_v22 = vld [vmem:[%s7871_s13 + $0x960] sm:$0xff]  ;;  %v495_v23 = vld [vmem:[%s7871_s13 + $0x968] sm:$0xff] }
  0x68   : > { %v497_v24 = vld [vmem:[%s7871_s13 + $0x980] sm:$0xff]  ;;  %494 = vst [vmem:[%s7876_s14 + $0x4b0] sm:$0xff] %v493_v22  ;;  %496 = vst [vmem:[%s7876_s14 + $0x4b8] sm:$0xff] %v495_v23  ;;  %v499_v25 = vld [vmem:[%s7871_s13 + $0x988] sm:$0xff] }
  0x69   : > { %498 = vst [vmem:[%s7876_s14 + $0x4c0] sm:$0xff] %v497_v24  ;;  %v501_v26 = vld [vmem:[%s7871_s13 + $0x9a0] sm:$0xff]  ;;  %v503_v27 = vld [vmem:[%s7871_s13 + $0x9a8] sm:$0xff]  ;;  %500 = vst [vmem:[%s7876_s14 + $0x4c8] sm:$0xff] %v499_v25 }
  0x6a   : > { %502 = vst [vmem:[%s7876_s14 + $0x4d0] sm:$0xff] %v501_v26  ;;  %504 = vst [vmem:[%s7876_s14 + $0x4d8] sm:$0xff] %v503_v27  ;;  %v505_v28 = vld [vmem:[%s7871_s13 + $0x9c0] sm:$0xff]  ;;  %v507_v29 = vld [vmem:[%s7871_s13 + $0x9c8] sm:$0xff] }
  0x6b   : > { %v509_v30 = vld [vmem:[%s7871_s13 + $0x9e0] sm:$0xff]  ;;  %506 = vst [vmem:[%s7876_s14 + $0x4e0] sm:$0xff] %v505_v28  ;;  %508 = vst [vmem:[%s7876_s14 + $0x4e8] sm:$0xff] %v507_v29  ;;  %v511_v31 = vld [vmem:[%s7871_s13 + $0x9e8] sm:$0xff] }
  0x6c   : > { %510 = vst [vmem:[%s7876_s14 + $0x4f0] sm:$0xff] %v509_v30  ;;  %v513_v32 = vld [vmem:[%s7871_s13 + $0xa00] sm:$0xff]  ;;  %v515_v33 = vld [vmem:[%s7871_s13 + $0xa08] sm:$0xff]  ;;  %512 = vst [vmem:[%s7876_s14 + $0x4f8] sm:$0xff] %v511_v31 }
  0x6d   : > { %514 = vst [vmem:[%s7876_s14 + $0x500] sm:$0xff] %v513_v32  ;;  %516 = vst [vmem:[%s7876_s14 + $0x508] sm:$0xff] %v515_v33  ;;  %v517_v34 = vld [vmem:[%s7871_s13 + $0xa20] sm:$0xff]  ;;  %v519_v35 = vld [vmem:[%s7871_s13 + $0xa28] sm:$0xff] }
  0x6e   : > { %v521_v36 = vld [vmem:[%s7871_s13 + $0xa40] sm:$0xff]  ;;  %518 = vst [vmem:[%s7876_s14 + $0x510] sm:$0xff] %v517_v34  ;;  %520 = vst [vmem:[%s7876_s14 + $0x518] sm:$0xff] %v519_v35  ;;  %v523_v37 = vld [vmem:[%s7871_s13 + $0xa48] sm:$0xff] }
  0x6f   : > { %522 = vst [vmem:[%s7876_s14 + $0x520] sm:$0xff] %v521_v36  ;;  %v525_v38 = vld [vmem:[%s7871_s13 + $0xa60] sm:$0xff]  ;;  %v527_v39 = vld [vmem:[%s7871_s13 + $0xa68] sm:$0xff]  ;;  %524 = vst [vmem:[%s7876_s14 + $0x528] sm:$0xff] %v523_v37 }
  0x70   : > { %526 = vst [vmem:[%s7876_s14 + $0x530] sm:$0xff] %v525_v38  ;;  %528 = vst [vmem:[%s7876_s14 + $0x538] sm:$0xff] %v527_v39  ;;  %v529_v40 = vld [vmem:[%s7871_s13 + $0xa80] sm:$0xff]  ;;  %v531_v41 = vld [vmem:[%s7871_s13 + $0xa88] sm:$0xff] }
  0x71   : > { %v533_v42 = vld [vmem:[%s7871_s13 + $0xaa0] sm:$0xff]  ;;  %530 = vst [vmem:[%s7876_s14 + $0x540] sm:$0xff] %v529_v40  ;;  %532 = vst [vmem:[%s7876_s14 + $0x548] sm:$0xff] %v531_v41  ;;  %v535_v43 = vld [vmem:[%s7871_s13 + $0xaa8] sm:$0xff] }
  0x72   : > { %534 = vst [vmem:[%s7876_s14 + $0x550] sm:$0xff] %v533_v42  ;;  %v537_v44 = vld [vmem:[%s7871_s13 + $0xac0] sm:$0xff]  ;;  %v539_v45 = vld [vmem:[%s7871_s13 + $0xac8] sm:$0xff]  ;;  %536 = vst [vmem:[%s7876_s14 + $0x558] sm:$0xff] %v535_v43 }
  0x73   : > { %538 = vst [vmem:[%s7876_s14 + $0x560] sm:$0xff] %v537_v44  ;;  %540 = vst [vmem:[%s7876_s14 + $0x568] sm:$0xff] %v539_v45  ;;  %v541_v46 = vld [vmem:[%s7871_s13 + $0xae0] sm:$0xff]  ;;  %v543_v47 = vld [vmem:[%s7871_s13 + $0xae8] sm:$0xff] }
  0x74   : > { %v545_v48 = vld [vmem:[%s7871_s13 + $0xb00] sm:$0xff]  ;;  %542 = vst [vmem:[%s7876_s14 + $0x570] sm:$0xff] %v541_v46  ;;  %544 = vst [vmem:[%s7876_s14 + $0x578] sm:$0xff] %v543_v47  ;;  %v547_v49 = vld [vmem:[%s7871_s13 + $0xb08] sm:$0xff] }
  0x75   : > { %546 = vst [vmem:[%s7876_s14 + $0x580] sm:$0xff] %v545_v48  ;;  %v549_v50 = vld [vmem:[%s7871_s13 + $0xb20] sm:$0xff]  ;;  %v551_v51 = vld [vmem:[%s7871_s13 + $0xb28] sm:$0xff]  ;;  %548 = vst [vmem:[%s7876_s14 + $0x588] sm:$0xff] %v547_v49 }
  0x76   : > { %550 = vst [vmem:[%s7876_s14 + $0x590] sm:$0xff] %v549_v50  ;;  %552 = vst [vmem:[%s7876_s14 + $0x598] sm:$0xff] %v551_v51  ;;  %v553_v52 = vld [vmem:[%s7871_s13 + $0xb40] sm:$0xff]  ;;  %v555_v53 = vld [vmem:[%s7871_s13 + $0xb48] sm:$0xff] }
  0x77   : > { %v557_v54 = vld [vmem:[%s7871_s13 + $0xb60] sm:$0xff]  ;;  %554 = vst [vmem:[%s7876_s14 + $0x5a0] sm:$0xff] %v553_v52  ;;  %556 = vst [vmem:[%s7876_s14 + $0x5a8] sm:$0xff] %v555_v53  ;;  %v559_v55 = vld [vmem:[%s7871_s13 + $0xb68] sm:$0xff] }
  0x78   : > { %558 = vst [vmem:[%s7876_s14 + $0x5b0] sm:$0xff] %v557_v54  ;;  %v561_v56 = vld [vmem:[%s7871_s13 + $0xb80] sm:$0xff]  ;;  %v563_v57 = vld [vmem:[%s7871_s13 + $0xb88] sm:$0xff]  ;;  %560 = vst [vmem:[%s7876_s14 + $0x5b8] sm:$0xff] %v559_v55 }
  0x79   : > { %562 = vst [vmem:[%s7876_s14 + $0x5c0] sm:$0xff] %v561_v56  ;;  %564 = vst [vmem:[%s7876_s14 + $0x5c8] sm:$0xff] %v563_v57  ;;  %v565_v58 = vld [vmem:[%s7871_s13 + $0xba0] sm:$0xff]  ;;  %v567_v59 = vld [vmem:[%s7871_s13 + $0xba8] sm:$0xff] }
  0x7a   : > { %v569_v60 = vld [vmem:[%s7871_s13 + $0xbc0] sm:$0xff]  ;;  %566 = vst [vmem:[%s7876_s14 + $0x5d0] sm:$0xff] %v565_v58  ;;  %568 = vst [vmem:[%s7876_s14 + $0x5d8] sm:$0xff] %v567_v59  ;;  %v571_v61 = vld [vmem:[%s7871_s13 + $0xbc8] sm:$0xff] }
  0x7b   : > { %570 = vst [vmem:[%s7876_s14 + $0x5e0] sm:$0xff] %v569_v60  ;;  %v573_v62 = vld [vmem:[%s7871_s13 + $0xbe0] sm:$0xff]  ;;  %v575_v63 = vld [vmem:[%s7871_s13 + $0xbe8] sm:$0xff]  ;;  %572 = vst [vmem:[%s7876_s14 + $0x5e8] sm:$0xff] %v571_v61 }
  0x7c   : > { %574 = vst [vmem:[%s7876_s14 + $0x5f0] sm:$0xff] %v573_v62  ;;  %576 = vst [vmem:[%s7876_s14 + $0x5f8] sm:$0xff] %v575_v63  ;;  %v577_v0 = vld [vmem:[%s7871_s13 + $0xc00] sm:$0xff]  ;;  %v579_v1 = vld [vmem:[%s7871_s13 + $0xc08] sm:$0xff] }
  0x7d   : > { %v581_v2 = vld [vmem:[%s7871_s13 + $0xc20] sm:$0xff]  ;;  %578 = vst [vmem:[%s7876_s14 + $0x600] sm:$0xff] %v577_v0  ;;  %580 = vst [vmem:[%s7876_s14 + $0x608] sm:$0xff] %v579_v1  ;;  %v583_v3 = vld [vmem:[%s7871_s13 + $0xc28] sm:$0xff] }
  0x7e   : > { %582 = vst [vmem:[%s7876_s14 + $0x610] sm:$0xff] %v581_v2  ;;  %v585_v4 = vld [vmem:[%s7871_s13 + $0xc40] sm:$0xff]  ;;  %v587_v5 = vld [vmem:[%s7871_s13 + $0xc48] sm:$0xff]  ;;  %584 = vst [vmem:[%s7876_s14 + $0x618] sm:$0xff] %v583_v3 }
  0x7f   : > { %586 = vst [vmem:[%s7876_s14 + $0x620] sm:$0xff] %v585_v4  ;;  %588 = vst [vmem:[%s7876_s14 + $0x628] sm:$0xff] %v587_v5  ;;  %v589_v6 = vld [vmem:[%s7871_s13 + $0xc60] sm:$0xff]  ;;  %v591_v7 = vld [vmem:[%s7871_s13 + $0xc68] sm:$0xff] }
  0x80   : > { %v593_v8 = vld [vmem:[%s7871_s13 + $0xc80] sm:$0xff]  ;;  %590 = vst [vmem:[%s7876_s14 + $0x630] sm:$0xff] %v589_v6  ;;  %592 = vst [vmem:[%s7876_s14 + $0x638] sm:$0xff] %v591_v7  ;;  %v595_v9 = vld [vmem:[%s7871_s13 + $0xc88] sm:$0xff] }
  0x81   : > { %594 = vst [vmem:[%s7876_s14 + $0x640] sm:$0xff] %v593_v8  ;;  %v597_v10 = vld [vmem:[%s7871_s13 + $0xca0] sm:$0xff]  ;;  %v599_v11 = vld [vmem:[%s7871_s13 + $0xca8] sm:$0xff]  ;;  %596 = vst [vmem:[%s7876_s14 + $0x648] sm:$0xff] %v595_v9 }
  0x82   : > { %598 = vst [vmem:[%s7876_s14 + $0x650] sm:$0xff] %v597_v10  ;;  %600 = vst [vmem:[%s7876_s14 + $0x658] sm:$0xff] %v599_v11  ;;  %v601_v12 = vld [vmem:[%s7871_s13 + $0xcc0] sm:$0xff]  ;;  %v603_v13 = vld [vmem:[%s7871_s13 + $0xcc8] sm:$0xff] }
  0x83   : > { %v605_v14 = vld [vmem:[%s7871_s13 + $0xce0] sm:$0xff]  ;;  %602 = vst [vmem:[%s7876_s14 + $0x660] sm:$0xff] %v601_v12  ;;  %604 = vst [vmem:[%s7876_s14 + $0x668] sm:$0xff] %v603_v13  ;;  %v607_v15 = vld [vmem:[%s7871_s13 + $0xce8] sm:$0xff] }
  0x84   : > { %606 = vst [vmem:[%s7876_s14 + $0x670] sm:$0xff] %v605_v14  ;;  %v609_v16 = vld [vmem:[%s7871_s13 + $0xd00] sm:$0xff]  ;;  %v611_v17 = vld [vmem:[%s7871_s13 + $0xd08] sm:$0xff]  ;;  %608 = vst [vmem:[%s7876_s14 + $0x678] sm:$0xff] %v607_v15 }
  0x85   : > { %610 = vst [vmem:[%s7876_s14 + $0x680] sm:$0xff] %v609_v16  ;;  %612 = vst [vmem:[%s7876_s14 + $0x688] sm:$0xff] %v611_v17  ;;  %v613_v18 = vld [vmem:[%s7871_s13 + $0xd20] sm:$0xff]  ;;  %v615_v19 = vld [vmem:[%s7871_s13 + $0xd28] sm:$0xff] }
  0x86   : > { %v617_v20 = vld [vmem:[%s7871_s13 + $0xd40] sm:$0xff]  ;;  %614 = vst [vmem:[%s7876_s14 + $0x690] sm:$0xff] %v613_v18  ;;  %616 = vst [vmem:[%s7876_s14 + $0x698] sm:$0xff] %v615_v19  ;;  %v619_v21 = vld [vmem:[%s7871_s13 + $0xd48] sm:$0xff] }
  0x87   : > { %618 = vst [vmem:[%s7876_s14 + $0x6a0] sm:$0xff] %v617_v20  ;;  %v621_v22 = vld [vmem:[%s7871_s13 + $0xd60] sm:$0xff]  ;;  %v623_v23 = vld [vmem:[%s7871_s13 + $0xd68] sm:$0xff]  ;;  %620 = vst [vmem:[%s7876_s14 + $0x6a8] sm:$0xff] %v619_v21 }
  0x88   : > { %622 = vst [vmem:[%s7876_s14 + $0x6b0] sm:$0xff] %v621_v22  ;;  %624 = vst [vmem:[%s7876_s14 + $0x6b8] sm:$0xff] %v623_v23  ;;  %v625_v24 = vld [vmem:[%s7871_s13 + $0xd80] sm:$0xff]  ;;  %v627_v25 = vld [vmem:[%s7871_s13 + $0xd88] sm:$0xff] }
  0x89   : > { %v629_v26 = vld [vmem:[%s7871_s13 + $0xda0] sm:$0xff]  ;;  %626 = vst [vmem:[%s7876_s14 + $0x6c0] sm:$0xff] %v625_v24  ;;  %628 = vst [vmem:[%s7876_s14 + $0x6c8] sm:$0xff] %v627_v25  ;;  %v631_v27 = vld [vmem:[%s7871_s13 + $0xda8] sm:$0xff] }
  0x8a   : > { %630 = vst [vmem:[%s7876_s14 + $0x6d0] sm:$0xff] %v629_v26  ;;  %v633_v28 = vld [vmem:[%s7871_s13 + $0xdc0] sm:$0xff]  ;;  %v635_v29 = vld [vmem:[%s7871_s13 + $0xdc8] sm:$0xff]  ;;  %632 = vst [vmem:[%s7876_s14 + $0x6d8] sm:$0xff] %v631_v27 }
  0x8b   : > { %634 = vst [vmem:[%s7876_s14 + $0x6e0] sm:$0xff] %v633_v28  ;;  %636 = vst [vmem:[%s7876_s14 + $0x6e8] sm:$0xff] %v635_v29  ;;  %v637_v30 = vld [vmem:[%s7871_s13 + $0xde0] sm:$0xff]  ;;  %v639_v31 = vld [vmem:[%s7871_s13 + $0xde8] sm:$0xff] }
  0x8c   : > { %v641_v32 = vld [vmem:[%s7871_s13 + $0xe00] sm:$0xff]  ;;  %638 = vst [vmem:[%s7876_s14 + $0x6f0] sm:$0xff] %v637_v30  ;;  %640 = vst [vmem:[%s7876_s14 + $0x6f8] sm:$0xff] %v639_v31  ;;  %v643_v33 = vld [vmem:[%s7871_s13 + $0xe08] sm:$0xff] }
  0x8d   : > { %642 = vst [vmem:[%s7876_s14 + $0x700] sm:$0xff] %v641_v32  ;;  %v645_v34 = vld [vmem:[%s7871_s13 + $0xe20] sm:$0xff]  ;;  %v647_v35 = vld [vmem:[%s7871_s13 + $0xe28] sm:$0xff]  ;;  %644 = vst [vmem:[%s7876_s14 + $0x708] sm:$0xff] %v643_v33 }
  0x8e   : > { %646 = vst [vmem:[%s7876_s14 + $0x710] sm:$0xff] %v645_v34  ;;  %648 = vst [vmem:[%s7876_s14 + $0x718] sm:$0xff] %v647_v35  ;;  %v649_v36 = vld [vmem:[%s7871_s13 + $0xe40] sm:$0xff]  ;;  %v651_v37 = vld [vmem:[%s7871_s13 + $0xe48] sm:$0xff] }
  0x8f   : > { %v653_v38 = vld [vmem:[%s7871_s13 + $0xe60] sm:$0xff]  ;;  %650 = vst [vmem:[%s7876_s14 + $0x720] sm:$0xff] %v649_v36  ;;  %652 = vst [vmem:[%s7876_s14 + $0x728] sm:$0xff] %v651_v37  ;;  %v655_v39 = vld [vmem:[%s7871_s13 + $0xe68] sm:$0xff] }
  0x90   : > { %654 = vst [vmem:[%s7876_s14 + $0x730] sm:$0xff] %v653_v38  ;;  %v657_v40 = vld [vmem:[%s7871_s13 + $0xe80] sm:$0xff]  ;;  %v659_v41 = vld [vmem:[%s7871_s13 + $0xe88] sm:$0xff]  ;;  %656 = vst [vmem:[%s7876_s14 + $0x738] sm:$0xff] %v655_v39 }
  0x91   : > { %658 = vst [vmem:[%s7876_s14 + $0x740] sm:$0xff] %v657_v40  ;;  %660 = vst [vmem:[%s7876_s14 + $0x748] sm:$0xff] %v659_v41  ;;  %v661_v42 = vld [vmem:[%s7871_s13 + $0xea0] sm:$0xff]  ;;  %v663_v43 = vld [vmem:[%s7871_s13 + $0xea8] sm:$0xff] }
  0x92   : > { %v665_v44 = vld [vmem:[%s7871_s13 + $0xec0] sm:$0xff]  ;;  %662 = vst [vmem:[%s7876_s14 + $0x750] sm:$0xff] %v661_v42  ;;  %664 = vst [vmem:[%s7876_s14 + $0x758] sm:$0xff] %v663_v43  ;;  %v667_v45 = vld [vmem:[%s7871_s13 + $0xec8] sm:$0xff] }
  0x93   : > { %666 = vst [vmem:[%s7876_s14 + $0x760] sm:$0xff] %v665_v44  ;;  %v669_v46 = vld [vmem:[%s7871_s13 + $0xee0] sm:$0xff]  ;;  %v671_v47 = vld [vmem:[%s7871_s13 + $0xee8] sm:$0xff]  ;;  %668 = vst [vmem:[%s7876_s14 + $0x768] sm:$0xff] %v667_v45 }
  0x94   : > { %670 = vst [vmem:[%s7876_s14 + $0x770] sm:$0xff] %v669_v46  ;;  %672 = vst [vmem:[%s7876_s14 + $0x778] sm:$0xff] %v671_v47 }
  0x95 PF: > { %p6149_p9 = scmp.ge.s32.totalorder %s7778_s21, 1  ;;  %p677_p10 = scmp.lt.s32.totalorder %s7778_s21, 5 }
  0x97   : > { %p678_p11 = pnand %p6149_p9, %p677_p10 }
  0x98   : > { %s684_s24 = sand.u32 (!%p678_p11), 1, %s7754_s15   ;;  %v711_v48 = vld [vmem:[%s9477_s1] sm:$0xff] (!%p678_p11)  ;;  %vm3095_vm0 = vcmask (!%p678_p11), 523264  }
  0x99   : > { %681 = sbr.rel (%p678_p11) target bundleno = 1312 (0x520), region = 55  ;;  %v715_v49 = vld [vmem:[%s9477_s1 + $0x20] sm:$0xff] (!%p678_p11) }
  0x9a   : > { %s7248_s5 = smul.u32 (!%p678_p11), 1920, %s684_s24  ;;  %v8366_v50 = vcombine.low (!%p678_p11), %v711_v48, %v715_v49  ;;  %v6151_v51 = vcombine.high (!%p678_p11), %v711_v48, %v715_v49 }
  0x9b   : > { %s7249_s25 = smul.u32 (!%p678_p11), 576, %s684_s24 }
  0x9c   : > { %3176 = vmatprep.mubr.bf16.mxu0 (!%p678_p11), %v6151_v51  ;;  %3948 = vmatprep.mubr.bf16.mxu1 (!%p678_p11), %v6151_v51  ;;  %s8368_s6 = scalar_lea.vmem (!%p678_p11), [#allocation2], %s7248_s5 }
  0x9d   : > { %v7310_v52 = vld [vmem:[%s8368_s6 + $0x4] ss:$16 sps:$4 sm:$0xff] (!%p678_p11)   ;;  %v7312_v53 = vld [vmem:[%s8368_s6 + $0xc] ss:$16 sps:$4 sm:$0xff] (!%p678_p11)   ;;  %v7314_v54 = vld [vmem:[%s8368_s6] ss:$16 sps:$4 sm:$0xff] (!%p678_p11)  }
  0x9e   : > { %3144 = vmatprep.subr.bf16.mxu0 (!%p678_p11), %v7310_v52  ;;  %v7315_v55 = vld [vmem:[%s8368_s6 + $0x8] ss:$16 sps:$4 sm:$0xff] (!%p678_p11)   ;;  %3916 = vmatprep.subr.bf16.mxu1 (!%p678_p11), %v7312_v53  ;;  %v7316_v56 = vld [vmem:[%s8368_s6 + $0x24] ss:$16 sps:$4 sm:$0xff] (!%p678_p11)   ;;  %v7318_v57 = vld [vmem:[%s8368_s6 + $0x2c] ss:$16 sps:$4 sm:$0xff] (!%p678_p11)  }
  0x9f   : > { %3145 = vmatpush1.bf16.msra.mxu0 (!%p678_p11), %v7314_v54  ;;  %3917 = vmatpush1.bf16.msra.mxu1 (!%p678_p11), %v7315_v55  ;;  %v7320_v58 = vld [vmem:[%s8368_s6 + $0x20] ss:$16 sps:$4 sm:$0xff] (!%p678_p11)   ;;  %v7321_v59 = vld [vmem:[%s8368_s6 + $0x28] ss:$16 sps:$4 sm:$0xff] (!%p678_p11)   ;;  %v7322_v60 = vld [vmem:[%s8368_s6 + $0x44] ss:$16 sps:$4 sm:$0xff] (!%p678_p11)  }
  0xa0   : > { %3146 = vmatprep.subr.bf16.mxu0 %v7316_v56  ;;  %3918 = vmatprep.subr.bf16.mxu1 %v7318_v57  ;;  %v7324_v61 = vld [vmem:[%s8368_s6 + $0x4c] ss:$16 sps:$4 sm:$0xff]   ;;  %v7326_v62 = vld [vmem:[%s8368_s6 + $0x40] ss:$16 sps:$4 sm:$0xff]   ;;  %v7327_v63 = vld [vmem:[%s8368_s6 + $0x48] ss:$16 sps:$4 sm:$0xff]  }
  0xa1   : > { %v7328_v0 = vld [vmem:[%s8368_s6 + $0x64] ss:$16 sps:$4 sm:$0xff]   ;;  %v7330_v1 = vld [vmem:[%s8368_s6 + $0x6c] ss:$16 sps:$4 sm:$0xff]   ;;  %v7332_v2 = vld [vmem:[%s8368_s6 + $0x60] ss:$16 sps:$4 sm:$0xff]  }
  0xa2   : > { %v7333_v3 = vld [vmem:[%s8368_s6 + $0x68] ss:$16 sps:$4 sm:$0xff]   ;;  %v7334_v4 = vld [vmem:[%s8368_s6 + $0x84] ss:$16 sps:$4 sm:$0xff]   ;;  %v7336_v5 = vld [vmem:[%s8368_s6 + $0x8c] ss:$16 sps:$4 sm:$0xff]  }
  0xa3   : > { %3147 = vmatpush1.bf16.msra.mxu0 %v7320_v58  ;;  %3919 = vmatpush1.bf16.msra.mxu1 %v7321_v59  ;;  %v7338_v6 = vld [vmem:[%s8368_s6 + $0x80] ss:$16 sps:$4 sm:$0xff]   ;;  %v7339_v7 = vld [vmem:[%s8368_s6 + $0x88] ss:$16 sps:$4 sm:$0xff]   ;;  %v7340_v8 = vld [vmem:[%s8368_s6 + $0xa4] ss:$16 sps:$4 sm:$0xff]  }
  0xa4   : > { %3148 = vmatprep.subr.bf16.mxu0 %v7322_v60  ;;  %3920 = vmatprep.subr.bf16.mxu1 %v7324_v61  ;;  %v7342_v9 = vld [vmem:[%s8368_s6 + $0xac] ss:$16 sps:$4 sm:$0xff]   ;;  %v7344_v10 = vld [vmem:[%s8368_s6 + $0xa0] ss:$16 sps:$4 sm:$0xff]   ;;  %v7345_v11 = vld [vmem:[%s8368_s6 + $0xa8] ss:$16 sps:$4 sm:$0xff]  }
  0xa5   : > { %v7346_v12 = vld [vmem:[%s8368_s6 + $0xc4] ss:$16 sps:$4 sm:$0xff]   ;;  %v7348_v13 = vld [vmem:[%s8368_s6 + $0xcc] ss:$16 sps:$4 sm:$0xff]   ;;  %v7350_v14 = vld [vmem:[%s8368_s6 + $0xc0] ss:$16 sps:$4 sm:$0xff]  }
  0xa6   : > { %v7351_v15 = vld [vmem:[%s8368_s6 + $0xc8] ss:$16 sps:$4 sm:$0xff]   ;;  %v7352_v16 = vld [vmem:[%s8368_s6 + $0xe4] ss:$16 sps:$4 sm:$0xff]   ;;  %v7354_v17 = vld [vmem:[%s8368_s6 + $0xec] ss:$16 sps:$4 sm:$0xff]  }
  0xa7   : > { %3149 = vmatpush1.bf16.msra.mxu0 %v7326_v62  ;;  %3921 = vmatpush1.bf16.msra.mxu1 %v7327_v63  ;;  %v7356_v18 = vld [vmem:[%s8368_s6 + $0xe0] ss:$16 sps:$4 sm:$0xff]   ;;  %v7357_v19 = vld [vmem:[%s8368_s6 + $0xe8] ss:$16 sps:$4 sm:$0xff]   ;;  %v7358_v20 = vld [vmem:[%s8368_s6 + $0x104] ss:$16 sps:$4 sm:$0xff]  }
  0xa8   : > { %3150 = vmatprep.subr.bf16.mxu0 %v7328_v0  ;;  %3922 = vmatprep.subr.bf16.mxu1 %v7330_v1  ;;  %v7360_v21 = vld [vmem:[%s8368_s6 + $0x10c] ss:$16 sps:$4 sm:$0xff]   ;;  %v7362_v22 = vld [vmem:[%s8368_s6 + $0x100] ss:$16 sps:$4 sm:$0xff]   ;;  %v7363_v23 = vld [vmem:[%s8368_s6 + $0x108] ss:$16 sps:$4 sm:$0xff]  }
  0xa9   : > { %v7364_v24 = vld [vmem:[%s8368_s6 + $0x124] ss:$16 sps:$4 sm:$0xff]   ;;  %v7366_v25 = vld [vmem:[%s8368_s6 + $0x12c] ss:$16 sps:$4 sm:$0xff]   ;;  %v7368_v26 = vld [vmem:[%s8368_s6 + $0x120] ss:$16 sps:$4 sm:$0xff]  }
  0xaa   : > { %v7369_v27 = vld [vmem:[%s8368_s6 + $0x128] ss:$16 sps:$4 sm:$0xff]   ;;  %v7370_v28 = vld [vmem:[%s8368_s6 + $0x144] ss:$16 sps:$4 sm:$0xff]   ;;  %v7372_v29 = vld [vmem:[%s8368_s6 + $0x14c] ss:$16 sps:$4 sm:$0xff]  }
  0xab   : > { %3151 = vmatpush1.bf16.msra.mxu0 %v7332_v2  ;;  %3923 = vmatpush1.bf16.msra.mxu1 %v7333_v3  ;;  %v7374_v30 = vld [vmem:[%s8368_s6 + $0x140] ss:$16 sps:$4 sm:$0xff]   ;;  %v7375_v31 = vld [vmem:[%s8368_s6 + $0x148] ss:$16 sps:$4 sm:$0xff]   ;;  %v7376_v32 = vld [vmem:[%s8368_s6 + $0x164] ss:$16 sps:$4 sm:$0xff]  }
  0xac   : > { %3152 = vmatprep.subr.bf16.mxu0 %v7334_v4  ;;  %3924 = vmatprep.subr.bf16.mxu1 %v7336_v5  ;;  %v7378_v33 = vld [vmem:[%s8368_s6 + $0x16c] ss:$16 sps:$4 sm:$0xff]   ;;  %v7380_v34 = vld [vmem:[%s8368_s6 + $0x160] ss:$16 sps:$4 sm:$0xff]   ;;  %v7381_v35 = vld [vmem:[%s8368_s6 + $0x168] ss:$16 sps:$4 sm:$0xff]  }
  0xad   : > { %v7382_v36 = vld [vmem:[%s8368_s6 + $0x184] ss:$16 sps:$4 sm:$0xff]   ;;  %v7384_v37 = vld [vmem:[%s8368_s6 + $0x18c] ss:$16 sps:$4 sm:$0xff]   ;;  %v7386_v38 = vld [vmem:[%s8368_s6 + $0x180] ss:$16 sps:$4 sm:$0xff]  }
  0xae   : > { %v7387_v39 = vld [vmem:[%s8368_s6 + $0x188] ss:$16 sps:$4 sm:$0xff]   ;;  %v7388_v40 = vld [vmem:[%s8368_s6 + $0x1a4] ss:$16 sps:$4 sm:$0xff]   ;;  %v7390_v41 = vld [vmem:[%s8368_s6 + $0x1ac] ss:$16 sps:$4 sm:$0xff]  }
  0xaf   : > { %3153 = vmatpush1.bf16.msra.mxu0 %v7338_v6  ;;  %3925 = vmatpush1.bf16.msra.mxu1 %v7339_v7  ;;  %v7392_v42 = vld [vmem:[%s8368_s6 + $0x1a0] ss:$16 sps:$4 sm:$0xff]   ;;  %v7393_v43 = vld [vmem:[%s8368_s6 + $0x1a8] ss:$16 sps:$4 sm:$0xff]   ;;  %v7394_v44 = vld [vmem:[%s8368_s6 + $0x1c4] ss:$16 sps:$4 sm:$0xff]  }
  0xb0   : > { %3154 = vmatprep.subr.bf16.mxu0 %v7340_v8  ;;  %3926 = vmatprep.subr.bf16.mxu1 %v7342_v9  ;;  %v7396_v45 = vld [vmem:[%s8368_s6 + $0x1cc] ss:$16 sps:$4 sm:$0xff]   ;;  %v7398_v46 = vld [vmem:[%s8368_s6 + $0x1c0] ss:$16 sps:$4 sm:$0xff]   ;;  %v7399_v47 = vld [vmem:[%s8368_s6 + $0x1c8] ss:$16 sps:$4 sm:$0xff]  }
  0xb1   : > { %v7400_v48 = vld [vmem:[%s8368_s6 + $0x1e4] ss:$16 sps:$4 sm:$0xff]   ;;  %v7402_v49 = vld [vmem:[%s8368_s6 + $0x1ec] ss:$16 sps:$4 sm:$0xff]   ;;  %v7404_v51 = vld [vmem:[%s8368_s6 + $0x1e0] ss:$16 sps:$4 sm:$0xff]  }
  0xb2   : > { %v7405_v52 = vld [vmem:[%s8368_s6 + $0x1e8] ss:$16 sps:$4 sm:$0xff]   ;;  %v7408_v53 = vld [vmem:[%s8368_s6 + $0x204] ss:$16 sps:$4 sm:$0xff]   ;;  %v7411_v54 = vld [vmem:[%s8368_s6 + $0x20c] ss:$16 sps:$4 sm:$0xff]  }
  0xb3   : > { %3155 = vmatpush1.bf16.msra.mxu0 %v7344_v10  ;;  %3927 = vmatpush1.bf16.msra.mxu1 %v7345_v11  ;;  %v719_v55 = vld [vmem:[%s9477_s1 + $0x40] sm:$0xff]  ;;  %v7409_v58 = vld [vmem:[%s8368_s6 + $0x208] ss:$16 sps:$4 sm:$0xff]   ;;  %v7417_v61 = vld [vmem:[%s8368_s6 + $0x22c] ss:$16 sps:$4 sm:$0xff]   ;;  %s9228_s27 = scalar_lea.vmem [#allocation3], %s7249_s25 }
  0xb4   : > { %3156 = vmatprep.subr.bf16.mxu0 %v7346_v12  ;;  %3928 = vmatprep.subr.bf16.mxu1 %v7348_v13  ;;  %v723_v56 = vld [vmem:[%s9477_s1 + $0x60] sm:$0xff]  ;;  %v7415_v1 = vld [vmem:[%s8368_s6 + $0x228] ss:$16 sps:$4 sm:$0xff]   ;;  %v7429_v8 = vld [vmem:[%s8368_s6 + $0x26c] ss:$16 sps:$4 sm:$0xff]   ;;  %s6658_s15 = sshll.u32 (%p7854_p6), %s7762_s17, 2 }
  0xb5   : > { %v7406_v57 = vld [vmem:[%s8368_s6 + $0x200] ss:$16 sps:$4 sm:$0xff]   ;;  %v6159_v59 = vcombine.high %v719_v55, %v723_v56  ;;  %v7414_v60 = vld [vmem:[%s8368_s6 + $0x224] ss:$16 sps:$4 sm:$0xff]   ;;  %v6158_v3 = vcombine.low %v719_v55, %v723_v56  ;;  %v7421_v6 = vld [vmem:[%s8368_s6 + $0x248] ss:$16 sps:$4 sm:$0xff]  }
  0xb6   : > { %v727_v62 = vld [vmem:[%s9477_s1 + $0x80] sm:$0xff]  ;;  %v7427_v12 = vld [vmem:[%s8368_s6 + $0x268] ss:$16 sps:$4 sm:$0xff]   ;;  %s7250_s24 = smul.u32 (%p7854_p6), 288, %s7766_s18 }
  0xb7   : > { %3157 = vmatpush1.bf16.msra.mxu0 %v7350_v14  ;;  %3929 = vmatpush1.bf16.msra.mxu1 %v7351_v15  ;;  %v731_v63 = vld [vmem:[%s9477_s1 + $0xa0] sm:$0xff]  ;;  %v7435_v14 = vld [vmem:[%s8368_s6 + $0x28c] ss:$16 sps:$4 sm:$0xff]   ;;  %v7469_v55 = vld [vmem:[%s8368_s6 + $0x348] ss:$16 sps:$4 sm:$0xff]  }
  0xb8   : > { %3158 = vmatprep.subr.bf16.mxu0 %v7352_v16  ;;  %3930 = vmatprep.subr.bf16.mxu1 %v7354_v17  ;;  %v7412_v0 = vld [vmem:[%s8368_s6 + $0x220] ss:$16 sps:$4 sm:$0xff]   ;;  %v7420_v2 = vld [vmem:[%s8368_s6 + $0x244] ss:$16 sps:$4 sm:$0xff]   ;;  %v6167_v4 = vcombine.high %v727_v62, %v731_v63  ;;  %v6166_v15 = vcombine.low %v727_v62, %v731_v63  ;;  %v7483_v63 = vld [vmem:[%s8368_s6 + $0x38c] ss:$16 sps:$4 sm:$0xff]   ;;  %s5907_s26 = sadd.s32 (%p7854_p6), %s7250_s24, %s6658_s15 }
  0xb9   : > { %v7418_v5 = vld [vmem:[%s8368_s6 + $0x240] ss:$16 sps:$4 sm:$0xff]   ;;  %v7426_v7 = vld [vmem:[%s8368_s6 + $0x264] ss:$16 sps:$4 sm:$0xff]   ;;  %s6659_s28 = sshll.u32 (%p7854_p6), %s5907_s26, 2 }
  0xba   : > { %v735_v9 = vld [vmem:[%s9477_s1 + $0xc0] sm:$0xff]  ;;  %s9321_s18 = scalar_lea.vmem (%p7854_p6), %s9480_s4, %s6659_s28 }
  0xbb   : > { %3159 = vmatpush1.bf16.msra.mxu0 %v7356_v18  ;;  %3931 = vmatpush1.bf16.msra.mxu1 %v7357_v19  ;;  %v739_v10 = vld [vmem:[%s9477_s1 + $0xe0] sm:$0xff]  ;;  %v7433_v18 = vld [vmem:[%s8368_s6 + $0x288] ss:$16 sps:$4 sm:$0xff]  }
  0xbc   : > { %3160 = vmatprep.subr.bf16.mxu0 %v7358_v20  ;;  %3932 = vmatprep.subr.bf16.mxu1 %v7360_v21  ;;  %v7424_v11 = vld [vmem:[%s8368_s6 + $0x260] ss:$16 sps:$4 sm:$0xff]   ;;  %v7432_v13 = vld [vmem:[%s8368_s6 + $0x284] ss:$16 sps:$4 sm:$0xff]   ;;  %v6175_v16 = vcombine.high %v735_v9, %v739_v10  ;;  %v7441_v20 = vld [vmem:[%s8368_s6 + $0x2ac] ss:$16 sps:$4 sm:$0xff]  }
  0xbd   : > { %v7430_v17 = vld [vmem:[%s8368_s6 + $0x280] ss:$16 sps:$4 sm:$0xff]   ;;  %v7438_v19 = vld [vmem:[%s8368_s6 + $0x2a4] ss:$16 sps:$4 sm:$0xff]  }
  0xbe   : > { %v743_v21 = vld [vmem:[%s9477_s1 + $0x100] sm:$0xff] }
  0xbf   : > { %3161 = vmatpush1.bf16.msra.mxu0 %v7362_v22  ;;  %3933 = vmatpush1.bf16.msra.mxu1 %v7363_v23  ;;  %v747_v22 = vld [vmem:[%s9477_s1 + $0x120] sm:$0xff] }
  0xc0   : > { %3162 = vmatprep.subr.bf16.mxu0 %v7364_v24  ;;  %3934 = vmatprep.subr.bf16.mxu1 %v7366_v25  ;;  %v7436_v23 = vld [vmem:[%s8368_s6 + $0x2a0] ss:$16 sps:$4 sm:$0xff]   ;;  %v7439_v24 = vld [vmem:[%s8368_s6 + $0x2a8] ss:$16 sps:$4 sm:$0xff]   ;;  %v7444_v25 = vld [vmem:[%s8368_s6 + $0x2c4] ss:$16 sps:$4 sm:$0xff]  }
  0xc1   : > { %v7474_v56 = vld [vmem:[%s8368_s6 + $0x364] ss:$16 sps:$4 sm:$0xff]  }
  0xc2   : > { %v7480_v62 = vld [vmem:[%s8368_s6 + $0x384] ss:$16 sps:$4 sm:$0xff]  }
  0xc3   : > { %3163 = vmatpush1.bf16.msra.mxu0 %v7368_v26  ;;  %3935 = vmatpush1.bf16.msra.mxu1 %v7369_v27  ;;  %v7447_v26 = vld [vmem:[%s8368_s6 + $0x2cc] ss:$16 sps:$4 sm:$0xff]   ;;  %v6174_v27 = vcombine.low %v735_v9, %v739_v10  ;;  %v7492_v9 = vld [vmem:[%s8368_s6 + $0x3c4] ss:$16 sps:$4 sm:$0xff]  }
  0xc4   : > { %3164 = vmatprep.subr.bf16.mxu0 %v7370_v28  ;;  %3936 = vmatprep.subr.bf16.mxu1 %v7372_v29  ;;  %v6183_v28 = vcombine.high %v743_v21, %v747_v22  ;;  %v7442_v29 = vld [vmem:[%s8368_s6 + $0x2c0] ss:$16 sps:$4 sm:$0xff]   ;;  %v7495_v10 = vld [vmem:[%s8368_s6 + $0x3cc] ss:$16 sps:$4 sm:$0xff]  }
  0xc7   : > { %3165 = vmatpush1.bf16.msra.mxu0 %v7374_v30  ;;  %3937 = vmatpush1.bf16.msra.mxu1 %v7375_v31  ;;  %v7445_v30 = vld [vmem:[%s8368_s6 + $0x2c8] ss:$16 sps:$4 sm:$0xff]   ;;  %v7450_v31 = vld [vmem:[%s8368_s6 + $0x2e4] ss:$16 sps:$4 sm:$0xff]  }
  0xc8   : > { %3166 = vmatprep.subr.bf16.mxu0 %v7376_v32  ;;  %3938 = vmatprep.subr.bf16.mxu1 %v7378_v33  ;;  %v7453_v32 = vld [vmem:[%s8368_s6 + $0x2ec] ss:$16 sps:$4 sm:$0xff]   ;;  %v751_v33 = vld [vmem:[%s9477_s1 + $0x140] sm:$0xff] }
  0xcb   : > { %3167 = vmatpush1.bf16.msra.mxu0 %v7380_v34  ;;  %3939 = vmatpush1.bf16.msra.mxu1 %v7381_v35  ;;  %v755_v34 = vld [vmem:[%s9477_s1 + $0x160] sm:$0xff] }
  0xcc   : > { %3168 = vmatprep.subr.bf16.mxu0 %v7382_v36  ;;  %3940 = vmatprep.subr.bf16.mxu1 %v7384_v37  ;;  %v7448_v35 = vld [vmem:[%s8368_s6 + $0x2e0] ss:$16 sps:$4 sm:$0xff]   ;;  %v7451_v36 = vld [vmem:[%s8368_s6 + $0x2e8] ss:$16 sps:$4 sm:$0xff]   ;;  %v7456_v37 = vld [vmem:[%s8368_s6 + $0x304] ss:$16 sps:$4 sm:$0xff]  }
  0xcf   : > { %3169 = vmatpush1.bf16.msra.mxu0 %v7386_v38  ;;  %3941 = vmatpush1.bf16.msra.mxu1 %v7387_v39  ;;  %v7459_v38 = vld [vmem:[%s8368_s6 + $0x30c] ss:$16 sps:$4 sm:$0xff]   ;;  %v6182_v39 = vcombine.low %v743_v21, %v747_v22  ;;  %v7504_v21 = vld [vmem:[%s8368_s6 + $0x404] ss:$16 sps:$4 sm:$0xff]  }
  0xd0   : > { %3170 = vmatprep.subr.bf16.mxu0 %v7388_v40  ;;  %3942 = vmatprep.subr.bf16.mxu1 %v7390_v41  ;;  %v6191_v40 = vcombine.high %v751_v33, %v755_v34  ;;  %v7454_v41 = vld [vmem:[%s8368_s6 + $0x300] ss:$16 sps:$4 sm:$0xff]   ;;  %v7507_v22 = vld [vmem:[%s8368_s6 + $0x40c] ss:$16 sps:$4 sm:$0xff]  }
  0xd3   : > { %3171 = vmatpush1.bf16.msra.mxu0 %v7392_v42  ;;  %3943 = vmatpush1.bf16.msra.mxu1 %v7393_v43  ;;  %v7457_v42 = vld [vmem:[%s8368_s6 + $0x308] ss:$16 sps:$4 sm:$0xff]   ;;  %v7462_v43 = vld [vmem:[%s8368_s6 + $0x324] ss:$16 sps:$4 sm:$0xff]  }
  0xd4   : > { %3172 = vmatprep.subr.bf16.mxu0 %v7394_v44  ;;  %3944 = vmatprep.subr.bf16.mxu1 %v7396_v45  ;;  %v7465_v44 = vld [vmem:[%s8368_s6 + $0x32c] ss:$16 sps:$4 sm:$0xff]   ;;  %v759_v45 = vld [vmem:[%s9477_s1 + $0x180] sm:$0xff] }
  0xd7   : > { %3173 = vmatpush1.bf16.msra.mxu0 %v7398_v46  ;;  %3945 = vmatpush1.bf16.msra.mxu1 %v7399_v47  ;;  %v763_v46 = vld [vmem:[%s9477_s1 + $0x1a0] sm:$0xff] }
  0xd8   : > { %3174 = vmatprep.subr.bf16.mxu0 %v7400_v48  ;;  %3946 = vmatprep.subr.bf16.mxu1 %v7402_v49  ;;  %v7460_v47 = vld [vmem:[%s8368_s6 + $0x320] ss:$16 sps:$4 sm:$0xff]   ;;  %v7463_v48 = vld [vmem:[%s8368_s6 + $0x328] ss:$16 sps:$4 sm:$0xff]   ;;  %v7468_v49 = vld [vmem:[%s8368_s6 + $0x344] ss:$16 sps:$4 sm:$0xff]  }
  0xdb   : > { %3175 = vmatpush1.bf16.msra.mxu0 %v7404_v51  ;;  %3947 = vmatpush1.bf16.msra.mxu1 %v7405_v52  ;;  %v7471_v51 = vld [vmem:[%s8368_s6 + $0x34c] ss:$16 sps:$4 sm:$0xff]   ;;  %v6190_v52 = vcombine.low %v751_v33, %v755_v34  ;;  %v807_v33 = vld [vmem:[%s9477_s1 + $0x300] sm:$0xff] }
  0xdc   : > { %3337 = vmatprep.subr.bf16.mxu0 %v7408_v53  ;;  %4109 = vmatprep.subr.bf16.mxu1 %v7411_v54  ;;  %v6199_v53 = vcombine.high %v759_v45, %v763_v46  ;;  %v7466_v54 = vld [vmem:[%s8368_s6 + $0x340] ss:$16 sps:$4 sm:$0xff]  }
  0xdd   : > { %v811_v34 = vld [vmem:[%s9477_s1 + $0x320] sm:$0xff] }
  0xde   : > { %3177 = vmatmul.mubr.bf16.vlgmr.msra.gmra.mrb[0].mxu0 %v8366_v50  ;;  %3949 = vmatmul.mubr.bf16.vlgmr.msra.gmra.mrb[0].mxu1 %v8366_v50  ;;  %v7423_v50 = vld [vmem:[%s8368_s6 + $0x24c] ss:$16 sps:$4 sm:$0xff]  }
  0xdf   : > { %3338 = vmatpush1.bf16.msra.mxu0 %v7406_v57  ;;  %4110 = vmatpush1.bf16.msra.mxu1 %v7409_v58  ;;  %v7477_v57 = vld [vmem:[%s8368_s6 + $0x36c] ss:$16 sps:$4 sm:$0xff]   ;;  %v767_v58 = vld [vmem:[%s9477_s1 + $0x1c0] sm:$0xff] }
  0xe0   : > { %3186 = vmatprep.mubr.bf16.mxu0 %v6159_v59  ;;  %3958 = vmatprep.mubr.bf16.mxu1 %v6159_v59  ;;  %v771_v59 = vld [vmem:[%s9477_s1 + $0x1e0] sm:$0xff] }
  0xe1   : > { %3339 = vmatprep.subr.bf16.mxu0 %v7414_v60  ;;  %4111 = vmatprep.subr.bf16.mxu1 %v7417_v61  ;;  %v7472_v60 = vld [vmem:[%s8368_s6 + $0x360] ss:$16 sps:$4 sm:$0xff]   ;;  %v7475_v61 = vld [vmem:[%s8368_s6 + $0x368] ss:$16 sps:$4 sm:$0xff]  }
  0xe3   : > { %3340 = vmatpush1.bf16.msra.mxu0 %v7412_v0  ;;  %4112 = vmatpush1.bf16.msra.mxu1 %v7415_v1  ;;  %v6198_v0 = vcombine.low %v759_v45, %v763_v46  ;;  %v7478_v1 = vld [vmem:[%s8368_s6 + $0x380] ss:$16 sps:$4 sm:$0xff]  }
  0xe4   : > { %3341 = vmatprep.subr.bf16.mxu0 %v7420_v2  ;;  %4113 = vmatprep.subr.bf16.mxu1 %v7423_v50  ;;  %v7481_v2 = vld [vmem:[%s8368_s6 + $0x388] ss:$16 sps:$4 sm:$0xff]   ;;  %v6207_v50 = vcombine.high %v767_v58, %v771_v59  ;;  %v831_v45 = vld [vmem:[%s9477_s1 + $0x3c0] sm:$0xff] }
  0xe5   : > { %v835_v46 = vld [vmem:[%s9477_s1 + $0x3e0] sm:$0xff] }
  0xe6   : > { %3187 = vmatmul.mubr.bf16.gmra.mrb[4].mxu0 %v6158_v3  ;;  %3959 = vmatmul.mubr.bf16.gmra.mrb[4].mxu1 %v6158_v3  ;;  %v7486_v3 = vld [vmem:[%s8368_s6 + $0x3a4] ss:$16 sps:$4 sm:$0xff]  }
  0xe7   : > { %3196 = vmatprep.mubr.bf16.mxu0 %v6167_v4  ;;  %3968 = vmatprep.mubr.bf16.mxu1 %v6167_v4  ;;  %v7489_v4 = vld [vmem:[%s8368_s6 + $0x3ac] ss:$16 sps:$4 sm:$0xff]  }
  0xe8   : > { %3342 = vmatpush1.bf16.msra.mxu0 %v7418_v5  ;;  %4114 = vmatpush1.bf16.msra.mxu1 %v7421_v6  ;;  %v775_v5 = vld [vmem:[%s9477_s1 + $0x200] sm:$0xff] }
  0xe9   : > { %3343 = vmatprep.subr.bf16.mxu0 %v7426_v7  ;;  %4115 = vmatprep.subr.bf16.mxu1 %v7429_v8  ;;  %v779_v6 = vld [vmem:[%s9477_s1 + $0x220] sm:$0xff]  ;;  %v7487_v8 = vld [vmem:[%s8368_s6 + $0x3a8] ss:$16 sps:$4 sm:$0xff]  }
  0xea   : > { %v7484_v7 = vld [vmem:[%s8368_s6 + $0x3a0] ss:$16 sps:$4 sm:$0xff]  }
  0xec   : > { %3344 = vmatpush1.bf16.msra.mxu0 %v7424_v11  ;;  %4116 = vmatpush1.bf16.msra.mxu1 %v7427_v12  ;;  %v6206_v11 = vcombine.low %v767_v58, %v771_v59  ;;  %v7490_v12 = vld [vmem:[%s8368_s6 + $0x3c0] ss:$16 sps:$4 sm:$0xff]   ;;  %v7505_v58 = vld [vmem:[%s8368_s6 + $0x408] ss:$16 sps:$4 sm:$0xff]  }
  0xed   : > { %3345 = vmatprep.subr.bf16.mxu0 %v7432_v13  ;;  %4117 = vmatprep.subr.bf16.mxu1 %v7435_v14  ;;  %v7493_v13 = vld [vmem:[%s8368_s6 + $0x3c8] ss:$16 sps:$4 sm:$0xff]   ;;  %v6215_v14 = vcombine.high %v775_v5, %v779_v6 }
  0xee   : > { %3197 = vmatmul.mubr.bf16.gmra.mrb[8].mxu0 %v6166_v15  ;;  %3969 = vmatmul.mubr.bf16.gmra.mrb[8].mxu1 %v6166_v15  ;;  %v7498_v15 = vld [vmem:[%s8368_s6 + $0x3e4] ss:$16 sps:$4 sm:$0xff]  }
  0xef   : > { %3206 = vmatprep.mubr.bf16.mxu0 %v6175_v16  ;;  %3978 = vmatprep.mubr.bf16.mxu1 %v6175_v16  ;;  %v7501_v16 = vld [vmem:[%s8368_s6 + $0x3ec] ss:$16 sps:$4 sm:$0xff]  }
  0xf0   : > { %3346 = vmatpush1.bf16.msra.mxu0 %v7430_v17  ;;  %4118 = vmatpush1.bf16.msra.mxu1 %v7433_v18  ;;  %v783_v17 = vld [vmem:[%s9477_s1 + $0x240] sm:$0xff] }
  0xf1   : > { %3347 = vmatprep.subr.bf16.mxu0 %v7438_v19  ;;  %4119 = vmatprep.subr.bf16.mxu1 %v7441_v20  ;;  %v787_v18 = vld [vmem:[%s9477_s1 + $0x260] sm:$0xff]  ;;  %v7499_v20 = vld [vmem:[%s8368_s6 + $0x3e8] ss:$16 sps:$4 sm:$0xff]  }
  0xf2   : > { %v7496_v19 = vld [vmem:[%s8368_s6 + $0x3e0] ss:$16 sps:$4 sm:$0xff]  }
  0xf4   : > { %3348 = vmatpush1.bf16.msra.mxu0 %v7436_v23  ;;  %4120 = vmatpush1.bf16.msra.mxu1 %v7439_v24  ;;  %v6214_v23 = vcombine.low %v775_v5, %v779_v6  ;;  %v6223_v24 = vcombine.high %v783_v17, %v787_v18  ;;  %v7514_v5 = vld [vmem:[%s8368_s6 + $0x440] ss:$16 sps:$4 sm:$0xff]   ;;  %v7517_v6 = vld [vmem:[%s8368_s6 + $0x448] ss:$16 sps:$4 sm:$0xff]  }
  0xf5   : > { %3349 = vmatprep.subr.bf16.mxu0 %v7444_v25  ;;  %4121 = vmatprep.subr.bf16.mxu1 %v7447_v26  ;;  %v791_v25 = vld [vmem:[%s9477_s1 + $0x280] sm:$0xff] }
  0xf6   : > { %3207 = vmatmul.mubr.bf16.gmra.mrb[12].mxu0 %v6174_v27  ;;  %3979 = vmatmul.mubr.bf16.gmra.mrb[12].mxu1 %v6174_v27  ;;  %v795_v26 = vld [vmem:[%s9477_s1 + $0x2a0] sm:$0xff]  ;;  %v6222_v27 = vcombine.low %v783_v17, %v787_v18  ;;  %v7529_v18 = vld [vmem:[%s8368_s6 + $0x488] ss:$16 sps:$4 sm:$0xff]  }
  0xf7   : > { %3216 = vmatprep.mubr.bf16.mxu0 %v6183_v28  ;;  %3988 = vmatprep.mubr.bf16.mxu1 %v6183_v28  ;;  %v6231_v28 = vcombine.high %v791_v25, %v795_v26  ;;  %v7526_v17 = vld [vmem:[%s8368_s6 + $0x480] ss:$16 sps:$4 sm:$0xff]  }
  0xf8   : > { %3350 = vmatpush1.bf16.msra.mxu0 %v7442_v29  ;;  %4122 = vmatpush1.bf16.msra.mxu1 %v7445_v30  ;;  %v799_v29 = vld [vmem:[%s9477_s1 + $0x2c0] sm:$0xff] }
  0xf9   : > { %3351 = vmatprep.subr.bf16.mxu0 %v7450_v31  ;;  %4123 = vmatprep.subr.bf16.mxu1 %v7453_v32  ;;  %v803_v30 = vld [vmem:[%s9477_s1 + $0x2e0] sm:$0xff]  ;;  %v6230_v31 = vcombine.low %v791_v25, %v795_v26  ;;  %v7543_v26 = vld [vmem:[%s8368_s6 + $0x4cc] ss:$16 sps:$4 sm:$0xff]  }
  0xfa   : > { %v6239_v32 = vcombine.high %v799_v29, %v803_v30  ;;  %v7540_v25 = vld [vmem:[%s8368_s6 + $0x4c4] ss:$16 sps:$4 sm:$0xff]  }
  0xfc   : > { %3352 = vmatpush1.bf16.msra.mxu0 %v7448_v35  ;;  %4124 = vmatpush1.bf16.msra.mxu1 %v7451_v36  ;;  %v6238_v35 = vcombine.low %v799_v29, %v803_v30  ;;  %v6247_v36 = vcombine.high %v807_v33, %v811_v34  ;;  %v7538_v29 = vld [vmem:[%s8368_s6 + $0x4c0] ss:$16 sps:$4 sm:$0xff]   ;;  %v7541_v30 = vld [vmem:[%s8368_s6 + $0x4c8] ss:$16 sps:$4 sm:$0xff]  }
  0xfd   : > { %3353 = vmatprep.subr.bf16.mxu0 %v7456_v37  ;;  %4125 = vmatprep.subr.bf16.mxu1 %v7459_v38  ;;  %v815_v37 = vld [vmem:[%s9477_s1 + $0x340] sm:$0xff] }
  0xfe   : > { %3217 = vmatmul.mubr.bf16.gmra.mrb[16].mxu0 %v6182_v39  ;;  %3989 = vmatmul.mubr.bf16.gmra.mrb[16].mxu1 %v6182_v39  ;;  %v819_v38 = vld [vmem:[%s9477_s1 + $0x360] sm:$0xff]  ;;  %v6246_v39 = vcombine.low %v807_v33, %v811_v34  ;;  %v752_v33 = vld [vmem:[%s9477_s1 + $0x148] sm:$0xff] }
  0xff   : > { %3226 = vmatprep.mubr.bf16.mxu0 %v6191_v40  ;;  %3998 = vmatprep.mubr.bf16.mxu1 %v6191_v40  ;;  %v6255_v40 = vcombine.high %v815_v37, %v819_v38  ;;  %v756_v34 = vld [vmem:[%s9477_s1 + $0x168] sm:$0xff] }
 0x100   : > { %3354 = vmatpush1.bf16.msra.mxu0 %v7454_v41  ;;  %4126 = vmatpush1.bf16.msra.mxu1 %v7457_v42  ;;  %v823_v41 = vld [vmem:[%s9477_s1 + $0x380] sm:$0xff] }
 0x101   : > { %3355 = vmatprep.subr.bf16.mxu0 %v7462_v43  ;;  %4127 = vmatprep.subr.bf16.mxu1 %v7465_v44  ;;  %v827_v42 = vld [vmem:[%s9477_s1 + $0x3a0] sm:$0xff]  ;;  %v6254_v43 = vcombine.low %v815_v37, %v819_v38  ;;  %v7555_v38 = vld [vmem:[%s8368_s6 + $0x50c] ss:$16 sps:$4 sm:$0xff]  }
 0x102   : > { %v6263_v44 = vcombine.high %v823_v41, %v827_v42  ;;  %v7552_v37 = vld [vmem:[%s8368_s6 + $0x504] ss:$16 sps:$4 sm:$0xff]  }
 0x104   : > { %3356 = vmatpush1.bf16.msra.mxu0 %v7460_v47  ;;  %4128 = vmatpush1.bf16.msra.mxu1 %v7463_v48  ;;  %v6262_v47 = vcombine.low %v823_v41, %v827_v42  ;;  %v6271_v48 = vcombine.high %v831_v45, %v835_v46  ;;  %v7550_v41 = vld [vmem:[%s8368_s6 + $0x500] ss:$16 sps:$4 sm:$0xff]   ;;  %v7553_v42 = vld [vmem:[%s8368_s6 + $0x508] ss:$16 sps:$4 sm:$0xff]  }
 0x105   : > { %3357 = vmatprep.subr.bf16.mxu0 %v7468_v49  ;;  %4129 = vmatprep.subr.bf16.mxu1 %v7471_v51  ;;  %v712_v49 = vld [vmem:[%s9477_s1 + $0x8] sm:$0xff] }
 0x106   : > { %3227 = vmatmul.mubr.bf16.gmra.mrb[20].mxu0 %v6190_v52  ;;  %3999 = vmatmul.mubr.bf16.gmra.mrb[20].mxu1 %v6190_v52  ;;  %v716_v51 = vld [vmem:[%s9477_s1 + $0x28] sm:$0xff]  ;;  %v6270_v52 = vcombine.low %v831_v45, %v835_v46 }
 0x107   : > { %3236 = vmatprep.mubr.bf16.mxu0 %v6199_v53  ;;  %4008 = vmatprep.mubr.bf16.mxu1 %v6199_v53  ;;  %v6153_v53 = vcombine.high %v712_v49, %v716_v51  ;;  %v760_v45 = vld [vmem:[%s9477_s1 + $0x188] sm:$0xff] }
 0x108   : > { %3358 = vmatpush1.bf16.msra.mxu0 %v7466_v54  ;;  %4130 = vmatpush1.bf16.msra.mxu1 %v7469_v55  ;;  %v720_v54 = vld [vmem:[%s9477_s1 + $0x48] sm:$0xff] }
 0x109   : > { %3359 = vmatprep.subr.bf16.mxu0 %v7474_v56  ;;  %4131 = vmatprep.subr.bf16.mxu1 %v7477_v57  ;;  %v724_v55 = vld [vmem:[%s9477_s1 + $0x68] sm:$0xff]  ;;  %v6152_v56 = vcombine.low %v712_v49, %v716_v51  ;;  %v7502_v57 = vld [vmem:[%s8368_s6 + $0x400] ss:$16 sps:$4 sm:$0xff]   ;;  %v7564_v49 = vld [vmem:[%s8368_s6 + $0x544] ss:$16 sps:$4 sm:$0xff]  }
 0x10a   : > { %v6161_v59 = vcombine.high %v720_v54, %v724_v55  ;;  %v764_v46 = vld [vmem:[%s9477_s1 + $0x1a8] sm:$0xff] }
 0x10b   : > { %v7567_v51 = vld [vmem:[%s8368_s6 + $0x54c] ss:$16 sps:$4 sm:$0xff]  }
 0x10c   : > { %3360 = vmatpush1.bf16.msra.mxu0 %v7472_v60  ;;  %4132 = vmatpush1.bf16.msra.mxu1 %v7475_v61  ;;  %v7510_v60 = vld [vmem:[%s8368_s6 + $0x424] ss:$16 sps:$4 sm:$0xff]   ;;  %v7513_v61 = vld [vmem:[%s8368_s6 + $0x42c] ss:$16 sps:$4 sm:$0xff]  }
 0x10d   : > { %3361 = vmatprep.subr.bf16.mxu0 %v7480_v62  ;;  %4133 = vmatprep.subr.bf16.mxu1 %v7483_v63  ;;  %v7508_v62 = vld [vmem:[%s8368_s6 + $0x420] ss:$16 sps:$4 sm:$0xff]   ;;  %v7511_v63 = vld [vmem:[%s8368_s6 + $0x428] ss:$16 sps:$4 sm:$0xff]  }
 0x10e   : > { %3237 = vmatmul.mubr.bf16.gmra.mrb[24].mxu0 %v6198_v0  ;;  %4009 = vmatmul.mubr.bf16.gmra.mrb[24].mxu1 %v6198_v0  ;;  %v728_v0 = vld [vmem:[%s9477_s1 + $0x88] sm:$0xff] }
 0x10f   : > { %3246 = vmatprep.mubr.bf16.mxu0 %v6207_v50  ;;  %4018 = vmatprep.mubr.bf16.mxu1 %v6207_v50  ;;  %v7519_v50 = vld [vmem:[%s8368_s6 + $0x44c] ss:$16 sps:$4 sm:$0xff]  }
 0x110   : > { %3362 = vmatpush1.bf16.msra.mxu0 %v7478_v1  ;;  %4134 = vmatpush1.bf16.msra.mxu1 %v7481_v2  ;;  %v732_v1 = vld [vmem:[%s9477_s1 + $0xa8] sm:$0xff]  ;;  %v7516_v2 = vld [vmem:[%s8368_s6 + $0x444] ss:$16 sps:$4 sm:$0xff]  }
 0x111   : > { %3363 = vmatprep.subr.bf16.mxu0 %v7486_v3  ;;  %4135 = vmatprep.subr.bf16.mxu1 %v7489_v4  ;;  %v6160_v3 = vcombine.low %v720_v54, %v724_v55  ;;  %v6169_v4 = vcombine.high %v728_v0, %v732_v1  ;;  %v7562_v54 = vld [vmem:[%s8368_s6 + $0x540] ss:$16 sps:$4 sm:$0xff]   ;;  %v7565_v55 = vld [vmem:[%s8368_s6 + $0x548] ss:$16 sps:$4 sm:$0xff]  }
 0x114   : > { %3364 = vmatpush1.bf16.msra.mxu0 %v7484_v7  ;;  %4136 = vmatpush1.bf16.msra.mxu1 %v7487_v8  ;;  %v7522_v7 = vld [vmem:[%s8368_s6 + $0x464] ss:$16 sps:$4 sm:$0xff]   ;;  %v7525_v8 = vld [vmem:[%s8368_s6 + $0x46c] ss:$16 sps:$4 sm:$0xff]  }
 0x115   : > { %3365 = vmatprep.subr.bf16.mxu0 %v7492_v9  ;;  %4137 = vmatprep.subr.bf16.mxu1 %v7495_v10  ;;  %v736_v9 = vld [vmem:[%s9477_s1 + $0xc8] sm:$0xff] }
 0x116   : > { %3247 = vmatmul.mubr.bf16.gmra.mrb[28].mxu0 %v6206_v11  ;;  %4019 = vmatmul.mubr.bf16.gmra.mrb[28].mxu1 %v6206_v11  ;;  %v740_v10 = vld [vmem:[%s9477_s1 + $0xe8] sm:$0xff]  ;;  %v7520_v11 = vld [vmem:[%s8368_s6 + $0x460] ss:$16 sps:$4 sm:$0xff]  }
 0x117   : > { %3256 = vmatprep.mubr.bf16.mxu0 %v6215_v14  ;;  %4028 = vmatprep.mubr.bf16.mxu1 %v6215_v14  ;;  %v7531_v14 = vld [vmem:[%s8368_s6 + $0x48c] ss:$16 sps:$4 sm:$0xff]  }
 0x118   : > { %3366 = vmatpush1.bf16.msra.mxu0 %v7490_v12  ;;  %4138 = vmatpush1.bf16.msra.mxu1 %v7493_v13  ;;  %v7523_v12 = vld [vmem:[%s8368_s6 + $0x468] ss:$16 sps:$4 sm:$0xff]   ;;  %v7528_v13 = vld [vmem:[%s8368_s6 + $0x484] ss:$16 sps:$4 sm:$0xff]  }
 0x119   : > { %3367 = vmatprep.subr.bf16.mxu0 %v7498_v15  ;;  %4139 = vmatprep.subr.bf16.mxu1 %v7501_v16  ;;  %v6168_v15 = vcombine.low %v728_v0, %v732_v1  ;;  %v6177_v16 = vcombine.high %v736_v9, %v740_v10  ;;  %v6200_v0 = vcombine.low %v760_v45, %v764_v46 }
 0x11c   : > { %3368 = vmatpush1.bf16.msra.mxu0 %v7496_v19  ;;  %4140 = vmatpush1.bf16.msra.mxu1 %v7499_v20  ;;  %v7534_v19 = vld [vmem:[%s8368_s6 + $0x4a4] ss:$16 sps:$4 sm:$0xff]   ;;  %v7537_v20 = vld [vmem:[%s8368_s6 + $0x4ac] ss:$16 sps:$4 sm:$0xff]  }
 0x11d   : > { %3530 = vmatprep.subr.bf16.mxu0 %v7504_v21  ;;  %4302 = vmatprep.subr.bf16.mxu1 %v7507_v22  ;;  %v744_v21 = vld [vmem:[%s9477_s1 + $0x108] sm:$0xff] }
 0x11e   : > { %3257 = vmatmul.mubr.bf16.gmra.mrb[32].mxu0 %v6214_v23  ;;  %4029 = vmatmul.mubr.bf16.gmra.mrb[32].mxu1 %v6214_v23  ;;  %v748_v22 = vld [vmem:[%s9477_s1 + $0x128] sm:$0xff]  ;;  %v7532_v23 = vld [vmem:[%s8368_s6 + $0x4a0] ss:$16 sps:$4 sm:$0xff]  }
 0x11f   : > { %3266 = vmatprep.mubr.bf16.mxu0 %v6223_v24  ;;  %4038 = vmatprep.mubr.bf16.mxu1 %v6223_v24  ;;  %v7535_v24 = vld [vmem:[%s8368_s6 + $0x4a8] ss:$16 sps:$4 sm:$0xff]  }
 0x126   : > { %3267 = vmatmul.mubr.bf16.gmra.mrb[36].mxu0 %v6222_v27  ;;  %4039 = vmatmul.mubr.bf16.gmra.mrb[36].mxu1 %v6222_v27  ;;  %v6176_v27 = vcombine.low %v736_v9, %v740_v10  ;;  %v7588_v9 = vld [vmem:[%s8368_s6 + $0x5c4] ss:$16 sps:$4 sm:$0xff]   ;;  %v7591_v10 = vld [vmem:[%s8368_s6 + $0x5cc] ss:$16 sps:$4 sm:$0xff]  }
 0x127   : > { %3276 = vmatprep.mubr.bf16.mxu0 %v6231_v28  ;;  %4048 = vmatprep.mubr.bf16.mxu1 %v6231_v28  ;;  %v6185_v28 = vcombine.high %v744_v21, %v748_v22 }
 0x12e   : > { %3277 = vmatmul.mubr.bf16.gmra.mrb[40].mxu0 %v6230_v31  ;;  %4049 = vmatmul.mubr.bf16.gmra.mrb[40].mxu1 %v6230_v31  ;;  %v7546_v31 = vld [vmem:[%s8368_s6 + $0x4e4] ss:$16 sps:$4 sm:$0xff]  }
 0x12f   : > { %3286 = vmatprep.mubr.bf16.mxu0 %v6239_v32  ;;  %4058 = vmatprep.mubr.bf16.mxu1 %v6239_v32  ;;  %v7549_v32 = vld [vmem:[%s8368_s6 + $0x4ec] ss:$16 sps:$4 sm:$0xff]  }
 0x136   : > { %3287 = vmatmul.mubr.bf16.gmra.mrb[44].mxu0 %v6238_v35  ;;  %4059 = vmatmul.mubr.bf16.gmra.mrb[44].mxu1 %v6238_v35  ;;  %v7544_v35 = vld [vmem:[%s8368_s6 + $0x4e0] ss:$16 sps:$4 sm:$0xff]  }
 0x137   : > { %3296 = vmatprep.mubr.bf16.mxu0 %v6247_v36  ;;  %4068 = vmatprep.mubr.bf16.mxu1 %v6247_v36  ;;  %v7547_v36 = vld [vmem:[%s8368_s6 + $0x4e8] ss:$16 sps:$4 sm:$0xff]  }
 0x13e   : > { %3297 = vmatmul.mubr.bf16.gmra.mrb[48].mxu0 %v6246_v39  ;;  %4069 = vmatmul.mubr.bf16.gmra.mrb[48].mxu1 %v6246_v39  ;;  %v6184_v39 = vcombine.low %v744_v21, %v748_v22  ;;  %v7600_v21 = vld [vmem:[%s8368_s6 + $0x604] ss:$16 sps:$4 sm:$0xff]   ;;  %v7603_v22 = vld [vmem:[%s8368_s6 + $0x60c] ss:$16 sps:$4 sm:$0xff]  }
 0x13f   : > { %3306 = vmatprep.mubr.bf16.mxu0 %v6255_v40  ;;  %4078 = vmatprep.mubr.bf16.mxu1 %v6255_v40  ;;  %v6193_v40 = vcombine.high %v752_v33, %v756_v34 }
 0x146   : > { %3307 = vmatmul.mubr.bf16.gmra.mrb[52].mxu0 %v6254_v43  ;;  %4079 = vmatmul.mubr.bf16.gmra.mrb[52].mxu1 %v6254_v43  ;;  %v7558_v43 = vld [vmem:[%s8368_s6 + $0x524] ss:$16 sps:$4 sm:$0xff]  }
 0x147   : > { %3316 = vmatprep.mubr.bf16.mxu0 %v6263_v44  ;;  %4088 = vmatprep.mubr.bf16.mxu1 %v6263_v44  ;;  %v7561_v44 = vld [vmem:[%s8368_s6 + $0x52c] ss:$16 sps:$4 sm:$0xff]  }
 0x14e   : > { %3317 = vmatmul.mubr.bf16.gmra.mrb[56].mxu0 %v6262_v47  ;;  %4089 = vmatmul.mubr.bf16.gmra.mrb[56].mxu1 %v6262_v47  ;;  %v7556_v47 = vld [vmem:[%s8368_s6 + $0x520] ss:$16 sps:$4 sm:$0xff]  }
 0x14f   : > { %3326 = vmatprep.mubr.bf16.mxu0 %v6271_v48  ;;  %4098 = vmatprep.mubr.bf16.mxu1 %v6271_v48  ;;  %v7559_v48 = vld [vmem:[%s8368_s6 + $0x528] ss:$16 sps:$4 sm:$0xff]  }
 0x156   : > { %3327 = vmatmul.mubr.bf16.gmra.mrb[60].mxu0 %v6270_v52  ;;  %4099 = vmatmul.mubr.bf16.gmra.mrb[60].mxu1 %v6270_v52  ;;  %v6192_v52 = vcombine.low %v752_v33, %v756_v34  ;;  %v808_v33 = vld [vmem:[%s9477_s1 + $0x308] sm:$0xff] }
 0x157   : > { %3369 = vmatprep.mubr.bf16.mxu0 %v6153_v53  ;;  %4141 = vmatprep.mubr.bf16.mxu1 %v6153_v53  ;;  %v6201_v53 = vcombine.high %v760_v45, %v764_v46  ;;  %v812_v34 = vld [vmem:[%s9477_s1 + $0x328] sm:$0xff] }
 0x158   : > { %v832_v45 = vld [vmem:[%s9477_s1 + $0x3c8] sm:$0xff] }
 0x159   : > { %v836_v46 = vld [vmem:[%s9477_s1 + $0x3e8] sm:$0xff] }
 0x15e   : > { %3370 = vmatmul.mubr.bf16.vlgmr.msra.gmra.mrb[0].mxu0 %v6152_v56  ;;  %4142 = vmatmul.mubr.bf16.vlgmr.msra.gmra.mrb[0].mxu1 %v6152_v56  ;;  %v7570_v56 = vld [vmem:[%s8368_s6 + $0x564] ss:$16 sps:$4 sm:$0xff]  }
 0x15f   : > { %3531 = vmatpush1.bf16.msra.mxu0 %v7502_v57  ;;  %4303 = vmatpush1.bf16.msra.mxu1 %v7505_v58  ;;  %v7573_v57 = vld [vmem:[%s8368_s6 + $0x56c] ss:$16 sps:$4 sm:$0xff]  }
 0x160   : > { %3379 = vmatprep.mubr.bf16.mxu0 %v6161_v59  ;;  %4151 = vmatprep.mubr.bf16.mxu1 %v6161_v59  ;;  %v768_v58 = vld [vmem:[%s9477_s1 + $0x1c8] sm:$0xff] }
 0x161   : > { %3532 = vmatprep.subr.bf16.mxu0 %v7510_v60  ;;  %4304 = vmatprep.subr.bf16.mxu1 %v7513_v61  ;;  %v772_v59 = vld [vmem:[%s9477_s1 + $0x1e8] sm:$0xff]  ;;  %v7568_v60 = vld [vmem:[%s8368_s6 + $0x560] ss:$16 sps:$4 sm:$0xff]  }
 0x162   : > { %v7571_v61 = vld [vmem:[%s8368_s6 + $0x568] ss:$16 sps:$4 sm:$0xff]   ;;  %v6209_v1 = vcombine.high %v768_v58, %v772_v59 }
 0x163   : > { %3533 = vmatpush1.bf16.msra.mxu0 %v7508_v62  ;;  %4305 = vmatpush1.bf16.msra.mxu1 %v7511_v63  ;;  %v7576_v62 = vld [vmem:[%s8368_s6 + $0x584] ss:$16 sps:$4 sm:$0xff]   ;;  %v7579_v63 = vld [vmem:[%s8368_s6 + $0x58c] ss:$16 sps:$4 sm:$0xff]  }
 0x164   : > { %3534 = vmatprep.subr.bf16.mxu0 %v7516_v2  ;;  %4306 = vmatprep.subr.bf16.mxu1 %v7519_v50  ;;  %v7574_v2 = vld [vmem:[%s8368_s6 + $0x580] ss:$16 sps:$4 sm:$0xff]   ;;  %v7577_v50 = vld [vmem:[%s8368_s6 + $0x588] ss:$16 sps:$4 sm:$0xff]  }
 0x166   : > { %3380 = vmatmul.mubr.bf16.gmra.mrb[4].mxu0 %v6160_v3  ;;  %4152 = vmatmul.mubr.bf16.gmra.mrb[4].mxu1 %v6160_v3  ;;  %v7582_v3 = vld [vmem:[%s8368_s6 + $0x5a4] ss:$16 sps:$4 sm:$0xff]  }
 0x167   : > { %3389 = vmatprep.mubr.bf16.mxu0 %v6169_v4  ;;  %4161 = vmatprep.mubr.bf16.mxu1 %v6169_v4  ;;  %v7585_v4 = vld [vmem:[%s8368_s6 + $0x5ac] ss:$16 sps:$4 sm:$0xff]  }
 0x168   : > { %3535 = vmatpush1.bf16.msra.mxu0 %v7514_v5  ;;  %4307 = vmatpush1.bf16.msra.mxu1 %v7517_v6  ;;  %v776_v5 = vld [vmem:[%s9477_s1 + $0x208] sm:$0xff] }
 0x169   : > { %3536 = vmatprep.subr.bf16.mxu0 %v7522_v7  ;;  %4308 = vmatprep.subr.bf16.mxu1 %v7525_v8  ;;  %v780_v6 = vld [vmem:[%s9477_s1 + $0x228] sm:$0xff]  ;;  %v7580_v7 = vld [vmem:[%s8368_s6 + $0x5a0] ss:$16 sps:$4 sm:$0xff]  }
 0x16a   : > { %v7583_v8 = vld [vmem:[%s8368_s6 + $0x5a8] ss:$16 sps:$4 sm:$0xff]  }
 0x16c   : > { %3537 = vmatpush1.bf16.msra.mxu0 %v7520_v11  ;;  %4309 = vmatpush1.bf16.msra.mxu1 %v7523_v12  ;;  %v6208_v11 = vcombine.low %v768_v58, %v772_v59  ;;  %v6217_v12 = vcombine.high %v776_v5, %v780_v6  ;;  %v7601_v58 = vld [vmem:[%s8368_s6 + $0x608] ss:$16 sps:$4 sm:$0xff]  }
 0x16d   : > { %3538 = vmatprep.subr.bf16.mxu0 %v7528_v13  ;;  %4310 = vmatprep.subr.bf16.mxu1 %v7531_v14  ;;  %v7586_v13 = vld [vmem:[%s8368_s6 + $0x5c0] ss:$16 sps:$4 sm:$0xff]   ;;  %v7589_v14 = vld [vmem:[%s8368_s6 + $0x5c8] ss:$16 sps:$4 sm:$0xff]  }
 0x16e   : > { %3390 = vmatmul.mubr.bf16.gmra.mrb[8].mxu0 %v6168_v15  ;;  %4162 = vmatmul.mubr.bf16.gmra.mrb[8].mxu1 %v6168_v15  ;;  %v7594_v15 = vld [vmem:[%s8368_s6 + $0x5e4] ss:$16 sps:$4 sm:$0xff]  }
 0x16f   : > { %3399 = vmatprep.mubr.bf16.mxu0 %v6177_v16  ;;  %4171 = vmatprep.mubr.bf16.mxu1 %v6177_v16  ;;  %v7597_v16 = vld [vmem:[%s8368_s6 + $0x5ec] ss:$16 sps:$4 sm:$0xff]  }
 0x170   : > { %3539 = vmatpush1.bf16.msra.mxu0 %v7526_v17  ;;  %4311 = vmatpush1.bf16.msra.mxu1 %v7529_v18  ;;  %v784_v17 = vld [vmem:[%s9477_s1 + $0x248] sm:$0xff] }
 0x171   : > { %3540 = vmatprep.subr.bf16.mxu0 %v7534_v19  ;;  %4312 = vmatprep.subr.bf16.mxu1 %v7537_v20  ;;  %v788_v18 = vld [vmem:[%s9477_s1 + $0x268] sm:$0xff]  ;;  %v7592_v19 = vld [vmem:[%s8368_s6 + $0x5e0] ss:$16 sps:$4 sm:$0xff]  }
 0x172   : > { %v7595_v20 = vld [vmem:[%s8368_s6 + $0x5e8] ss:$16 sps:$4 sm:$0xff]  }
 0x174   : > { %3541 = vmatpush1.bf16.msra.mxu0 %v7532_v23  ;;  %4313 = vmatpush1.bf16.msra.mxu1 %v7535_v24  ;;  %v6216_v23 = vcombine.low %v776_v5, %v780_v6  ;;  %v6225_v24 = vcombine.high %v784_v17, %v788_v18  ;;  %v7610_v5 = vld [vmem:[%s8368_s6 + $0x640] ss:$16 sps:$4 sm:$0xff]   ;;  %v7613_v6 = vld [vmem:[%s8368_s6 + $0x648] ss:$16 sps:$4 sm:$0xff]  }
 0x175   : > { %3542 = vmatprep.subr.bf16.mxu0 %v7540_v25  ;;  %4314 = vmatprep.subr.bf16.mxu1 %v7543_v26  ;;  %v792_v25 = vld [vmem:[%s9477_s1 + $0x288] sm:$0xff] }
 0x176   : > { %3400 = vmatmul.mubr.bf16.gmra.mrb[12].mxu0 %v6176_v27  ;;  %4172 = vmatmul.mubr.bf16.gmra.mrb[12].mxu1 %v6176_v27  ;;  %v796_v26 = vld [vmem:[%s9477_s1 + $0x2a8] sm:$0xff]  ;;  %v6224_v27 = vcombine.low %v784_v17, %v788_v18  ;;  %v7622_v17 = vld [vmem:[%s8368_s6 + $0x680] ss:$16 sps:$4 sm:$0xff]  }
 0x177   : > { %3409 = vmatprep.mubr.bf16.mxu0 %v6185_v28  ;;  %4181 = vmatprep.mubr.bf16.mxu1 %v6185_v28  ;;  %v6233_v28 = vcombine.high %v792_v25, %v796_v26  ;;  %v7625_v18 = vld [vmem:[%s8368_s6 + $0x688] ss:$16 sps:$4 sm:$0xff]  }
 0x178   : > { %3543 = vmatpush1.bf16.msra.mxu0 %v7538_v29  ;;  %4315 = vmatpush1.bf16.msra.mxu1 %v7541_v30  ;;  %v800_v29 = vld [vmem:[%s9477_s1 + $0x2c8] sm:$0xff] }
 0x179   : > { %3544 = vmatprep.subr.bf16.mxu0 %v7546_v31  ;;  %4316 = vmatprep.subr.bf16.mxu1 %v7549_v32  ;;  %v804_v30 = vld [vmem:[%s9477_s1 + $0x2e8] sm:$0xff]  ;;  %v6232_v31 = vcombine.low %v792_v25, %v796_v26  ;;  %v1079_v25 = vld [vmem:[%s9478_s2] sm:$0xff] }
 0x17a   : > { %v6241_v32 = vcombine.high %v800_v29, %v804_v30  ;;  %v7636_v26 = vld [vmem:[%s8368_s6 + $0x6c4] ss:$16 sps:$4 sm:$0xff]  }
 0x17c   : > { %3545 = vmatpush1.bf16.msra.mxu0 %v7544_v35  ;;  %4317 = vmatpush1.bf16.msra.mxu1 %v7547_v36  ;;  %v6240_v35 = vcombine.low %v800_v29, %v804_v30  ;;  %v6249_v36 = vcombine.high %v808_v33, %v812_v34  ;;  %v7780_v29 = vmov 0  }
 0x17d   : > { %3546 = vmatprep.subr.bf16.mxu0 %v7552_v37  ;;  %4318 = vmatprep.subr.bf16.mxu1 %v7555_v38  ;;  %v816_v37 = vld [vmem:[%s9477_s1 + $0x348] sm:$0xff] }
 0x17e   : > { %3410 = vmatmul.mubr.bf16.gmra.mrb[16].mxu0 %v6184_v39  ;;  %4182 = vmatmul.mubr.bf16.gmra.mrb[16].mxu1 %v6184_v39  ;;  %v820_v38 = vld [vmem:[%s9477_s1 + $0x368] sm:$0xff]  ;;  %v6248_v39 = vcombine.low %v808_v33, %v812_v34  ;;  %v7642_v33 = vld [vmem:[%s8368_s6 + $0x6e4] ss:$16 sps:$4 sm:$0xff]  }
 0x17f   : > { %3419 = vmatprep.mubr.bf16.mxu0 %v6193_v40  ;;  %4191 = vmatprep.mubr.bf16.mxu1 %v6193_v40  ;;  %v6257_v40 = vcombine.high %v816_v37, %v820_v38  ;;  %v7645_v34 = vld [vmem:[%s8368_s6 + $0x6ec] ss:$16 sps:$4 sm:$0xff]  }
 0x180   : > { %3547 = vmatpush1.bf16.msra.mxu0 %v7550_v41  ;;  %4319 = vmatpush1.bf16.msra.mxu1 %v7553_v42  ;;  %v824_v41 = vld [vmem:[%s9477_s1 + $0x388] sm:$0xff] }
 0x181   : > { %3548 = vmatprep.subr.bf16.mxu0 %v7558_v43  ;;  %4320 = vmatprep.subr.bf16.mxu1 %v7561_v44  ;;  %v828_v42 = vld [vmem:[%s9477_s1 + $0x3a8] sm:$0xff]  ;;  %v6256_v43 = vcombine.low %v816_v37, %v820_v38  ;;  %v1081_v37 = vld [vmem:[%s9478_s2 + $0x10] sm:$0xff] }
 0x182   : > { %v6265_v44 = vcombine.high %v824_v41, %v828_v42  ;;  %7308 = vset.pattern.permute.xlu0 %v7780_v29  ;;  %7309 = vset.pattern.permute.xlu1 %v7780_v29  ;;  %v757_v38 = vld [vmem:[%s9477_s1 + $0x170] sm:$0xff] }
 0x183   : > { %1113 = vperm.xlu0 %7308, %v1079_v25   ;;  %1123 = vperm.xlu1 %7309, %v1081_v37   ;;  %v793_v25 = vld [vmem:[%s9477_s1 + $0x290] sm:$0xff] }
 0x184   : > { %3549 = vmatpush1.bf16.msra.mxu0 %v7556_v47  ;;  %4321 = vmatpush1.bf16.msra.mxu1 %v7559_v48  ;;  %v6264_v47 = vcombine.low %v824_v41, %v828_v42  ;;  %v6273_v48 = vcombine.high %v832_v45, %v836_v46  ;;  %v7648_v41 = vld [vmem:[%s8368_s6 + $0x704] ss:$16 sps:$4 sm:$0xff]   ;;  %v7651_v42 = vld [vmem:[%s8368_s6 + $0x70c] ss:$16 sps:$4 sm:$0xff]  }
 0x185   : > { %3550 = vmatprep.subr.bf16.mxu0 %v7564_v49  ;;  %4322 = vmatprep.subr.bf16.mxu1 %v7567_v51  ;;  %v713_v49 = vld [vmem:[%s9477_s1 + $0x10] sm:$0xff] }
 0x186   : > { %3420 = vmatmul.mubr.bf16.gmra.mrb[20].mxu0 %v6192_v52  ;;  %4192 = vmatmul.mubr.bf16.gmra.mrb[20].mxu1 %v6192_v52  ;;  %v717_v51 = vld [vmem:[%s9477_s1 + $0x30] sm:$0xff]  ;;  %v6272_v52 = vcombine.low %v832_v45, %v836_v46  ;;  %v7649_v46 = vld [vmem:[%s8368_s6 + $0x708] ss:$16 sps:$4 sm:$0xff]  }
 0x187   : > { %3429 = vmatprep.mubr.bf16.mxu0 %v6201_v53  ;;  %4201 = vmatprep.mubr.bf16.mxu1 %v6201_v53  ;;  %v6155_v53 = vcombine.high %v713_v49, %v717_v51  ;;  %v7646_v45 = vld [vmem:[%s8368_s6 + $0x700] ss:$16 sps:$4 sm:$0xff]  }
 0x188   : > { %3551 = vmatpush1.bf16.msra.mxu0 %v7562_v54  ;;  %4323 = vmatpush1.bf16.msra.mxu1 %v7565_v55  ;;  %v721_v54 = vld [vmem:[%s9477_s1 + $0x50] sm:$0xff] }
 0x189   : > { %3552 = vmatprep.subr.bf16.mxu0 %v7570_v56  ;;  %4324 = vmatprep.subr.bf16.mxu1 %v7573_v57  ;;  %v725_v55 = vld [vmem:[%s9477_s1 + $0x70] sm:$0xff]  ;;  %v6154_v56 = vcombine.low %v713_v49, %v717_v51  ;;  %v1083_v51 = vld [vmem:[%s9478_s2 + $0x20] sm:$0xff] }
 0x18a   : > { %v7598_v57 = vld [vmem:[%s8368_s6 + $0x600] ss:$16 sps:$4 sm:$0xff]   ;;  %v6163_v59 = vcombine.high %v721_v54, %v725_v55 }
 0x18b   : > { %v761_v49 = vld [vmem:[%s9477_s1 + $0x190] sm:$0xff] }
 0x18c   : > { %3553 = vmatpush1.bf16.msra.mxu0 %v7568_v60  ;;  %4325 = vmatpush1.bf16.msra.mxu1 %v7571_v61  ;;  %v7606_v60 = vld [vmem:[%s8368_s6 + $0x624] ss:$16 sps:$4 sm:$0xff]   ;;  %v7609_v61 = vld [vmem:[%s8368_s6 + $0x62c] ss:$16 sps:$4 sm:$0xff]  }
 0x18d   : > { %3554 = vmatprep.subr.bf16.mxu0 %v7576_v62  ;;  %4326 = vmatprep.subr.bf16.mxu1 %v7579_v63  ;;  %v729_v62 = vld [vmem:[%s9477_s1 + $0x90] sm:$0xff] }
 0x18e   : > { %3430 = vmatmul.mubr.bf16.gmra.mrb[24].mxu0 %v6200_v0  ;;  %4202 = vmatmul.mubr.bf16.gmra.mrb[24].mxu1 %v6200_v0  ;;  %v7604_v63 = vld [vmem:[%s8368_s6 + $0x620] ss:$16 sps:$4 sm:$0xff]   ;;  %v7607_v0 = vld [vmem:[%s8368_s6 + $0x628] ss:$16 sps:$4 sm:$0xff]  }
 0x18f   : > { %3439 = vmatprep.mubr.bf16.mxu0 %v6209_v1  ;;  %4211 = vmatprep.mubr.bf16.mxu1 %v6209_v1  ;;  %v733_v1 = vld [vmem:[%s9477_s1 + $0xb0] sm:$0xff] }
 0x190   : > { %3555 = vmatpush1.bf16.msra.mxu0 %v7574_v2  ;;  %4327 = vmatpush1.bf16.msra.mxu1 %v7577_v50  ;;  %v7612_v2 = vld [vmem:[%s8368_s6 + $0x644] ss:$16 sps:$4 sm:$0xff]   ;;  %v7615_v50 = vld [vmem:[%s8368_s6 + $0x64c] ss:$16 sps:$4 sm:$0xff]  }
 0x191   : > { %3556 = vmatprep.subr.bf16.mxu0 %v7582_v3  ;;  %4328 = vmatprep.subr.bf16.mxu1 %v7585_v4  ;;  %v6162_v3 = vcombine.low %v721_v54, %v725_v55  ;;  %v6171_v4 = vcombine.high %v729_v62, %v733_v1  ;;  %v7652_v54 = vld [vmem:[%s8368_s6 + $0x720] ss:$16 sps:$4 sm:$0xff]   ;;  %v7655_v55 = vld [vmem:[%s8368_s6 + $0x728] ss:$16 sps:$4 sm:$0xff]  }
 0x194   : > { %3557 = vmatpush1.bf16.msra.mxu0 %v7580_v7  ;;  %4329 = vmatpush1.bf16.msra.mxu1 %v7583_v8  ;;  %v7618_v7 = vld [vmem:[%s8368_s6 + $0x664] ss:$16 sps:$4 sm:$0xff]   ;;  %v7621_v8 = vld [vmem:[%s8368_s6 + $0x66c] ss:$16 sps:$4 sm:$0xff]  }
 0x195   : > { %3558 = vmatprep.subr.bf16.mxu0 %v7588_v9  ;;  %4330 = vmatprep.subr.bf16.mxu1 %v7591_v10  ;;  %v737_v9 = vld [vmem:[%s9477_s1 + $0xd0] sm:$0xff] }
 0x196   : > { %3440 = vmatmul.mubr.bf16.gmra.mrb[28].mxu0 %v6208_v11  ;;  %4212 = vmatmul.mubr.bf16.gmra.mrb[28].mxu1 %v6208_v11  ;;  %v741_v10 = vld [vmem:[%s9477_s1 + $0xf0] sm:$0xff] }
 0x197   : > { %3449 = vmatprep.mubr.bf16.mxu0 %v6217_v12  ;;  %4221 = vmatprep.mubr.bf16.mxu1 %v6217_v12  ;;  %v7616_v11 = vld [vmem:[%s8368_s6 + $0x660] ss:$16 sps:$4 sm:$0xff]   ;;  %v7619_v12 = vld [vmem:[%s8368_s6 + $0x668] ss:$16 sps:$4 sm:$0xff]  }
 0x198   : > { %3559 = vmatpush1.bf16.msra.mxu0 %v7586_v13  ;;  %4331 = vmatpush1.bf16.msra.mxu1 %v7589_v14  ;;  %v7624_v13 = vld [vmem:[%s8368_s6 + $0x684] ss:$16 sps:$4 sm:$0xff]   ;;  %v7627_v14 = vld [vmem:[%s8368_s6 + $0x68c] ss:$16 sps:$4 sm:$0xff]  }
 0x199   : > { %3560 = vmatprep.subr.bf16.mxu0 %v7594_v15  ;;  %4332 = vmatprep.subr.bf16.mxu1 %v7597_v16  ;;  %v6170_v15 = vcombine.low %v729_v62, %v733_v1  ;;  %v6179_v16 = vcombine.high %v737_v9, %v741_v10  ;;  %v7666_v62 = vld [vmem:[%s8368_s6 + $0x764] ss:$16 sps:$4 sm:$0xff]  }
 0x19a   : > { %v1085_v1 = vld [vmem:[%s9478_s2 + $0x30] sm:$0xff] }
 0x19c   : > { %3561 = vmatpush1.bf16.msra.mxu0 %v7592_v19  ;;  %4333 = vmatpush1.bf16.msra.mxu1 %v7595_v20  ;;  %v7630_v19 = vld [vmem:[%s8368_s6 + $0x6a4] ss:$16 sps:$4 sm:$0xff]   ;;  %v7633_v20 = vld [vmem:[%s8368_s6 + $0x6ac] ss:$16 sps:$4 sm:$0xff]  }
 0x19d   : > { %3723 = vmatprep.subr.bf16.mxu0 %v7600_v21  ;;  %4495 = vmatprep.subr.bf16.mxu1 %v7603_v22  ;;  %v745_v21 = vld [vmem:[%s9477_s1 + $0x110] sm:$0xff] }
 0x19e   : > { %3450 = vmatmul.mubr.bf16.gmra.mrb[32].mxu0 %v6216_v23  ;;  %4222 = vmatmul.mubr.bf16.gmra.mrb[32].mxu1 %v6216_v23  ;;  %v749_v22 = vld [vmem:[%s9477_s1 + $0x130] sm:$0xff] }
 0x19f   : > { %3459 = vmatprep.mubr.bf16.mxu0 %v6225_v24  ;;  %4231 = vmatprep.mubr.bf16.mxu1 %v6225_v24  ;;  %v7628_v23 = vld [vmem:[%s8368_s6 + $0x6a0] ss:$16 sps:$4 sm:$0xff]   ;;  %v7631_v24 = vld [vmem:[%s8368_s6 + $0x6a8] ss:$16 sps:$4 sm:$0xff]   ;;  %v6187_v30 = vcombine.high %v745_v21, %v749_v22 }
 0x1a6   : > { %3460 = vmatmul.mubr.bf16.gmra.mrb[36].mxu0 %v6224_v27  ;;  %4232 = vmatmul.mubr.bf16.gmra.mrb[36].mxu1 %v6224_v27  ;;  %v7639_v27 = vld [vmem:[%s8368_s6 + $0x6cc] ss:$16 sps:$4 sm:$0xff]  }
 0x1a7   : > { %3469 = vmatprep.mubr.bf16.mxu0 %v6233_v28  ;;  %4241 = vmatprep.mubr.bf16.mxu1 %v6233_v28  ;;  %v6178_v28 = vcombine.low %v737_v9, %v741_v10  ;;  %v777_v9 = vld [vmem:[%s9477_s1 + $0x210] sm:$0xff] }
 0x1a8   : > { %v781_v10 = vld [vmem:[%s9477_s1 + $0x230] sm:$0xff] }
 0x1ae   : > { %3470 = vmatmul.mubr.bf16.gmra.mrb[40].mxu0 %v6232_v31  ;;  %4242 = vmatmul.mubr.bf16.gmra.mrb[40].mxu1 %v6232_v31  ;;  %v7634_v31 = vld [vmem:[%s8368_s6 + $0x6c0] ss:$16 sps:$4 sm:$0xff]  }
 0x1af   : > { %3479 = vmatprep.mubr.bf16.mxu0 %v6241_v32  ;;  %4251 = vmatprep.mubr.bf16.mxu1 %v6241_v32  ;;  %v7637_v32 = vld [vmem:[%s8368_s6 + $0x6c8] ss:$16 sps:$4 sm:$0xff]  }
 0x1b6   : > { %3480 = vmatmul.mubr.bf16.gmra.mrb[44].mxu0 %v6240_v35  ;;  %4252 = vmatmul.mubr.bf16.gmra.mrb[44].mxu1 %v6240_v35  ;;  %v753_v35 = vld [vmem:[%s9477_s1 + $0x150] sm:$0xff] }
 0x1b7   : > { %3489 = vmatprep.mubr.bf16.mxu0 %v6249_v36  ;;  %4261 = vmatprep.mubr.bf16.mxu1 %v6249_v36  ;;  %v1080_v36 = vld [vmem:[%s9478_s2 + $0x8] sm:$0xff] }
 0x1b8   : > { %1118 = vperm.xlu0 %7308, %v1080_v36   ;;  %v1100_v36 = vld [vmem:[%s9478_s2 + $0xa8] sm:$0xff] }
 0x1bc   : > { %1133 = vperm.xlu0 %7308, %v1083_v51   ;;  %v821_v51 = vld [vmem:[%s9477_s1 + $0x370] sm:$0xff] }
 0x1be   : > { %3490 = vmatmul.mubr.bf16.gmra.mrb[48].mxu0 %v6248_v39  ;;  %4262 = vmatmul.mubr.bf16.gmra.mrb[48].mxu1 %v6248_v39  ;;  %v7640_v39 = vld [vmem:[%s8368_s6 + $0x6e0] ss:$16 sps:$4 sm:$0xff]  }
 0x1bf   : > { %3499 = vmatprep.mubr.bf16.mxu0 %v6257_v40  ;;  %4271 = vmatprep.mubr.bf16.mxu1 %v6257_v40  ;;  %v7643_v40 = vld [vmem:[%s8368_s6 + $0x6e8] ss:$16 sps:$4 sm:$0xff]  }
 0x1c0   : > { %1143 = vperm.xlu0 %7308, %v1085_v1   ;;  %v714_v1 = vld [vmem:[%s9477_s1 + $0x18] sm:$0xff] }
 0x1c6   : > { %3500 = vmatmul.mubr.bf16.gmra.mrb[52].mxu0 %v6256_v43  ;;  %4272 = vmatmul.mubr.bf16.gmra.mrb[52].mxu1 %v6256_v43  ;;  %v6186_v43 = vcombine.low %v745_v21, %v749_v22  ;;  %v6218_v21 = vcombine.low %v777_v9, %v781_v10 }
 0x1c7   : > { %3509 = vmatprep.mubr.bf16.mxu0 %v6265_v44  ;;  %4281 = vmatprep.mubr.bf16.mxu1 %v6265_v44  ;;  %v6195_v44 = vcombine.high %v753_v35, %v757_v38 }
 0x1ce   : > { %3510 = vmatmul.mubr.bf16.gmra.mrb[56].mxu0 %v6264_v47  ;;  %4282 = vmatmul.mubr.bf16.gmra.mrb[56].mxu1 %v6264_v47  ;;  %v7654_v47 = vld [vmem:[%s8368_s6 + $0x724] ss:$16 sps:$4 sm:$0xff]  }
 0x1cf   : > { %3519 = vmatprep.mubr.bf16.mxu0 %v6273_v48  ;;  %4291 = vmatprep.mubr.bf16.mxu1 %v6273_v48  ;;  %v7657_v48 = vld [vmem:[%s8368_s6 + $0x72c] ss:$16 sps:$4 sm:$0xff]  }
 0x1d6   : > { %3520 = vmatmul.mubr.bf16.gmra.mrb[60].mxu0 %v6272_v52  ;;  %4292 = vmatmul.mubr.bf16.gmra.mrb[60].mxu1 %v6272_v52  ;;  %v1082_v52 = vld [vmem:[%s9478_s2 + $0x18] sm:$0xff] }
 0x1d7   : > { %3562 = vmatprep.mubr.bf16.mxu0 %v6155_v53  ;;  %4334 = vmatprep.mubr.bf16.mxu1 %v6155_v53  ;;  %v765_v53 = vld [vmem:[%s9477_s1 + $0x1b0] sm:$0xff] }
 0x1d8   : > { %1128 = vperm.xlu1 %7309, %v1082_v52   ;;  %v1109_v52 = vld [vmem:[%s9478_s2 + $0xf0] sm:$0xff] }
 0x1de   : > { %3563 = vmatmul.mubr.bf16.vlgmr.msra.gmra.mrb[0].mxu0 %v6154_v56  ;;  %4335 = vmatmul.mubr.bf16.vlgmr.msra.gmra.mrb[0].mxu1 %v6154_v56  ;;  %v7660_v56 = vld [vmem:[%s8368_s6 + $0x744] ss:$16 sps:$4 sm:$0xff]  }
 0x1df   : > { %3724 = vmatpush1.bf16.msra.mxu0 %v7598_v57  ;;  %4496 = vmatpush1.bf16.msra.mxu1 %v7601_v58  ;;  %v7663_v57 = vld [vmem:[%s8368_s6 + $0x74c] ss:$16 sps:$4 sm:$0xff]   ;;  %v6194_v58 = vcombine.low %v753_v35, %v757_v38  ;;  %v1101_v35 = vld [vmem:[%s9478_s2 + $0xb0] sm:$0xff] }
 0x1e0   : > { %3572 = vmatprep.mubr.bf16.mxu0 %v6163_v59  ;;  %4344 = vmatprep.mubr.bf16.mxu1 %v6163_v59  ;;  %v6203_v59 = vcombine.high %v761_v49, %v765_v53 }
 0x1e1   : > { %3725 = vmatprep.subr.bf16.mxu0 %v7606_v60  ;;  %4497 = vmatprep.subr.bf16.mxu1 %v7609_v61  ;;  %v7658_v60 = vld [vmem:[%s8368_s6 + $0x740] ss:$16 sps:$4 sm:$0xff]   ;;  %v7661_v61 = vld [vmem:[%s8368_s6 + $0x748] ss:$16 sps:$4 sm:$0xff]  }
 0x1e3   : > { %3726 = vmatpush1.bf16.msra.mxu0 %v7604_v63  ;;  %4498 = vmatpush1.bf16.msra.mxu1 %v7607_v0  ;;  %v7669_v63 = vld [vmem:[%s8368_s6 + $0x76c] ss:$16 sps:$4 sm:$0xff]   ;;  %v769_v0 = vld [vmem:[%s9477_s1 + $0x1d0] sm:$0xff] }
 0x1e4   : > { %3727 = vmatprep.subr.bf16.mxu0 %v7612_v2  ;;  %4499 = vmatprep.subr.bf16.mxu1 %v7615_v50  ;;  %v1084_v2 = vld [vmem:[%s9478_s2 + $0x28] sm:$0xff]  ;;  %v773_v50 = vld [vmem:[%s9477_s1 + $0x1f0] sm:$0xff] }
 0x1e5   : > { %1138 = vperm.xlu1 %7309, %v1084_v2   ;;  %v718_v2 = vld [vmem:[%s9477_s1 + $0x38] sm:$0xff] }
 0x1e6   : > { %3573 = vmatmul.mubr.bf16.gmra.mrb[4].mxu0 %v6162_v3  ;;  %4345 = vmatmul.mubr.bf16.gmra.mrb[4].mxu1 %v6162_v3  ;;  %v7664_v3 = vld [vmem:[%s8368_s6 + $0x760] ss:$16 sps:$4 sm:$0xff]  }
 0x1e7   : > { %3582 = vmatprep.mubr.bf16.mxu0 %v6171_v4  ;;  %4354 = vmatprep.mubr.bf16.mxu1 %v6171_v4  ;;  %v7667_v4 = vld [vmem:[%s8368_s6 + $0x768] ss:$16 sps:$4 sm:$0xff]  }
 0x1e8   : > { %3728 = vmatpush1.bf16.msra.mxu0 %v7610_v5  ;;  %4500 = vmatpush1.bf16.msra.mxu1 %v7613_v6  ;;  %v6202_v5 = vcombine.low %v761_v49, %v765_v53  ;;  %v6211_v6 = vcombine.high %v769_v0, %v773_v50  ;;  %v817_v49 = vld [vmem:[%s9477_s1 + $0x350] sm:$0xff]  ;;  %v1108_v53 = vld [vmem:[%s9478_s2 + $0xe8] sm:$0xff] }
 0x1e9   : > { %3729 = vmatprep.subr.bf16.mxu0 %v7618_v7  ;;  %4501 = vmatprep.subr.bf16.mxu1 %v7621_v8  ;;  %v1087_v7 = vld [vmem:[%s9478_s2 + $0x40] sm:$0xff]  ;;  %v1086_v8 = vld [vmem:[%s9478_s2 + $0x38] sm:$0xff] }
 0x1ea   : > { %1153 = vperm.xlu0 %7308, %v1087_v7   ;;  %1148 = vperm.xlu1 %7309, %v1086_v8   ;;  %v730_v8 = vld [vmem:[%s9477_s1 + $0x98] sm:$0xff] }
 0x1ec   : > { %3730 = vmatpush1.bf16.msra.mxu0 %v7616_v11  ;;  %4502 = vmatpush1.bf16.msra.mxu1 %v7619_v12  ;;  %v1089_v11 = vld [vmem:[%s9478_s2 + $0x50] sm:$0xff]  ;;  %v1088_v12 = vld [vmem:[%s9478_s2 + $0x48] sm:$0xff] }
 0x1ed   : > { %3731 = vmatprep.subr.bf16.mxu0 %v7624_v13  ;;  %4503 = vmatprep.subr.bf16.mxu1 %v7627_v14  ;;  %v6210_v13 = vcombine.low %v769_v0, %v773_v50  ;;  %v6219_v14 = vcombine.high %v777_v9, %v781_v10  ;;  %v734_v9 = vld [vmem:[%s9477_s1 + $0xb8] sm:$0xff] }
 0x1ee   : > { %3583 = vmatmul.mubr.bf16.gmra.mrb[8].mxu0 %v6170_v15  ;;  %4355 = vmatmul.mubr.bf16.gmra.mrb[8].mxu1 %v6170_v15  ;;  %v1091_v15 = vld [vmem:[%s9478_s2 + $0x60] sm:$0xff] }
 0x1ef   : > { %3592 = vmatprep.mubr.bf16.mxu0 %v6179_v16  ;;  %4364 = vmatprep.mubr.bf16.mxu1 %v6179_v16  ;;  %v1090_v16 = vld [vmem:[%s9478_s2 + $0x58] sm:$0xff] }
 0x1f0   : > { %3732 = vmatpush1.bf16.msra.mxu0 %v7622_v17  ;;  %4504 = vmatpush1.bf16.msra.mxu1 %v7625_v18  ;;  %v785_v17 = vld [vmem:[%s9477_s1 + $0x250] sm:$0xff] }
 0x1f1   : > { %3733 = vmatprep.subr.bf16.mxu0 %v7630_v19  ;;  %4505 = vmatprep.subr.bf16.mxu1 %v7633_v20  ;;  %v789_v18 = vld [vmem:[%s9477_s1 + $0x270] sm:$0xff]  ;;  %v1092_v20 = vld [vmem:[%s9478_s2 + $0x68] sm:$0xff] }
 0x1f2   : > { %1163 = vperm.xlu0 %7308, %v1089_v11   ;;  %1158 = vperm.xlu1 %7309, %v1088_v12   ;;  %v1093_v19 = vld [vmem:[%s9478_s2 + $0x70] sm:$0xff]  ;;  %v6227_v22 = vcombine.high %v785_v17, %v789_v18  ;;  %v6226_v29 = vcombine.low %v785_v17, %v789_v18  ;;  %v6173_v11 = vcombine.high %v730_v8, %v734_v9  ;;  %v738_v12 = vld [vmem:[%s9477_s1 + $0xd8] sm:$0xff] }
 0x1f3   : > { %v750_v17 = vld [vmem:[%s9477_s1 + $0x138] sm:$0xff] }
 0x1f4   : > { %3734 = vmatpush1.bf16.msra.mxu0 %v7628_v23  ;;  %4506 = vmatpush1.bf16.msra.mxu1 %v7631_v24  ;;  %v1095_v23 = vld [vmem:[%s9478_s2 + $0x80] sm:$0xff]  ;;  %v1094_v24 = vld [vmem:[%s9478_s2 + $0x78] sm:$0xff] }
 0x1f5   : > { %3735 = vmatprep.subr.bf16.mxu0 %v7636_v26  ;;  %4507 = vmatprep.subr.bf16.mxu1 %v7639_v27  ;;  %v797_v26 = vld [vmem:[%s9477_s1 + $0x2b0] sm:$0xff] }
 0x1f6   : > { %3593 = vmatmul.mubr.bf16.gmra.mrb[12].mxu0 %v6178_v28  ;;  %4365 = vmatmul.mubr.bf16.gmra.mrb[12].mxu1 %v6178_v28  ;;  %v1097_v27 = vld [vmem:[%s9478_s2 + $0x90] sm:$0xff]  ;;  %v1096_v28 = vld [vmem:[%s9478_s2 + $0x88] sm:$0xff]  ;;  %v6234_v37 = vcombine.low %v793_v25, %v797_v26 }
 0x1f7   : > { %3602 = vmatprep.mubr.bf16.mxu0 %v6187_v30  ;;  %4374 = vmatprep.mubr.bf16.mxu1 %v6187_v30  ;;  %v6235_v30 = vcombine.high %v793_v25, %v797_v26  ;;  %v766_v25 = vld [vmem:[%s9477_s1 + $0x1b8] sm:$0xff] }
 0x1f8   : > { %3736 = vmatpush1.bf16.msra.mxu0 %v7634_v31  ;;  %4508 = vmatpush1.bf16.msra.mxu1 %v7637_v32  ;;  %v1099_v31 = vld [vmem:[%s9478_s2 + $0xa0] sm:$0xff]  ;;  %v1098_v32 = vld [vmem:[%s9478_s2 + $0x98] sm:$0xff] }
 0x1f9   : > { %3737 = vmatprep.subr.bf16.mxu0 %v7642_v33  ;;  %4509 = vmatprep.subr.bf16.mxu1 %v7645_v34  ;;  %v801_v33 = vld [vmem:[%s9477_s1 + $0x2d0] sm:$0xff] }
 0x1fa   : > { %1173 = vperm.xlu0 %7308, %v1091_v15   ;;  %1168 = vperm.xlu1 %7309, %v1090_v16   ;;  %v805_v34 = vld [vmem:[%s9477_s1 + $0x2f0] sm:$0xff]  ;;  %v746_v16 = vld [vmem:[%s9477_s1 + $0x118] sm:$0xff] }
 0x1fb   : > { %v6243_v38 = vcombine.high %v801_v33, %v805_v34 }
 0x1fc   : > { %3738 = vmatpush1.bf16.msra.mxu0 %v7640_v39  ;;  %4510 = vmatpush1.bf16.msra.mxu1 %v7643_v40  ;;  %v1103_v39 = vld [vmem:[%s9478_s2 + $0xc0] sm:$0xff]  ;;  %v1102_v40 = vld [vmem:[%s9478_s2 + $0xb8] sm:$0xff] }
 0x1fd   : > { %3739 = vmatprep.subr.bf16.mxu0 %v7648_v41  ;;  %4511 = vmatprep.subr.bf16.mxu1 %v7651_v42  ;;  %v809_v41 = vld [vmem:[%s9477_s1 + $0x310] sm:$0xff] }
 0x1fe   : > { %3603 = vmatmul.mubr.bf16.gmra.mrb[16].mxu0 %v6186_v43  ;;  %4375 = vmatmul.mubr.bf16.gmra.mrb[16].mxu1 %v6186_v43  ;;  %v813_v42 = vld [vmem:[%s9477_s1 + $0x330] sm:$0xff] }
 0x1ff   : > { %3612 = vmatprep.mubr.bf16.mxu0 %v6195_v44  ;;  %4384 = vmatprep.mubr.bf16.mxu1 %v6195_v44  ;;  %v1105_v43 = vld [vmem:[%s9478_s2 + $0xd0] sm:$0xff]  ;;  %v1104_v44 = vld [vmem:[%s9478_s2 + $0xc8] sm:$0xff] }
 0x200   : > { %3740 = vmatpush1.bf16.msra.mxu0 %v7646_v45  ;;  %4512 = vmatpush1.bf16.msra.mxu1 %v7649_v46  ;;  %v6242_v45 = vcombine.low %v801_v33, %v805_v34  ;;  %v6251_v46 = vcombine.high %v809_v41, %v813_v42  ;;  %v782_v33 = vld [vmem:[%s9477_s1 + $0x238] sm:$0xff] }
 0x201   : > { %3741 = vmatprep.subr.bf16.mxu0 %v7654_v47  ;;  %4513 = vmatprep.subr.bf16.mxu1 %v7657_v48  ;;  %v1107_v47 = vld [vmem:[%s9478_s2 + $0xe0] sm:$0xff]  ;;  %v1106_v48 = vld [vmem:[%s9478_s2 + $0xd8] sm:$0xff] }
 0x202   : > { %1183 = vperm.xlu0 %7308, %v1093_v19   ;;  %1178 = vperm.xlu1 %7309, %v1092_v20   ;;  %v6189_v19 = vcombine.high %v746_v16, %v750_v17  ;;  %v754_v20 = vld [vmem:[%s9477_s1 + $0x158] sm:$0xff] }
 0x204   : > { %3742 = vmatpush1.bf16.msra.mxu0 %v7652_v54  ;;  %4514 = vmatpush1.bf16.msra.mxu1 %v7655_v55  ;;  %v6250_v54 = vcombine.low %v809_v41, %v813_v42  ;;  %v6259_v55 = vcombine.high %v817_v49, %v821_v51  ;;  %v798_v41 = vld [vmem:[%s9477_s1 + $0x2b8] sm:$0xff] }
 0x205   : > { %3743 = vmatprep.subr.bf16.mxu0 %v7660_v56  ;;  %4515 = vmatprep.subr.bf16.mxu1 %v7663_v57  ;;  %v1110_v56 = vld [vmem:[%s9478_s2 + $0xf8] sm:$0xff]  ;;  %v825_v57 = vld [vmem:[%s9477_s1 + $0x390] sm:$0xff] }
 0x206   : > { %3613 = vmatmul.mubr.bf16.gmra.mrb[20].mxu0 %v6194_v58  ;;  %4385 = vmatmul.mubr.bf16.gmra.mrb[20].mxu1 %v6194_v58  ;;  %v829_v58 = vld [vmem:[%s9477_s1 + $0x3b0] sm:$0xff] }
 0x207   : > { %3622 = vmatprep.mubr.bf16.mxu0 %v6203_v59  ;;  %4394 = vmatprep.mubr.bf16.mxu1 %v6203_v59  ;;  %v6258_v59 = vcombine.low %v817_v49, %v821_v51  ;;  %v814_v49 = vld [vmem:[%s9477_s1 + $0x338] sm:$0xff] }
 0x208   : > { %3744 = vmatpush1.bf16.msra.mxu0 %v7658_v60  ;;  %4516 = vmatpush1.bf16.msra.mxu1 %v7661_v61  ;;  %v6267_v60 = vcombine.high %v825_v57, %v829_v58  ;;  %v833_v61 = vld [vmem:[%s9477_s1 + $0x3d0] sm:$0xff] }
 0x209   : > { %3745 = vmatprep.subr.bf16.mxu0 %v7666_v62  ;;  %4517 = vmatprep.subr.bf16.mxu1 %v7669_v63  ;;  %v837_v62 = vld [vmem:[%s9477_s1 + $0x3f0] sm:$0xff]  ;;  %v6266_v63 = vcombine.low %v825_v57, %v829_v58  ;;  %v826_v57 = vld [vmem:[%s9477_s1 + $0x398] sm:$0xff] }
 0x20a   : > { %1193 = vperm.xlu0 %7308, %v1095_v23   ;;  %1188 = vperm.xlu1 %7309, %v1094_v24   ;;  %v6275_v0 = vcombine.high %v833_v61, %v837_v62  ;;  %v6274_v50 = vcombine.low %v833_v61, %v837_v62  ;;  %v762_v24 = vld [vmem:[%s9477_s1 + $0x198] sm:$0xff] }
 0x20b   : > { %v830_v58 = vld [vmem:[%s9477_s1 + $0x3b8] sm:$0xff] }
 0x20c   : > { %3746 = vmatpush1.bf16.msra.mxu0 %v7664_v3  ;;  %4518 = vmatpush1.bf16.msra.mxu1 %v7667_v4  ;;  %v6157_v3 = vcombine.high %v714_v1, %v718_v2  ;;  %v722_v4 = vld [vmem:[%s9477_s1 + $0x58] sm:$0xff] }
 0x20d   : > { %v834_v61 = vld [vmem:[%s9477_s1 + $0x3d8] sm:$0xff] }
 0x20e   : > { %3623 = vmatmul.mubr.bf16.gmra.mrb[24].mxu0 %v6202_v5  ;;  %4395 = vmatmul.mubr.bf16.gmra.mrb[24].mxu1 %v6202_v5  ;;  %v726_v5 = vld [vmem:[%s9477_s1 + $0x78] sm:$0xff] }
 0x20f   : > { %3632 = vmatprep.mubr.bf16.mxu0 %v6211_v6  ;;  %4404 = vmatprep.mubr.bf16.mxu1 %v6211_v6  ;;  %v6156_v6 = vcombine.low %v714_v1, %v718_v2  ;;  %v6165_v7 = vcombine.high %v722_v4, %v726_v5  ;;  %v6164_v10 = vcombine.low %v722_v4, %v726_v5  ;;  %v838_v62 = vld [vmem:[%s9477_s1 + $0x3f8] sm:$0xff]  ;;  %v1114_v2 = vpop.permute.xlu0 %1113 }
 0x210   : > { %1203 = vperm.xlu0 %7308, %v1097_v27   ;;  %1198 = vperm.xlu1 %7309, %v1096_v28   ;;  %v6205_v27 = vcombine.high %v762_v24, %v766_v25  ;;  %v770_v28 = vld [vmem:[%s9477_s1 + $0x1d8] sm:$0xff]  ;;  %v6276_v1 = vcombine.low %v834_v61, %v838_v62 }
 0x214   : > { %1213 = vperm.xlu0 %7308, %v1099_v31   ;;  %1208 = vperm.xlu1 %7309, %v1098_v32   ;;  %v778_v32 = vld [vmem:[%s9477_s1 + $0x218] sm:$0xff] }
 0x216   : > { %3633 = vmatmul.mubr.bf16.gmra.mrb[28].mxu0 %v6210_v13  ;;  %4405 = vmatmul.mubr.bf16.gmra.mrb[28].mxu1 %v6210_v13  ;;  %v742_v13 = vld [vmem:[%s9477_s1 + $0xf8] sm:$0xff] }
 0x217   : > { %3642 = vmatprep.mubr.bf16.mxu0 %v6219_v14  ;;  %4414 = vmatprep.mubr.bf16.mxu1 %v6219_v14  ;;  %v6172_v14 = vcombine.low %v730_v8, %v734_v9  ;;  %v6181_v15 = vcombine.high %v738_v12, %v742_v13  ;;  %v6180_v18 = vcombine.low %v738_v12, %v742_v13  ;;  %v7672_v8 = vld [vmem:[%s9479_s3 + $0x4] ss:$8 sps:$4 sm:$0xff]  }
 0x218   : > { %1223 = vperm.xlu0 %7308, %v1101_v35   ;;  %1218 = vperm.xlu1 %7309, %v1100_v36   ;;  %v6221_v35 = vcombine.high %v778_v32, %v782_v33  ;;  %v786_v36 = vld [vmem:[%s9477_s1 + $0x258] sm:$0xff] }
 0x21c   : > { %1233 = vperm.xlu0 %7308, %v1103_v39   ;;  %1228 = vperm.xlu1 %7309, %v1102_v40   ;;  %v794_v40 = vld [vmem:[%s9477_s1 + $0x298] sm:$0xff] }
 0x21e   : > { %3643 = vmatmul.mubr.bf16.gmra.mrb[32].mxu0 %v6218_v21  ;;  %4415 = vmatmul.mubr.bf16.gmra.mrb[32].mxu1 %v6218_v21  ;;  %v758_v21 = vld [vmem:[%s9477_s1 + $0x178] sm:$0xff] }
 0x21f   : > { %3652 = vmatprep.mubr.bf16.mxu0 %v6227_v22  ;;  %4424 = vmatprep.mubr.bf16.mxu1 %v6227_v22  ;;  %v6188_v22 = vcombine.low %v746_v16, %v750_v17  ;;  %v6197_v23 = vcombine.high %v754_v20, %v758_v21  ;;  %v6196_v26 = vcombine.low %v754_v20, %v758_v21 }
 0x220   : > { %1243 = vperm.xlu0 %7308, %v1105_v43   ;;  %1238 = vperm.xlu1 %7309, %v1104_v44   ;;  %v6237_v43 = vcombine.high %v794_v40, %v798_v41  ;;  %v802_v44 = vld [vmem:[%s9477_s1 + $0x2d8] sm:$0xff] }
 0x224   : > { %1253 = vperm.xlu0 %7308, %v1107_v47   ;;  %1248 = vperm.xlu1 %7309, %v1106_v48   ;;  %v810_v48 = vld [vmem:[%s9477_s1 + $0x318] sm:$0xff] }
 0x226   : > { %3653 = vmatmul.mubr.bf16.gmra.mrb[36].mxu0 %v6226_v29  ;;  %4425 = vmatmul.mubr.bf16.gmra.mrb[36].mxu1 %v6226_v29  ;;  %v774_v29 = vld [vmem:[%s9477_s1 + $0x1f8] sm:$0xff] }
 0x227   : > { %3662 = vmatprep.mubr.bf16.mxu0 %v6235_v30  ;;  %4434 = vmatprep.mubr.bf16.mxu1 %v6235_v30  ;;  %v6204_v30 = vcombine.low %v762_v24, %v766_v25  ;;  %v6213_v31 = vcombine.high %v770_v28, %v774_v29  ;;  %v6212_v34 = vcombine.low %v770_v28, %v774_v29 }
 0x228   : > { %1263 = vperm.xlu0 %7308, %v1109_v52   ;;  %1258 = vperm.xlu1 %7309, %v1108_v53   ;;  %v6253_v52 = vcombine.high %v810_v48, %v814_v49  ;;  %v818_v53 = vld [vmem:[%s9477_s1 + $0x358] sm:$0xff] }
 0x22c   : > { %1268 = vperm.xlu1 %7309, %v1110_v56  }
 0x22e   : > { %3663 = vmatmul.mubr.bf16.gmra.mrb[40].mxu0 %v6234_v37  ;;  %4435 = vmatmul.mubr.bf16.gmra.mrb[40].mxu1 %v6234_v37  ;;  %v790_v37 = vld [vmem:[%s9477_s1 + $0x278] sm:$0xff] }
 0x22f   : > { %3672 = vmatprep.mubr.bf16.mxu0 %v6243_v38  ;;  %4444 = vmatprep.mubr.bf16.mxu1 %v6243_v38  ;;  %v6220_v38 = vcombine.low %v778_v32, %v782_v33  ;;  %v6229_v39 = vcombine.high %v786_v36, %v790_v37  ;;  %v6228_v42 = vcombine.low %v786_v36, %v790_v37 }
 0x236   : > { %3673 = vmatmul.mubr.bf16.gmra.mrb[44].mxu0 %v6242_v45  ;;  %4445 = vmatmul.mubr.bf16.gmra.mrb[44].mxu1 %v6242_v45  ;;  %v806_v45 = vld [vmem:[%s9477_s1 + $0x2f8] sm:$0xff] }
 0x237   : > { %3682 = vmatprep.mubr.bf16.mxu0 %v6251_v46  ;;  %4454 = vmatprep.mubr.bf16.mxu1 %v6251_v46  ;;  %v6236_v46 = vcombine.low %v794_v40, %v798_v41  ;;  %v6245_v47 = vcombine.high %v802_v44, %v806_v45  ;;  %v6244_v51 = vcombine.low %v802_v44, %v806_v45 }
 0x23e   : > { %3683 = vmatmul.mubr.bf16.gmra.mrb[48].mxu0 %v6250_v54  ;;  %4455 = vmatmul.mubr.bf16.gmra.mrb[48].mxu1 %v6250_v54  ;;  %v822_v54 = vld [vmem:[%s9477_s1 + $0x378] sm:$0xff] }
 0x23f   : > { %3692 = vmatprep.mubr.bf16.mxu0 %v6259_v55  ;;  %4464 = vmatprep.mubr.bf16.mxu1 %v6259_v55  ;;  %v6252_v55 = vcombine.low %v810_v48, %v814_v49  ;;  %v6261_v56 = vcombine.high %v818_v53, %v822_v54 }
 0x246   : > { %3693 = vmatmul.mubr.bf16.gmra.mrb[52].mxu0 %v6258_v59  ;;  %4465 = vmatmul.mubr.bf16.gmra.mrb[52].mxu1 %v6258_v59  ;;  %v6260_v59 = vcombine.low %v818_v53, %v822_v54 }
 0x247   : > { %3702 = vmatprep.mubr.bf16.mxu0 %v6267_v60  ;;  %4474 = vmatprep.mubr.bf16.mxu1 %v6267_v60  ;;  %v6269_v60 = vcombine.high %v826_v57, %v830_v58 }
 0x24e   : > { %3703 = vmatmul.mubr.bf16.gmra.mrb[56].mxu0 %v6266_v63  ;;  %4475 = vmatmul.mubr.bf16.gmra.mrb[56].mxu1 %v6266_v63  ;;  %v6268_v63 = vcombine.low %v826_v57, %v830_v58 }
 0x24f   : > { %3712 = vmatprep.mubr.bf16.mxu0 %v6275_v0  ;;  %4484 = vmatprep.mubr.bf16.mxu1 %v6275_v0  ;;  %v6277_v0 = vcombine.high %v834_v61, %v838_v62 }
 0x256   : > { %3713 = vmatmul.mubr.bf16.gmra.mrb[60].mxu0 %v6274_v50  ;;  %4485 = vmatmul.mubr.bf16.gmra.mrb[60].mxu1 %v6274_v50  ;;  %v1119_v50 = vpop.permute.xlu0 %1118 }
 0x257   : > { %6518 = vmatprep.mubr.msk.bf16.mxu0 %vm3095_vm0, %v6157_v3  ;;  %6534 = vmatprep.mubr.msk.bf16.mxu1 %vm3095_vm0, %v6157_v3  ;;  %v1124_v3 = vpop.permute.xlu1 %1123 }
 0x25b   : > { %v1129_v25 = vpop.permute.xlu1 %1128 }
 0x25e   : > { %3756 = vmatmul.mubr.bf16.vlgmr.msra.gmra.mrb[0].mxu0 %v6156_v6  ;;  %4528 = vmatmul.mubr.bf16.vlgmr.msra.gmra.mrb[0].mxu1 %v6156_v6 }
 0x25f   : > { %6519 = vmatprep.mubr.msk.bf16.mxu0 %vm3095_vm0, %v6165_v7  ;;  %6535 = vmatprep.mubr.msk.bf16.mxu1 %vm3095_vm0, %v6165_v7 }
 0x266   : > { %3766 = vmatmul.mubr.bf16.gmra.mrb[4].mxu0 %v6164_v10  ;;  %4538 = vmatmul.mubr.bf16.gmra.mrb[4].mxu1 %v6164_v10 }
 0x267   : > { %6520 = vmatprep.mubr.msk.bf16.mxu0 %vm3095_vm0, %v6173_v11  ;;  %6536 = vmatprep.mubr.msk.bf16.mxu1 %vm3095_vm0, %v6173_v11 }
 0x26e   : > { %3776 = vmatmul.mubr.bf16.gmra.mrb[8].mxu0 %v6172_v14  ;;  %4548 = vmatmul.mubr.bf16.gmra.mrb[8].mxu1 %v6172_v14 }
 0x26f   : > { %6521 = vmatprep.mubr.msk.bf16.mxu0 %vm3095_vm0, %v6181_v15  ;;  %6537 = vmatprep.mubr.msk.bf16.mxu1 %vm3095_vm0, %v6181_v15 }
 0x276   : > { %3786 = vmatmul.mubr.bf16.gmra.mrb[12].mxu0 %v6180_v18  ;;  %4558 = vmatmul.mubr.bf16.gmra.mrb[12].mxu1 %v6180_v18 }
 0x277   : > { %6522 = vmatprep.mubr.msk.bf16.mxu0 %vm3095_vm0, %v6189_v19  ;;  %6538 = vmatprep.mubr.msk.bf16.mxu1 %vm3095_vm0, %v6189_v19 }
 0x27e   : > { %3796 = vmatmul.mubr.bf16.gmra.mrb[16].mxu0 %v6188_v22  ;;  %4568 = vmatmul.mubr.bf16.gmra.mrb[16].mxu1 %v6188_v22 }
 0x27f   : > { %6523 = vmatprep.mubr.msk.bf16.mxu0 %vm3095_vm0, %v6197_v23  ;;  %6539 = vmatprep.mubr.msk.bf16.mxu1 %vm3095_vm0, %v6197_v23 }
 0x286   : > { %3806 = vmatmul.mubr.bf16.gmra.mrb[20].mxu0 %v6196_v26  ;;  %4578 = vmatmul.mubr.bf16.gmra.mrb[20].mxu1 %v6196_v26 }
 0x287   : > { %6524 = vmatprep.mubr.msk.bf16.mxu0 %vm3095_vm0, %v6205_v27  ;;  %6540 = vmatprep.mubr.msk.bf16.mxu1 %vm3095_vm0, %v6205_v27 }
 0x28e   : > { %3816 = vmatmul.mubr.bf16.gmra.mrb[24].mxu0 %v6204_v30  ;;  %4588 = vmatmul.mubr.bf16.gmra.mrb[24].mxu1 %v6204_v30 }
 0x28f   : > { %6525 = vmatprep.mubr.msk.bf16.mxu0 %vm3095_vm0, %v6213_v31  ;;  %6541 = vmatprep.mubr.msk.bf16.mxu1 %vm3095_vm0, %v6213_v31 }
 0x296   : > { %3826 = vmatmul.mubr.bf16.gmra.mrb[28].mxu0 %v6212_v34  ;;  %4598 = vmatmul.mubr.bf16.gmra.mrb[28].mxu1 %v6212_v34 }
 0x297   : > { %6526 = vmatprep.mubr.msk.bf16.mxu0 %vm3095_vm0, %v6221_v35  ;;  %6542 = vmatprep.mubr.msk.bf16.mxu1 %vm3095_vm0, %v6221_v35 }
 0x29e   : > { %3836 = vmatmul.mubr.bf16.gmra.mrb[32].mxu0 %v6220_v38  ;;  %4608 = vmatmul.mubr.bf16.gmra.mrb[32].mxu1 %v6220_v38 }
 0x29f   : > { %6527 = vmatprep.mubr.msk.bf16.mxu0 %vm3095_vm0, %v6229_v39  ;;  %6543 = vmatprep.mubr.msk.bf16.mxu1 %vm3095_vm0, %v6229_v39 }
 0x2a6   : > { %3846 = vmatmul.mubr.bf16.gmra.mrb[36].mxu0 %v6228_v42  ;;  %4618 = vmatmul.mubr.bf16.gmra.mrb[36].mxu1 %v6228_v42 }
 0x2a7   : > { %6528 = vmatprep.mubr.msk.bf16.mxu0 %vm3095_vm0, %v6237_v43  ;;  %6544 = vmatprep.mubr.msk.bf16.mxu1 %vm3095_vm0, %v6237_v43 }
 0x2ae   : > { %3856 = vmatmul.mubr.bf16.gmra.mrb[40].mxu0 %v6236_v46  ;;  %4628 = vmatmul.mubr.bf16.gmra.mrb[40].mxu1 %v6236_v46  ;;  %v1134_v46 = vpop.permute.xlu0 %1133 }
 0x2af   : > { %6529 = vmatprep.mubr.msk.bf16.mxu0 %vm3095_vm0, %v6245_v47  ;;  %6545 = vmatprep.mubr.msk.bf16.mxu1 %vm3095_vm0, %v6245_v47  ;;  %v1139_v47 = vpop.permute.xlu1 %1138 }
 0x2b6   : > { %3866 = vmatmul.mubr.bf16.gmra.mrb[44].mxu0 %v6244_v51  ;;  %4638 = vmatmul.mubr.bf16.gmra.mrb[44].mxu1 %v6244_v51 }
 0x2b7   : > { %6530 = vmatprep.mubr.msk.bf16.mxu0 %vm3095_vm0, %v6253_v52  ;;  %6546 = vmatprep.mubr.msk.bf16.mxu1 %vm3095_vm0, %v6253_v52 }
 0x2be   : > { %3876 = vmatmul.mubr.bf16.gmra.mrb[48].mxu0 %v6252_v55  ;;  %4648 = vmatmul.mubr.bf16.gmra.mrb[48].mxu1 %v6252_v55 }
 0x2bf   : > { %6531 = vmatprep.mubr.msk.bf16.mxu0 %vm3095_vm0, %v6261_v56  ;;  %6547 = vmatprep.mubr.msk.bf16.mxu1 %vm3095_vm0, %v6261_v56 }
 0x2c6   : > { %3886 = vmatmul.mubr.bf16.gmra.mrb[52].mxu0 %v6260_v59  ;;  %4658 = vmatmul.mubr.bf16.gmra.mrb[52].mxu1 %v6260_v59 }
 0x2c7   : > { %6532 = vmatprep.mubr.msk.bf16.mxu0 %vm3095_vm0, %v6269_v60  ;;  %6548 = vmatprep.mubr.msk.bf16.mxu1 %vm3095_vm0, %v6269_v60 }
 0x2ce   : > { %3896 = vmatmul.mubr.bf16.gmra.mrb[56].mxu0 %v6268_v63  ;;  %4668 = vmatmul.mubr.bf16.gmra.mrb[56].mxu1 %v6268_v63 }
 0x2cf   : > { %6533 = vmatprep.mubr.msk.bf16.mxu0 %vm3095_vm0, %v6277_v0  ;;  %6549 = vmatprep.mubr.msk.bf16.mxu1 %vm3095_vm0, %v6277_v0 }
 0x2d6   : > { %3906 = vmatmul.mubr.bf16.gmra.mrb[60].mxu0 %v6276_v1  ;;  %4678 = vmatmul.mubr.bf16.gmra.mrb[60].mxu1 %v6276_v1 }
 0x2d7   : > { %5000 = vmatprep.mubr.bf16.mxu0 %v7672_v8  ;;  %5213 = vmatprep.mubr.bf16.mxu1 %v7672_v8 }
 0x331   : > { %v3757_v4 = vpop.f32.mrb[0].mxu0  ;;  %v4529_v5 = vpop.f32.mrb[0].mxu1 }
 0x332   : > { %v3759_v6 = vpop.f32.mrb[1].mxu0  ;;  %v4531_v7 = vpop.f32.mrb[1].mxu1  ;;  %v6734_v9 = vadd.f32 %v3757_v4, %v1114_v2  ;;  %v6798_v12 = vadd.f32 %v4529_v5, %v1114_v2 }
 0x333   : > { %v3761_v10 = vpop.f32.mrb[2].mxu0  ;;  %v4533_v11 = vpop.f32.mrb[2].mxu1  ;;  %v6735_v17 = vadd.f32 %v3759_v6, %v1114_v2  ;;  %v6799_v18 = vadd.f32 %v4531_v7, %v1114_v2 }
 0x334   : > { %v6736_v13 = vadd.f32 %v3761_v10, %v1119_v50  ;;  %v6800_v14 = vadd.f32 %v4533_v11, %v1119_v50  ;;  %v3763_v15 = vpop.f32.mrb[3].mxu0  ;;  %v4535_v16 = vpop.f32.mrb[3].mxu1 }
 0x335   : > { %v6737_v19 = vadd.f32 %v3763_v15, %v1119_v50  ;;  %v6801_v20 = vadd.f32 %v4535_v16, %v1119_v50  ;;  %v1144_v4 = vpop.permute.xlu0 %1143  ;;  %v1149_v5 = vpop.permute.xlu1 %1148 }
 0x336   : > { %v4688_v21 = vpack.c.bf16 %v6736_v13, %v6734_v9  ;;  %v4690_v22 = vpack.c.bf16 %v6800_v14, %v6798_v12 }
 0x337   : > { %v4689_v23 = vpack.c.bf16 %v6737_v19, %v6735_v17  ;;  %v4691_v24 = vpack.c.bf16 %v6801_v20, %v6799_v18 }
 0x339   : > { %v3767_v26 = vpop.f32.mrb[4].mxu0  ;;  %v4539_v27 = vpop.f32.mrb[4].mxu1  ;;  %4968 = vmatprep.subr.bf16.mxu0 %v4689_v23  ;;  %5181 = vmatprep.subr.bf16.mxu1 %v4691_v24 }
 0x33a   : > { %v3769_v28 = vpop.f32.mrb[5].mxu0  ;;  %v4541_v29 = vpop.f32.mrb[5].mxu1  ;;  %4969 = vmatpush1.bf16.msra.mxu0 %v4688_v21  ;;  %5182 = vmatpush1.bf16.msra.mxu1 %v4690_v22  ;;  %v6738_v32 = vadd.f32 %v3767_v26, %v1124_v3  ;;  %v6802_v33 = vadd.f32 %v4539_v27, %v1124_v3 }
 0x33b   : > { %v3771_v30 = vpop.f32.mrb[6].mxu0  ;;  %v4543_v31 = vpop.f32.mrb[6].mxu1  ;;  %v6739_v38 = vadd.f32 %v3769_v28, %v1124_v3  ;;  %v6803_v39 = vadd.f32 %v4541_v29, %v1124_v3 }
 0x33c   : > { %v6740_v34 = vadd.f32 %v3771_v30, %v1129_v25  ;;  %v6804_v35 = vadd.f32 %v4543_v31, %v1129_v25  ;;  %v3773_v36 = vpop.f32.mrb[7].mxu0  ;;  %v4545_v37 = vpop.f32.mrb[7].mxu1 }
 0x33d   : > { %v6741_v40 = vadd.f32 %v3773_v36, %v1129_v25  ;;  %v6805_v41 = vadd.f32 %v4545_v37, %v1129_v25  ;;  %v1154_v26 = vpop.permute.xlu0 %1153  ;;  %v1159_v27 = vpop.permute.xlu1 %1158 }
 0x33e   : > { %v4692_v42 = vpack.c.bf16 %v6740_v34, %v6738_v32  ;;  %v4694_v43 = vpack.c.bf16 %v6804_v35, %v6802_v33 }
 0x33f   : > { %v4693_v44 = vpack.c.bf16 %v6741_v40, %v6739_v38  ;;  %v4695_v45 = vpack.c.bf16 %v6805_v41, %v6803_v39 }
 0x341   : > { %v3777_v48 = vpop.f32.mrb[8].mxu0  ;;  %v4549_v49 = vpop.f32.mrb[8].mxu1  ;;  %4970 = vmatprep.subr.bf16.mxu0 %v4693_v44  ;;  %5183 = vmatprep.subr.bf16.mxu1 %v4695_v45 }
 0x342   : > { %v3779_v51 = vpop.f32.mrb[9].mxu0  ;;  %v4551_v52 = vpop.f32.mrb[9].mxu1  ;;  %4971 = vmatpush1.bf16.msra.mxu0 %v4692_v42  ;;  %5184 = vmatpush1.bf16.msra.mxu1 %v4694_v43  ;;  %v6742_v55 = vadd.f32 %v3777_v48, %v1134_v46  ;;  %v6806_v56 = vadd.f32 %v4549_v49, %v1134_v46 }
 0x343   : > { %v3781_v53 = vpop.f32.mrb[10].mxu0  ;;  %v4553_v54 = vpop.f32.mrb[10].mxu1  ;;  %v6743_v61 = vadd.f32 %v3779_v51, %v1134_v46  ;;  %v6807_v62 = vadd.f32 %v4551_v52, %v1134_v46 }
 0x344   : > { %v6744_v57 = vadd.f32 %v3781_v53, %v1139_v47  ;;  %v6808_v58 = vadd.f32 %v4553_v54, %v1139_v47  ;;  %v3783_v59 = vpop.f32.mrb[11].mxu0  ;;  %v4555_v60 = vpop.f32.mrb[11].mxu1 }
 0x345   : > { %v6745_v63 = vadd.f32 %v3783_v59, %v1139_v47  ;;  %v6809_v0 = vadd.f32 %v4555_v60, %v1139_v47  ;;  %v1164_v48 = vpop.permute.xlu0 %1163  ;;  %v1169_v49 = vpop.permute.xlu1 %1168 }
 0x346   : > { %v4696_v1 = vpack.c.bf16 %v6744_v57, %v6742_v55  ;;  %v4698_v2 = vpack.c.bf16 %v6808_v58, %v6806_v56 }
 0x347   : > { %v4697_v50 = vpack.c.bf16 %v6745_v63, %v6743_v61  ;;  %v4699_v3 = vpack.c.bf16 %v6809_v0, %v6807_v62 }
 0x349   : > { %v3787_v6 = vpop.f32.mrb[12].mxu0  ;;  %v4559_v7 = vpop.f32.mrb[12].mxu1  ;;  %4972 = vmatprep.subr.bf16.mxu0 %v4697_v50  ;;  %5185 = vmatprep.subr.bf16.mxu1 %v4699_v3 }
 0x34a   : > { %v3789_v8 = vpop.f32.mrb[13].mxu0  ;;  %v4561_v9 = vpop.f32.mrb[13].mxu1  ;;  %4973 = vmatpush1.bf16.msra.mxu0 %v4696_v1  ;;  %5186 = vmatpush1.bf16.msra.mxu1 %v4698_v2  ;;  %v6746_v12 = vadd.f32 %v3787_v6, %v1144_v4  ;;  %v6810_v13 = vadd.f32 %v4559_v7, %v1144_v4 }
 0x34b   : > { %v3791_v10 = vpop.f32.mrb[14].mxu0  ;;  %v4563_v11 = vpop.f32.mrb[14].mxu1  ;;  %v6747_v18 = vadd.f32 %v3789_v8, %v1144_v4  ;;  %v6811_v19 = vadd.f32 %v4561_v9, %v1144_v4 }
 0x34c   : > { %v6748_v14 = vadd.f32 %v3791_v10, %v1149_v5  ;;  %v6812_v15 = vadd.f32 %v4563_v11, %v1149_v5  ;;  %v3793_v16 = vpop.f32.mrb[15].mxu0  ;;  %v4565_v17 = vpop.f32.mrb[15].mxu1 }
 0x34d   : > { %v6749_v20 = vadd.f32 %v3793_v16, %v1149_v5  ;;  %v6813_v21 = vadd.f32 %v4565_v17, %v1149_v5  ;;  %v1174_v6 = vpop.permute.xlu0 %1173  ;;  %v1179_v7 = vpop.permute.xlu1 %1178 }
 0x34e   : > { %v4700_v22 = vpack.c.bf16 %v6748_v14, %v6746_v12  ;;  %v4702_v23 = vpack.c.bf16 %v6812_v15, %v6810_v13 }
 0x34f   : > { %v4701_v24 = vpack.c.bf16 %v6749_v20, %v6747_v18  ;;  %v4703_v25 = vpack.c.bf16 %v6813_v21, %v6811_v19 }
 0x351   : > { %v3797_v28 = vpop.f32.mrb[16].mxu0  ;;  %v4569_v29 = vpop.f32.mrb[16].mxu1  ;;  %4974 = vmatprep.subr.bf16.mxu0 %v4701_v24  ;;  %5187 = vmatprep.subr.bf16.mxu1 %v4703_v25 }
 0x352   : > { %v3799_v30 = vpop.f32.mrb[17].mxu0  ;;  %v4571_v31 = vpop.f32.mrb[17].mxu1  ;;  %4975 = vmatpush1.bf16.msra.mxu0 %v4700_v22  ;;  %5188 = vmatpush1.bf16.msra.mxu1 %v4702_v23  ;;  %v6750_v34 = vadd.f32 %v3797_v28, %v1154_v26  ;;  %v6814_v35 = vadd.f32 %v4569_v29, %v1154_v26 }
 0x353   : > { %v3801_v32 = vpop.f32.mrb[18].mxu0  ;;  %v4573_v33 = vpop.f32.mrb[18].mxu1  ;;  %v6751_v40 = vadd.f32 %v3799_v30, %v1154_v26  ;;  %v6815_v41 = vadd.f32 %v4571_v31, %v1154_v26 }
 0x354   : > { %v6752_v36 = vadd.f32 %v3801_v32, %v1159_v27  ;;  %v6816_v37 = vadd.f32 %v4573_v33, %v1159_v27  ;;  %v3803_v38 = vpop.f32.mrb[19].mxu0  ;;  %v4575_v39 = vpop.f32.mrb[19].mxu1 }
 0x355   : > { %v6753_v42 = vadd.f32 %v3803_v38, %v1159_v27  ;;  %v6817_v43 = vadd.f32 %v4575_v39, %v1159_v27  ;;  %v1184_v28 = vpop.permute.xlu0 %1183  ;;  %v1189_v29 = vpop.permute.xlu1 %1188 }
 0x356   : > { %v4704_v44 = vpack.c.bf16 %v6752_v36, %v6750_v34  ;;  %v4706_v45 = vpack.c.bf16 %v6816_v37, %v6814_v35 }
 0x357   : > { %v4705_v46 = vpack.c.bf16 %v6753_v42, %v6751_v40  ;;  %v4707_v47 = vpack.c.bf16 %v6817_v43, %v6815_v41 }
 0x359   : > { %v3807_v51 = vpop.f32.mrb[20].mxu0  ;;  %v4579_v52 = vpop.f32.mrb[20].mxu1  ;;  %4976 = vmatprep.subr.bf16.mxu0 %v4705_v46  ;;  %5189 = vmatprep.subr.bf16.mxu1 %v4707_v47 }
 0x35a   : > { %v3809_v53 = vpop.f32.mrb[21].mxu0  ;;  %v4581_v54 = vpop.f32.mrb[21].mxu1  ;;  %4977 = vmatpush1.bf16.msra.mxu0 %v4704_v44  ;;  %5190 = vmatpush1.bf16.msra.mxu1 %v4706_v45  ;;  %v6754_v57 = vadd.f32 %v3807_v51, %v1164_v48  ;;  %v6818_v58 = vadd.f32 %v4579_v52, %v1164_v48 }
 0x35b   : > { %v3811_v55 = vpop.f32.mrb[22].mxu0  ;;  %v4583_v56 = vpop.f32.mrb[22].mxu1  ;;  %v6755_v63 = vadd.f32 %v3809_v53, %v1164_v48  ;;  %v6819_v0 = vadd.f32 %v4581_v54, %v1164_v48 }
 0x35c   : > { %v6756_v59 = vadd.f32 %v3811_v55, %v1169_v49  ;;  %v6820_v60 = vadd.f32 %v4583_v56, %v1169_v49  ;;  %v3813_v61 = vpop.f32.mrb[23].mxu0  ;;  %v4585_v62 = vpop.f32.mrb[23].mxu1 }
 0x35d   : > { %v6757_v1 = vadd.f32 %v3813_v61, %v1169_v49  ;;  %v6821_v2 = vadd.f32 %v4585_v62, %v1169_v49  ;;  %v1194_v51 = vpop.permute.xlu0 %1193  ;;  %v1199_v52 = vpop.permute.xlu1 %1198 }
 0x35e   : > { %v4708_v50 = vpack.c.bf16 %v6756_v59, %v6754_v57  ;;  %v4710_v3 = vpack.c.bf16 %v6820_v60, %v6818_v58 }
 0x35f   : > { %v4709_v4 = vpack.c.bf16 %v6757_v1, %v6755_v63  ;;  %v4711_v5 = vpack.c.bf16 %v6821_v2, %v6819_v0 }
 0x361   : > { %v3817_v8 = vpop.f32.mrb[24].mxu0  ;;  %v4589_v9 = vpop.f32.mrb[24].mxu1  ;;  %4978 = vmatprep.subr.bf16.mxu0 %v4709_v4  ;;  %5191 = vmatprep.subr.bf16.mxu1 %v4711_v5 }
 0x362   : > { %v3819_v10 = vpop.f32.mrb[25].mxu0  ;;  %v4591_v11 = vpop.f32.mrb[25].mxu1  ;;  %4979 = vmatpush1.bf16.msra.mxu0 %v4708_v50  ;;  %5192 = vmatpush1.bf16.msra.mxu1 %v4710_v3  ;;  %v6758_v14 = vadd.f32 %v3817_v8, %v1174_v6  ;;  %v6822_v15 = vadd.f32 %v4589_v9, %v1174_v6 }
 0x363   : > { %v3821_v12 = vpop.f32.mrb[26].mxu0  ;;  %v4593_v13 = vpop.f32.mrb[26].mxu1  ;;  %v6759_v20 = vadd.f32 %v3819_v10, %v1174_v6  ;;  %v6823_v21 = vadd.f32 %v4591_v11, %v1174_v6 }
 0x364   : > { %v6760_v16 = vadd.f32 %v3821_v12, %v1179_v7  ;;  %v6824_v17 = vadd.f32 %v4593_v13, %v1179_v7  ;;  %v3823_v18 = vpop.f32.mrb[27].mxu0  ;;  %v4595_v19 = vpop.f32.mrb[27].mxu1 }
 0x365   : > { %v6761_v22 = vadd.f32 %v3823_v18, %v1179_v7  ;;  %v6825_v23 = vadd.f32 %v4595_v19, %v1179_v7  ;;  %v1204_v8 = vpop.permute.xlu0 %1203  ;;  %v1209_v9 = vpop.permute.xlu1 %1208 }
 0x366   : > { %v4712_v24 = vpack.c.bf16 %v6760_v16, %v6758_v14  ;;  %v4714_v25 = vpack.c.bf16 %v6824_v17, %v6822_v15 }
 0x367   : > { %v4713_v26 = vpack.c.bf16 %v6761_v22, %v6759_v20  ;;  %v4715_v27 = vpack.c.bf16 %v6825_v23, %v6823_v21 }
 0x369   : > { %v3827_v30 = vpop.f32.mrb[28].mxu0  ;;  %v4599_v31 = vpop.f32.mrb[28].mxu1  ;;  %4980 = vmatprep.subr.bf16.mxu0 %v4713_v26  ;;  %5193 = vmatprep.subr.bf16.mxu1 %v4715_v27 }
 0x36a   : > { %v3829_v32 = vpop.f32.mrb[29].mxu0  ;;  %v4601_v33 = vpop.f32.mrb[29].mxu1  ;;  %4981 = vmatpush1.bf16.msra.mxu0 %v4712_v24  ;;  %5194 = vmatpush1.bf16.msra.mxu1 %v4714_v25  ;;  %v6762_v36 = vadd.f32 %v3827_v30, %v1184_v28  ;;  %v6826_v37 = vadd.f32 %v4599_v31, %v1184_v28 }
 0x36b   : > { %v3831_v34 = vpop.f32.mrb[30].mxu0  ;;  %v4603_v35 = vpop.f32.mrb[30].mxu1  ;;  %v6763_v42 = vadd.f32 %v3829_v32, %v1184_v28  ;;  %v6827_v43 = vadd.f32 %v4601_v33, %v1184_v28 }
 0x36c   : > { %v6764_v38 = vadd.f32 %v3831_v34, %v1189_v29  ;;  %v6828_v39 = vadd.f32 %v4603_v35, %v1189_v29  ;;  %v3833_v40 = vpop.f32.mrb[31].mxu0  ;;  %v4605_v41 = vpop.f32.mrb[31].mxu1 }
 0x36d   : > { %v6765_v44 = vadd.f32 %v3833_v40, %v1189_v29  ;;  %v6829_v45 = vadd.f32 %v4605_v41, %v1189_v29  ;;  %v1214_v30 = vpop.permute.xlu0 %1213  ;;  %v1219_v31 = vpop.permute.xlu1 %1218 }
 0x36e   : > { %v4716_v46 = vpack.c.bf16 %v6764_v38, %v6762_v36  ;;  %v4718_v47 = vpack.c.bf16 %v6828_v39, %v6826_v37 }
 0x36f   : > { %v4717_v48 = vpack.c.bf16 %v6765_v44, %v6763_v42  ;;  %v4719_v49 = vpack.c.bf16 %v6829_v45, %v6827_v43 }
 0x371   : > { %v3837_v53 = vpop.f32.mrb[32].mxu0  ;;  %v4609_v54 = vpop.f32.mrb[32].mxu1  ;;  %4982 = vmatprep.subr.bf16.mxu0 %v4717_v48  ;;  %5195 = vmatprep.subr.bf16.mxu1 %v4719_v49 }
 0x372   : > { %v3839_v55 = vpop.f32.mrb[33].mxu0  ;;  %v4611_v56 = vpop.f32.mrb[33].mxu1  ;;  %4983 = vmatpush1.bf16.msra.mxu0 %v4716_v46  ;;  %5196 = vmatpush1.bf16.msra.mxu1 %v4718_v47  ;;  %v6766_v59 = vadd.f32 %v3837_v53, %v1194_v51  ;;  %v6830_v60 = vadd.f32 %v4609_v54, %v1194_v51 }
 0x373   : > { %v3841_v57 = vpop.f32.mrb[34].mxu0  ;;  %v4613_v58 = vpop.f32.mrb[34].mxu1  ;;  %v6767_v1 = vadd.f32 %v3839_v55, %v1194_v51  ;;  %v6831_v2 = vadd.f32 %v4611_v56, %v1194_v51 }
 0x374   : > { %v6768_v61 = vadd.f32 %v3841_v57, %v1199_v52  ;;  %v6832_v62 = vadd.f32 %v4613_v58, %v1199_v52  ;;  %v3843_v63 = vpop.f32.mrb[35].mxu0  ;;  %v4615_v0 = vpop.f32.mrb[35].mxu1 }
 0x375   : > { %v6769_v50 = vadd.f32 %v3843_v63, %v1199_v52  ;;  %v6833_v3 = vadd.f32 %v4615_v0, %v1199_v52  ;;  %v1224_v53 = vpop.permute.xlu0 %1223  ;;  %v1229_v54 = vpop.permute.xlu1 %1228 }
 0x376   : > { %v4720_v4 = vpack.c.bf16 %v6768_v61, %v6766_v59  ;;  %v4722_v5 = vpack.c.bf16 %v6832_v62, %v6830_v60 }
 0x377   : > { %v4721_v6 = vpack.c.bf16 %v6769_v50, %v6767_v1  ;;  %v4723_v7 = vpack.c.bf16 %v6833_v3, %v6831_v2 }
 0x379   : > { %v3847_v10 = vpop.f32.mrb[36].mxu0  ;;  %v4619_v11 = vpop.f32.mrb[36].mxu1  ;;  %4984 = vmatprep.subr.bf16.mxu0 %v4721_v6  ;;  %5197 = vmatprep.subr.bf16.mxu1 %v4723_v7 }
 0x37a   : > { %v3849_v12 = vpop.f32.mrb[37].mxu0  ;;  %v4621_v13 = vpop.f32.mrb[37].mxu1  ;;  %4985 = vmatpush1.bf16.msra.mxu0 %v4720_v4  ;;  %5198 = vmatpush1.bf16.msra.mxu1 %v4722_v5  ;;  %v6770_v16 = vadd.f32 %v3847_v10, %v1204_v8  ;;  %v6834_v17 = vadd.f32 %v4619_v11, %v1204_v8 }
 0x37b   : > { %v3851_v14 = vpop.f32.mrb[38].mxu0  ;;  %v4623_v15 = vpop.f32.mrb[38].mxu1  ;;  %v6771_v22 = vadd.f32 %v3849_v12, %v1204_v8  ;;  %v6835_v23 = vadd.f32 %v4621_v13, %v1204_v8 }
 0x37c   : > { %v6772_v18 = vadd.f32 %v3851_v14, %v1209_v9  ;;  %v6836_v19 = vadd.f32 %v4623_v15, %v1209_v9  ;;  %v3853_v20 = vpop.f32.mrb[39].mxu0  ;;  %v4625_v21 = vpop.f32.mrb[39].mxu1 }
 0x37d   : > { %v6773_v24 = vadd.f32 %v3853_v20, %v1209_v9  ;;  %v6837_v25 = vadd.f32 %v4625_v21, %v1209_v9  ;;  %v1234_v10 = vpop.permute.xlu0 %1233  ;;  %v1239_v11 = vpop.permute.xlu1 %1238 }
 0x37e   : > { %v4724_v26 = vpack.c.bf16 %v6772_v18, %v6770_v16  ;;  %v4726_v27 = vpack.c.bf16 %v6836_v19, %v6834_v17 }
 0x37f   : > { %v4725_v28 = vpack.c.bf16 %v6773_v24, %v6771_v22  ;;  %v4727_v29 = vpack.c.bf16 %v6837_v25, %v6835_v23 }
 0x381   : > { %v3857_v32 = vpop.f32.mrb[40].mxu0  ;;  %v4629_v33 = vpop.f32.mrb[40].mxu1  ;;  %4986 = vmatprep.subr.bf16.mxu0 %v4725_v28  ;;  %5199 = vmatprep.subr.bf16.mxu1 %v4727_v29 }
 0x382   : > { %v3859_v34 = vpop.f32.mrb[41].mxu0  ;;  %v4631_v35 = vpop.f32.mrb[41].mxu1  ;;  %4987 = vmatpush1.bf16.msra.mxu0 %v4724_v26  ;;  %5200 = vmatpush1.bf16.msra.mxu1 %v4726_v27  ;;  %v6774_v38 = vadd.f32 %v3857_v32, %v1214_v30  ;;  %v6838_v39 = vadd.f32 %v4629_v33, %v1214_v30 }
 0x383   : > { %v3861_v36 = vpop.f32.mrb[42].mxu0  ;;  %v4633_v37 = vpop.f32.mrb[42].mxu1  ;;  %v6775_v44 = vadd.f32 %v3859_v34, %v1214_v30  ;;  %v6839_v45 = vadd.f32 %v4631_v35, %v1214_v30 }
 0x384   : > { %v6776_v40 = vadd.f32 %v3861_v36, %v1219_v31  ;;  %v6840_v41 = vadd.f32 %v4633_v37, %v1219_v31  ;;  %v3863_v42 = vpop.f32.mrb[43].mxu0  ;;  %v4635_v43 = vpop.f32.mrb[43].mxu1 }
 0x385   : > { %v6777_v46 = vadd.f32 %v3863_v42, %v1219_v31  ;;  %v6841_v47 = vadd.f32 %v4635_v43, %v1219_v31  ;;  %v1244_v32 = vpop.permute.xlu0 %1243  ;;  %v1249_v33 = vpop.permute.xlu1 %1248 }
 0x386   : > { %v4728_v48 = vpack.c.bf16 %v6776_v40, %v6774_v38  ;;  %v4730_v49 = vpack.c.bf16 %v6840_v41, %v6838_v39 }
 0x387   : > { %v4729_v51 = vpack.c.bf16 %v6777_v46, %v6775_v44  ;;  %v4731_v52 = vpack.c.bf16 %v6841_v47, %v6839_v45 }
 0x389   : > { %v3867_v55 = vpop.f32.mrb[44].mxu0  ;;  %v4639_v56 = vpop.f32.mrb[44].mxu1  ;;  %4988 = vmatprep.subr.bf16.mxu0 %v4729_v51  ;;  %5201 = vmatprep.subr.bf16.mxu1 %v4731_v52 }
 0x38a   : > { %v3869_v57 = vpop.f32.mrb[45].mxu0  ;;  %v4641_v58 = vpop.f32.mrb[45].mxu1  ;;  %4989 = vmatpush1.bf16.msra.mxu0 %v4728_v48  ;;  %5202 = vmatpush1.bf16.msra.mxu1 %v4730_v49  ;;  %v6778_v61 = vadd.f32 %v3867_v55, %v1224_v53  ;;  %v6842_v62 = vadd.f32 %v4639_v56, %v1224_v53 }
 0x38b   : > { %v3871_v59 = vpop.f32.mrb[46].mxu0  ;;  %v4643_v60 = vpop.f32.mrb[46].mxu1  ;;  %v6779_v50 = vadd.f32 %v3869_v57, %v1224_v53  ;;  %v6843_v3 = vadd.f32 %v4641_v58, %v1224_v53 }
 0x38c   : > { %v6780_v63 = vadd.f32 %v3871_v59, %v1229_v54  ;;  %v6844_v0 = vadd.f32 %v4643_v60, %v1229_v54  ;;  %v3873_v1 = vpop.f32.mrb[47].mxu0  ;;  %v4645_v2 = vpop.f32.mrb[47].mxu1 }
 0x38d   : > { %v6781_v4 = vadd.f32 %v3873_v1, %v1229_v54  ;;  %v6845_v5 = vadd.f32 %v4645_v2, %v1229_v54  ;;  %v1254_v55 = vpop.permute.xlu0 %1253  ;;  %v1259_v56 = vpop.permute.xlu1 %1258 }
 0x38e   : > { %v4732_v6 = vpack.c.bf16 %v6780_v63, %v6778_v61  ;;  %v4734_v7 = vpack.c.bf16 %v6844_v0, %v6842_v62 }
 0x38f   : > { %v4733_v8 = vpack.c.bf16 %v6781_v4, %v6779_v50  ;;  %v4735_v9 = vpack.c.bf16 %v6845_v5, %v6843_v3 }
 0x391   : > { %v3877_v12 = vpop.f32.mrb[48].mxu0  ;;  %v4649_v13 = vpop.f32.mrb[48].mxu1  ;;  %4990 = vmatprep.subr.bf16.mxu0 %v4733_v8  ;;  %5203 = vmatprep.subr.bf16.mxu1 %v4735_v9 }
 0x392   : > { %v3879_v14 = vpop.f32.mrb[49].mxu0  ;;  %v4651_v15 = vpop.f32.mrb[49].mxu1  ;;  %4991 = vmatpush1.bf16.msra.mxu0 %v4732_v6  ;;  %5204 = vmatpush1.bf16.msra.mxu1 %v4734_v7  ;;  %v6782_v18 = vadd.f32 %v3877_v12, %v1234_v10  ;;  %v6846_v19 = vadd.f32 %v4649_v13, %v1234_v10 }
 0x393   : > { %v3881_v16 = vpop.f32.mrb[50].mxu0  ;;  %v4653_v17 = vpop.f32.mrb[50].mxu1  ;;  %v6783_v24 = vadd.f32 %v3879_v14, %v1234_v10  ;;  %v6847_v25 = vadd.f32 %v4651_v15, %v1234_v10 }
 0x394   : > { %v6784_v20 = vadd.f32 %v3881_v16, %v1239_v11  ;;  %v6848_v21 = vadd.f32 %v4653_v17, %v1239_v11  ;;  %v3883_v22 = vpop.f32.mrb[51].mxu0  ;;  %v4655_v23 = vpop.f32.mrb[51].mxu1 }
 0x395   : > { %v6785_v26 = vadd.f32 %v3883_v22, %v1239_v11  ;;  %v6849_v27 = vadd.f32 %v4655_v23, %v1239_v11  ;;  %v1264_v12 = vpop.permute.xlu0 %1263  ;;  %v1269_v13 = vpop.permute.xlu1 %1268 }
 0x396   : > { %v4736_v28 = vpack.c.bf16 %v6784_v20, %v6782_v18  ;;  %v4738_v29 = vpack.c.bf16 %v6848_v21, %v6846_v19 }
 0x397   : > { %v4737_v30 = vpack.c.bf16 %v6785_v26, %v6783_v24  ;;  %v4739_v31 = vpack.c.bf16 %v6849_v27, %v6847_v25 }
 0x399   : > { %v3887_v34 = vpop.f32.mrb[52].mxu0  ;;  %v4659_v35 = vpop.f32.mrb[52].mxu1  ;;  %4992 = vmatprep.subr.bf16.mxu0 %v4737_v30  ;;  %5205 = vmatprep.subr.bf16.mxu1 %v4739_v31 }
 0x39a   : > { %v3889_v36 = vpop.f32.mrb[53].mxu0  ;;  %v4661_v37 = vpop.f32.mrb[53].mxu1  ;;  %4993 = vmatpush1.bf16.msra.mxu0 %v4736_v28  ;;  %5206 = vmatpush1.bf16.msra.mxu1 %v4738_v29  ;;  %v6786_v40 = vadd.f32 %v3887_v34, %v1244_v32  ;;  %v6850_v41 = vadd.f32 %v4659_v35, %v1244_v32  ;;  %v7670_v34 = vld [vmem:[%s9479_s3] ss:$8 sps:$4 sm:$0xff]   ;;  %v7673_v35 = vld [vmem:[%s9479_s3 + $0x14] ss:$8 sps:$4 sm:$0xff]  }
 0x39b   : > { %v3891_v38 = vpop.f32.mrb[54].mxu0  ;;  %v4663_v39 = vpop.f32.mrb[54].mxu1  ;;  %v6787_v46 = vadd.f32 %v3889_v36, %v1244_v32  ;;  %v6851_v47 = vadd.f32 %v4661_v37, %v1244_v32  ;;  %v7675_v36 = vld [vmem:[%s9479_s3 + $0x10] ss:$8 sps:$4 sm:$0xff]   ;;  %v7676_v37 = vld [vmem:[%s9479_s3 + $0x24] ss:$8 sps:$4 sm:$0xff]  }
 0x39c   : > { %v6788_v42 = vadd.f32 %v3891_v38, %v1249_v33  ;;  %v6852_v43 = vadd.f32 %v4663_v39, %v1249_v33  ;;  %v3893_v44 = vpop.f32.mrb[55].mxu0  ;;  %v4665_v45 = vpop.f32.mrb[55].mxu1  ;;  %v7678_v38 = vld [vmem:[%s9479_s3 + $0x20] ss:$8 sps:$4 sm:$0xff]   ;;  %v7679_v39 = vld [vmem:[%s9479_s3 + $0x34] ss:$8 sps:$4 sm:$0xff]  }
 0x39d   : > { %v6789_v48 = vadd.f32 %v3893_v44, %v1249_v33  ;;  %v6853_v49 = vadd.f32 %v4665_v45, %v1249_v33  ;;  %v7687_v44 = vld [vmem:[%s9479_s3 + $0x50] ss:$8 sps:$4 sm:$0xff]   ;;  %v7688_v45 = vld [vmem:[%s9479_s3 + $0x64] ss:$8 sps:$4 sm:$0xff]  }
 0x39e   : > { %v4740_v51 = vpack.c.bf16 %v6788_v42, %v6786_v40  ;;  %v4742_v52 = vpack.c.bf16 %v6852_v43, %v6850_v41  ;;  %v7681_v40 = vld [vmem:[%s9479_s3 + $0x30] ss:$8 sps:$4 sm:$0xff]   ;;  %v7682_v41 = vld [vmem:[%s9479_s3 + $0x44] ss:$8 sps:$4 sm:$0xff]   ;;  %v7684_v42 = vld [vmem:[%s9479_s3 + $0x40] ss:$8 sps:$4 sm:$0xff]  }
 0x39f   : > { %v4741_v53 = vpack.c.bf16 %v6789_v48, %v6787_v46  ;;  %v4743_v54 = vpack.c.bf16 %v6853_v49, %v6851_v47  ;;  %v7685_v43 = vld [vmem:[%s9479_s3 + $0x54] ss:$8 sps:$4 sm:$0xff]   ;;  %v7690_v46 = vld [vmem:[%s9479_s3 + $0x60] ss:$8 sps:$4 sm:$0xff]   ;;  %v7693_v48 = vld [vmem:[%s9479_s3 + $0x70] ss:$8 sps:$4 sm:$0xff]  }
 0x3a0   : > { %v7691_v47 = vld [vmem:[%s9479_s3 + $0x74] ss:$8 sps:$4 sm:$0xff]   ;;  %v7694_v49 = vld [vmem:[%s9479_s3 + $0x84] ss:$8 sps:$4 sm:$0xff]  }
 0x3a1   : > { %v3897_v57 = vpop.f32.mrb[56].mxu0  ;;  %v4669_v58 = vpop.f32.mrb[56].mxu1  ;;  %4994 = vmatprep.subr.bf16.mxu0 %v4741_v53  ;;  %5207 = vmatprep.subr.bf16.mxu1 %v4743_v54  ;;  %v7699_v53 = vld [vmem:[%s9479_s3 + $0x90] ss:$8 sps:$4 sm:$0xff]   ;;  %v7700_v54 = vld [vmem:[%s9479_s3 + $0xa4] ss:$8 sps:$4 sm:$0xff]  }
 0x3a2   : > { %v3899_v59 = vpop.f32.mrb[57].mxu0  ;;  %v4671_v60 = vpop.f32.mrb[57].mxu1  ;;  %4995 = vmatpush1.bf16.msra.mxu0 %v4740_v51  ;;  %5208 = vmatpush1.bf16.msra.mxu1 %v4742_v52  ;;  %v6790_v63 = vadd.f32 %v3897_v57, %v1254_v55  ;;  %v6854_v0 = vadd.f32 %v4669_v58, %v1254_v55  ;;  %v7696_v51 = vld [vmem:[%s9479_s3 + $0x80] ss:$8 sps:$4 sm:$0xff]   ;;  %v7697_v52 = vld [vmem:[%s9479_s3 + $0x94] ss:$8 sps:$4 sm:$0xff]  }
 0x3a3   : > { %v3901_v61 = vpop.f32.mrb[58].mxu0  ;;  %v4673_v62 = vpop.f32.mrb[58].mxu1  ;;  %v6791_v4 = vadd.f32 %v3899_v59, %v1254_v55  ;;  %v6855_v5 = vadd.f32 %v4671_v60, %v1254_v55  ;;  %v7702_v55 = vld [vmem:[%s9479_s3 + $0xa0] ss:$8 sps:$4 sm:$0xff]   ;;  %v7705_v57 = vld [vmem:[%s9479_s3 + $0xb0] ss:$8 sps:$4 sm:$0xff]  }
 0x3a4   : > { %v6792_v1 = vadd.f32 %v3901_v61, %v1259_v56  ;;  %v6856_v2 = vadd.f32 %v4673_v62, %v1259_v56  ;;  %v3903_v50 = vpop.f32.mrb[59].mxu0  ;;  %v4675_v3 = vpop.f32.mrb[59].mxu1  ;;  %v7706_v58 = vld [vmem:[%s9479_s3 + $0xc4] ss:$8 sps:$4 sm:$0xff]   ;;  %v7708_v59 = vld [vmem:[%s9479_s3 + $0xc0] ss:$8 sps:$4 sm:$0xff]  }
 0x3a5   : > { %v6793_v6 = vadd.f32 %v3903_v50, %v1259_v56  ;;  %v6857_v7 = vadd.f32 %v4675_v3, %v1259_v56  ;;  %v7703_v56 = vld [vmem:[%s9479_s3 + $0xb4] ss:$8 sps:$4 sm:$0xff]   ;;  %v7711_v61 = vld [vmem:[%s9479_s3 + $0xd0] ss:$8 sps:$4 sm:$0xff]   ;;  %v7712_v62 = vld [vmem:[%s9479_s3 + $0xe4] ss:$8 sps:$4 sm:$0xff]  }
 0x3a6   : > { %v4744_v8 = vpack.c.bf16 %v6792_v1, %v6790_v63  ;;  %v4746_v9 = vpack.c.bf16 %v6856_v2, %v6854_v0  ;;  %v7709_v60 = vld [vmem:[%s9479_s3 + $0xd4] ss:$8 sps:$4 sm:$0xff]   ;;  %v7714_v63 = vld [vmem:[%s9479_s3 + $0xe0] ss:$8 sps:$4 sm:$0xff]   ;;  %v7717_v1 = vld [vmem:[%s9479_s3 + $0xf0] ss:$8 sps:$4 sm:$0xff]  }
 0x3a7   : > { %v4745_v10 = vpack.c.bf16 %v6793_v6, %v6791_v4  ;;  %v4747_v11 = vpack.c.bf16 %v6857_v7, %v6855_v5  ;;  %v7715_v0 = vld [vmem:[%s9479_s3 + $0xf4] ss:$8 sps:$4 sm:$0xff]   ;;  %v7718_v2 = vld [vmem:[%s9479_s3 + $0x104] ss:$8 sps:$4 sm:$0xff]   ;;  %v7720_v50 = vld [vmem:[%s9479_s3 + $0x100] ss:$8 sps:$4 sm:$0xff]  }
 0x3a8   : > { %v7721_v3 = vld [vmem:[%s9479_s3 + $0x114] ss:$8 sps:$4 sm:$0xff]   ;;  %v7723_v4 = vld [vmem:[%s9479_s3 + $0x110] ss:$8 sps:$4 sm:$0xff]  }
 0x3a9   : > { %v3907_v14 = vpop.f32.mrb[60].mxu0  ;;  %v4679_v15 = vpop.f32.mrb[60].mxu1  ;;  %4996 = vmatprep.subr.bf16.mxu0 %v4745_v10  ;;  %5209 = vmatprep.subr.bf16.mxu1 %v4747_v11 }
 0x3aa   : > { %v3909_v16 = vpop.f32.mrb[61].mxu0  ;;  %v4681_v17 = vpop.f32.mrb[61].mxu1  ;;  %4997 = vmatpush1.bf16.msra.mxu0 %v4744_v8  ;;  %5210 = vmatpush1.bf16.msra.mxu1 %v4746_v9  ;;  %v6794_v20 = vadd.f32 %v3907_v14, %v1264_v12  ;;  %v6858_v21 = vadd.f32 %v4679_v15, %v1264_v12 }
 0x3ab   : > { %v3911_v18 = vpop.f32.mrb[62].mxu0  ;;  %v4683_v19 = vpop.f32.mrb[62].mxu1  ;;  %v6795_v26 = vadd.f32 %v3909_v16, %v1264_v12  ;;  %v6859_v27 = vadd.f32 %v4681_v17, %v1264_v12 }
 0x3ac   : > { %v6796_v22 = vadd.f32 %v3911_v18, %v1269_v13  ;;  %v6860_v23 = vadd.f32 %v4683_v19, %v1269_v13  ;;  %v3913_v24 = vpop.f32.mrb[63].mxu0  ;;  %v4685_v25 = vpop.f32.mrb[63].mxu1 }
 0x3ad   : > { %v6797_v28 = vadd.f32 %v3913_v24, %v1269_v13  ;;  %v6861_v29 = vadd.f32 %v4685_v25, %v1269_v13 }
 0x3ae   : > { %v4748_v30 = vpack.c.bf16 %v6796_v22, %v6794_v20  ;;  %v4750_v31 = vpack.c.bf16 %v6860_v23, %v6858_v21 }
 0x3af   : > { %v4749_v32 = vpack.c.bf16 %v6797_v28, %v6795_v26  ;;  %v4751_v33 = vpack.c.bf16 %v6861_v29, %v6859_v27 }
 0x3b1   : > { %4998 = vmatprep.subr.bf16.mxu0 %v4749_v32  ;;  %5211 = vmatprep.subr.bf16.mxu1 %v4751_v33 }
 0x3b2   : > { %4999 = vmatpush1.bf16.msra.mxu0 %v4748_v30  ;;  %5212 = vmatpush1.bf16.msra.mxu1 %v4750_v31 }
 0x3b5   : > { %5001 = vmatmul.mubr.bf16.vlgmr.msra.gmra.mrb[64].mxu0 %v7670_v34  ;;  %5214 = vmatmul.mubr.bf16.vlgmr.msra.gmra.mrb[64].mxu1 %v7670_v34 }
 0x3b6   : > { %5010 = vmatprep.mubr.bf16.mxu0 %v7673_v35  ;;  %5223 = vmatprep.mubr.bf16.mxu1 %v7673_v35 }
 0x3bd   : > { %5011 = vmatmul.mubr.bf16.gmra.mrb[68].mxu0 %v7675_v36  ;;  %5224 = vmatmul.mubr.bf16.gmra.mrb[68].mxu1 %v7675_v36 }
 0x3be   : > { %5020 = vmatprep.mubr.bf16.mxu0 %v7676_v37  ;;  %5233 = vmatprep.mubr.bf16.mxu1 %v7676_v37 }
 0x3c5   : > { %5021 = vmatmul.mubr.bf16.gmra.mrb[72].mxu0 %v7678_v38  ;;  %5234 = vmatmul.mubr.bf16.gmra.mrb[72].mxu1 %v7678_v38 }
 0x3c6   : > { %5030 = vmatprep.mubr.bf16.mxu0 %v7679_v39  ;;  %5243 = vmatprep.mubr.bf16.mxu1 %v7679_v39 }
 0x3cd   : > { %5031 = vmatmul.mubr.bf16.gmra.mrb[76].mxu0 %v7681_v40  ;;  %5244 = vmatmul.mubr.bf16.gmra.mrb[76].mxu1 %v7681_v40 }
 0x3ce   : > { %5040 = vmatprep.mubr.bf16.mxu0 %v7682_v41  ;;  %5253 = vmatprep.mubr.bf16.mxu1 %v7682_v41 }
 0x3d5   : > { %5041 = vmatmul.mubr.bf16.gmra.mrb[80].mxu0 %v7684_v42  ;;  %5254 = vmatmul.mubr.bf16.gmra.mrb[80].mxu1 %v7684_v42 }
 0x3d6   : > { %5050 = vmatprep.mubr.bf16.mxu0 %v7685_v43  ;;  %5263 = vmatprep.mubr.bf16.mxu1 %v7685_v43 }
 0x3dd   : > { %5051 = vmatmul.mubr.bf16.gmra.mrb[84].mxu0 %v7687_v44  ;;  %5264 = vmatmul.mubr.bf16.gmra.mrb[84].mxu1 %v7687_v44 }
 0x3de   : > { %5060 = vmatprep.mubr.bf16.mxu0 %v7688_v45  ;;  %5273 = vmatprep.mubr.bf16.mxu1 %v7688_v45 }
 0x3e5   : > { %5061 = vmatmul.mubr.bf16.gmra.mrb[88].mxu0 %v7690_v46  ;;  %5274 = vmatmul.mubr.bf16.gmra.mrb[88].mxu1 %v7690_v46 }
 0x3e6   : > { %5070 = vmatprep.mubr.bf16.mxu0 %v7691_v47  ;;  %5283 = vmatprep.mubr.bf16.mxu1 %v7691_v47 }
 0x3ed   : > { %5071 = vmatmul.mubr.bf16.gmra.mrb[92].mxu0 %v7693_v48  ;;  %5284 = vmatmul.mubr.bf16.gmra.mrb[92].mxu1 %v7693_v48 }
 0x3ee   : > { %5080 = vmatprep.mubr.bf16.mxu0 %v7694_v49  ;;  %5293 = vmatprep.mubr.bf16.mxu1 %v7694_v49 }
 0x3f5   : > { %5081 = vmatmul.mubr.bf16.gmra.mrb[96].mxu0 %v7696_v51  ;;  %5294 = vmatmul.mubr.bf16.gmra.mrb[96].mxu1 %v7696_v51 }
 0x3f6   : > { %5090 = vmatprep.mubr.bf16.mxu0 %v7697_v52  ;;  %5303 = vmatprep.mubr.bf16.mxu1 %v7697_v52 }
 0x3fd   : > { %5091 = vmatmul.mubr.bf16.gmra.mrb[100].mxu0 %v7699_v53  ;;  %5304 = vmatmul.mubr.bf16.gmra.mrb[100].mxu1 %v7699_v53 }
 0x3fe   : > { %5100 = vmatprep.mubr.bf16.mxu0 %v7700_v54  ;;  %5313 = vmatprep.mubr.bf16.mxu1 %v7700_v54 }
 0x405   : > { %5101 = vmatmul.mubr.bf16.gmra.mrb[104].mxu0 %v7702_v55  ;;  %5314 = vmatmul.mubr.bf16.gmra.mrb[104].mxu1 %v7702_v55 }
 0x406   : > { %5110 = vmatprep.mubr.bf16.mxu0 %v7703_v56  ;;  %5323 = vmatprep.mubr.bf16.mxu1 %v7703_v56 }
 0x40d   : > { %5111 = vmatmul.mubr.bf16.gmra.mrb[108].mxu0 %v7705_v57  ;;  %5324 = vmatmul.mubr.bf16.gmra.mrb[108].mxu1 %v7705_v57 }
 0x40e   : > { %5120 = vmatprep.mubr.bf16.mxu0 %v7706_v58  ;;  %5333 = vmatprep.mubr.bf16.mxu1 %v7706_v58 }
 0x415   : > { %5121 = vmatmul.mubr.bf16.gmra.mrb[112].mxu0 %v7708_v59  ;;  %5334 = vmatmul.mubr.bf16.gmra.mrb[112].mxu1 %v7708_v59 }
 0x416   : > { %5130 = vmatprep.mubr.bf16.mxu0 %v7709_v60  ;;  %5343 = vmatprep.mubr.bf16.mxu1 %v7709_v60 }
 0x41d   : > { %5131 = vmatmul.mubr.bf16.gmra.mrb[116].mxu0 %v7711_v61  ;;  %5344 = vmatmul.mubr.bf16.gmra.mrb[116].mxu1 %v7711_v61 }
 0x41e   : > { %5140 = vmatprep.mubr.bf16.mxu0 %v7712_v62  ;;  %5353 = vmatprep.mubr.bf16.mxu1 %v7712_v62 }
 0x425   : > { %5141 = vmatmul.mubr.bf16.gmra.mrb[120].mxu0 %v7714_v63  ;;  %5354 = vmatmul.mubr.bf16.gmra.mrb[120].mxu1 %v7714_v63 }
 0x426   : > { %5150 = vmatprep.mubr.bf16.mxu0 %v7715_v0  ;;  %5363 = vmatprep.mubr.bf16.mxu1 %v7715_v0 }
 0x42d   : > { %5151 = vmatmul.mubr.bf16.gmra.mrb[124].mxu0 %v7717_v1  ;;  %5364 = vmatmul.mubr.bf16.gmra.mrb[124].mxu1 %v7717_v1 }
 0x42e   : > { %5160 = vmatprep.mubr.bf16.mxu0 %v7718_v2  ;;  %5373 = vmatprep.mubr.bf16.mxu1 %v7718_v2 }
 0x435   : > { %5161 = vmatmul.mubr.bf16.gmra.mrb[128].mxu0 %v7720_v50  ;;  %5374 = vmatmul.mubr.bf16.gmra.mrb[128].mxu1 %v7720_v50 }
 0x436   : > { %5170 = vmatprep.mubr.bf16.mxu0 %v7721_v3  ;;  %5383 = vmatprep.mubr.bf16.mxu1 %v7721_v3 }
 0x43d   : > { %5171 = vmatmul.mubr.bf16.gmra.mrb[132].mxu0 %v7723_v4  ;;  %5384 = vmatmul.mubr.bf16.gmra.mrb[132].mxu1 %v7723_v4 }
 0x488   : > { %v5002_v5 = vpop.f32.mrb[64].mxu0  ;;  %v5215_v6 = vpop.f32.mrb[64].mxu1 }
 0x489   : > { %v5004_v7 = vpop.f32.mrb[65].mxu0  ;;  %v5217_v8 = vpop.f32.mrb[65].mxu1 }
 0x48a   : > { %v6662_v9 = vpack.c.bf16 %v5004_v7, %v5002_v5  ;;  %v6663_v10 = vpack.c.bf16 %v5217_v8, %v5215_v6  ;;  %v5006_v11 = vpop.f32.mrb[66].mxu0  ;;  %v5219_v12 = vpop.f32.mrb[66].mxu1 }
 0x48b   : > { %v5008_v13 = vpop.f32.mrb[67].mxu0  ;;  %v5221_v14 = vpop.f32.mrb[67].mxu1 }
 0x48c   : > { %5826 = vst [vmem:[%s9228_s27] sm:$0xff] %v6662_v9  ;;  %5827 = vst [vmem:[%s9228_s27 + $0x8] sm:$0xff] %v6663_v10  ;;  %v6664_v15 = vpack.c.bf16 %v5008_v13, %v5006_v11  ;;  %v6665_v16 = vpack.c.bf16 %v5221_v14, %v5219_v12 }
 0x48e   : > { %5828 = vst [vmem:[%s9228_s27 + $0x10] sm:$0xff] %v6664_v15  ;;  %5829 = vst [vmem:[%s9228_s27 + $0x18] sm:$0xff] %v6665_v16 }
 0x490   : > { %v5012_v17 = vpop.f32.mrb[68].mxu0  ;;  %v5225_v18 = vpop.f32.mrb[68].mxu1 }
 0x491   : > { %v5014_v19 = vpop.f32.mrb[69].mxu0  ;;  %v5227_v20 = vpop.f32.mrb[69].mxu1 }
 0x492   : > { %v6666_v21 = vpack.c.bf16 %v5014_v19, %v5012_v17  ;;  %v6667_v22 = vpack.c.bf16 %v5227_v20, %v5225_v18  ;;  %v5016_v23 = vpop.f32.mrb[70].mxu0  ;;  %v5229_v24 = vpop.f32.mrb[70].mxu1 }
 0x493   : > { %v5018_v25 = vpop.f32.mrb[71].mxu0  ;;  %v5231_v26 = vpop.f32.mrb[71].mxu1 }
 0x494   : > { %5830 = vst [vmem:[%s9228_s27 + $0x20] sm:$0xff] %v6666_v21  ;;  %5831 = vst [vmem:[%s9228_s27 + $0x28] sm:$0xff] %v6667_v22  ;;  %v6668_v27 = vpack.c.bf16 %v5018_v25, %v5016_v23  ;;  %v6669_v28 = vpack.c.bf16 %v5231_v26, %v5229_v24 }
 0x496   : > { %5832 = vst [vmem:[%s9228_s27 + $0x30] sm:$0xff] %v6668_v27  ;;  %5833 = vst [vmem:[%s9228_s27 + $0x38] sm:$0xff] %v6669_v28 }
 0x498   : > { %v5022_v29 = vpop.f32.mrb[72].mxu0  ;;  %v5235_v30 = vpop.f32.mrb[72].mxu1 }
 0x499   : > { %v5024_v31 = vpop.f32.mrb[73].mxu0  ;;  %v5237_v32 = vpop.f32.mrb[73].mxu1 }
 0x49a   : > { %v6670_v33 = vpack.c.bf16 %v5024_v31, %v5022_v29  ;;  %v6671_v34 = vpack.c.bf16 %v5237_v32, %v5235_v30  ;;  %v5026_v35 = vpop.f32.mrb[74].mxu0  ;;  %v5239_v36 = vpop.f32.mrb[74].mxu1 }
 0x49b   : > { %v5028_v37 = vpop.f32.mrb[75].mxu0  ;;  %v5241_v38 = vpop.f32.mrb[75].mxu1 }
 0x49c   : > { %5834 = vst [vmem:[%s9228_s27 + $0x40] sm:$0xff] %v6670_v33  ;;  %5835 = vst [vmem:[%s9228_s27 + $0x48] sm:$0xff] %v6671_v34  ;;  %v6672_v39 = vpack.c.bf16 %v5028_v37, %v5026_v35  ;;  %v6673_v40 = vpack.c.bf16 %v5241_v38, %v5239_v36 }
 0x49e   : > { %5836 = vst [vmem:[%s9228_s27 + $0x50] sm:$0xff] %v6672_v39  ;;  %5837 = vst [vmem:[%s9228_s27 + $0x58] sm:$0xff] %v6673_v40 }
 0x4a0   : > { %v5032_v41 = vpop.f32.mrb[76].mxu0  ;;  %v5245_v42 = vpop.f32.mrb[76].mxu1 }
 0x4a1   : > { %v5034_v43 = vpop.f32.mrb[77].mxu0  ;;  %v5247_v44 = vpop.f32.mrb[77].mxu1 }
 0x4a2   : > { %v6674_v45 = vpack.c.bf16 %v5034_v43, %v5032_v41  ;;  %v6675_v46 = vpack.c.bf16 %v5247_v44, %v5245_v42  ;;  %v5036_v47 = vpop.f32.mrb[78].mxu0  ;;  %v5249_v48 = vpop.f32.mrb[78].mxu1 }
 0x4a3   : > { %v5038_v49 = vpop.f32.mrb[79].mxu0  ;;  %v5251_v51 = vpop.f32.mrb[79].mxu1 }
 0x4a4   : > { %5838 = vst [vmem:[%s9228_s27 + $0x60] sm:$0xff] %v6674_v45  ;;  %5839 = vst [vmem:[%s9228_s27 + $0x68] sm:$0xff] %v6675_v46  ;;  %v6676_v52 = vpack.c.bf16 %v5038_v49, %v5036_v47  ;;  %v6677_v53 = vpack.c.bf16 %v5251_v51, %v5249_v48 }
 0x4a6   : > { %5840 = vst [vmem:[%s9228_s27 + $0x70] sm:$0xff] %v6676_v52  ;;  %5841 = vst [vmem:[%s9228_s27 + $0x78] sm:$0xff] %v6677_v53 }
 0x4a8   : > { %v5042_v54 = vpop.f32.mrb[80].mxu0  ;;  %v5255_v55 = vpop.f32.mrb[80].mxu1 }
 0x4a9   : > { %v5044_v56 = vpop.f32.mrb[81].mxu0  ;;  %v5257_v57 = vpop.f32.mrb[81].mxu1 }
 0x4aa   : > { %v6678_v58 = vpack.c.bf16 %v5044_v56, %v5042_v54  ;;  %v6679_v59 = vpack.c.bf16 %v5257_v57, %v5255_v55  ;;  %v5046_v60 = vpop.f32.mrb[82].mxu0  ;;  %v5259_v61 = vpop.f32.mrb[82].mxu1 }
 0x4ab   : > { %v5048_v62 = vpop.f32.mrb[83].mxu0  ;;  %v5261_v63 = vpop.f32.mrb[83].mxu1 }
 0x4ac   : > { %5842 = vst [vmem:[%s9228_s27 + $0x80] sm:$0xff] %v6678_v58  ;;  %5843 = vst [vmem:[%s9228_s27 + $0x88] sm:$0xff] %v6679_v59  ;;  %v6680_v0 = vpack.c.bf16 %v5048_v62, %v5046_v60  ;;  %v6681_v1 = vpack.c.bf16 %v5261_v63, %v5259_v61 }
 0x4ae   : > { %5844 = vst [vmem:[%s9228_s27 + $0x90] sm:$0xff] %v6680_v0  ;;  %5845 = vst [vmem:[%s9228_s27 + $0x98] sm:$0xff] %v6681_v1 }
 0x4b0   : > { %v5052_v2 = vpop.f32.mrb[84].mxu0  ;;  %v5265_v50 = vpop.f32.mrb[84].mxu1 }
 0x4b1   : > { %v5054_v3 = vpop.f32.mrb[85].mxu0  ;;  %v5267_v4 = vpop.f32.mrb[85].mxu1 }
 0x4b2   : > { %v6682_v5 = vpack.c.bf16 %v5054_v3, %v5052_v2  ;;  %v6683_v6 = vpack.c.bf16 %v5267_v4, %v5265_v50  ;;  %v5056_v7 = vpop.f32.mrb[86].mxu0  ;;  %v5269_v8 = vpop.f32.mrb[86].mxu1 }
 0x4b3   : > { %v5058_v9 = vpop.f32.mrb[87].mxu0  ;;  %v5271_v10 = vpop.f32.mrb[87].mxu1 }
 0x4b4   : > { %5846 = vst [vmem:[%s9228_s27 + $0xa0] sm:$0xff] %v6682_v5  ;;  %5847 = vst [vmem:[%s9228_s27 + $0xa8] sm:$0xff] %v6683_v6  ;;  %v6684_v11 = vpack.c.bf16 %v5058_v9, %v5056_v7  ;;  %v6685_v12 = vpack.c.bf16 %v5271_v10, %v5269_v8 }
 0x4b6   : > { %5848 = vst [vmem:[%s9228_s27 + $0xb0] sm:$0xff] %v6684_v11  ;;  %5849 = vst [vmem:[%s9228_s27 + $0xb8] sm:$0xff] %v6685_v12 }
 0x4b8   : > { %v5062_v13 = vpop.f32.mrb[88].mxu0  ;;  %v5275_v14 = vpop.f32.mrb[88].mxu1 }
 0x4b9   : > { %v5064_v15 = vpop.f32.mrb[89].mxu0  ;;  %v5277_v16 = vpop.f32.mrb[89].mxu1 }
 0x4ba   : > { %v6686_v17 = vpack.c.bf16 %v5064_v15, %v5062_v13  ;;  %v6687_v18 = vpack.c.bf16 %v5277_v16, %v5275_v14  ;;  %v5066_v19 = vpop.f32.mrb[90].mxu0  ;;  %v5279_v20 = vpop.f32.mrb[90].mxu1 }
 0x4bb   : > { %v5068_v21 = vpop.f32.mrb[91].mxu0  ;;  %v5281_v22 = vpop.f32.mrb[91].mxu1 }
 0x4bc   : > { %5850 = vst [vmem:[%s9228_s27 + $0xc0] sm:$0xff] %v6686_v17  ;;  %5851 = vst [vmem:[%s9228_s27 + $0xc8] sm:$0xff] %v6687_v18  ;;  %v6688_v23 = vpack.c.bf16 %v5068_v21, %v5066_v19  ;;  %v6689_v24 = vpack.c.bf16 %v5281_v22, %v5279_v20 }
 0x4be   : > { %5852 = vst [vmem:[%s9228_s27 + $0xd0] sm:$0xff] %v6688_v23  ;;  %5853 = vst [vmem:[%s9228_s27 + $0xd8] sm:$0xff] %v6689_v24 }
 0x4c0   : > { %v5072_v25 = vpop.f32.mrb[92].mxu0  ;;  %v5285_v26 = vpop.f32.mrb[92].mxu1 }
 0x4c1   : > { %v5074_v27 = vpop.f32.mrb[93].mxu0  ;;  %v5287_v28 = vpop.f32.mrb[93].mxu1 }
 0x4c2   : > { %v6690_v29 = vpack.c.bf16 %v5074_v27, %v5072_v25  ;;  %v6691_v30 = vpack.c.bf16 %v5287_v28, %v5285_v26  ;;  %v5076_v31 = vpop.f32.mrb[94].mxu0  ;;  %v5289_v32 = vpop.f32.mrb[94].mxu1 }
 0x4c3   : > { %v5078_v33 = vpop.f32.mrb[95].mxu0  ;;  %v5291_v34 = vpop.f32.mrb[95].mxu1 }
 0x4c4   : > { %5854 = vst [vmem:[%s9228_s27 + $0xe0] sm:$0xff] %v6690_v29  ;;  %5855 = vst [vmem:[%s9228_s27 + $0xe8] sm:$0xff] %v6691_v30  ;;  %v6692_v35 = vpack.c.bf16 %v5078_v33, %v5076_v31  ;;  %v6693_v36 = vpack.c.bf16 %v5291_v34, %v5289_v32 }
 0x4c6   : > { %5856 = vst [vmem:[%s9228_s27 + $0xf0] sm:$0xff] %v6692_v35  ;;  %5857 = vst [vmem:[%s9228_s27 + $0xf8] sm:$0xff] %v6693_v36 }
 0x4c8   : > { %v5082_v37 = vpop.f32.mrb[96].mxu0  ;;  %v5295_v38 = vpop.f32.mrb[96].mxu1 }
 0x4c9   : > { %v5084_v39 = vpop.f32.mrb[97].mxu0  ;;  %v5297_v40 = vpop.f32.mrb[97].mxu1 }
 0x4ca   : > { %v6694_v41 = vpack.c.bf16 %v5084_v39, %v5082_v37  ;;  %v6695_v42 = vpack.c.bf16 %v5297_v40, %v5295_v38  ;;  %v5086_v43 = vpop.f32.mrb[98].mxu0  ;;  %v5299_v44 = vpop.f32.mrb[98].mxu1 }
 0x4cb   : > { %v5088_v45 = vpop.f32.mrb[99].mxu0  ;;  %v5301_v46 = vpop.f32.mrb[99].mxu1 }
 0x4cc   : > { %5858 = vst [vmem:[%s9228_s27 + $0x100] sm:$0xff] %v6694_v41  ;;  %5859 = vst [vmem:[%s9228_s27 + $0x108] sm:$0xff] %v6695_v42  ;;  %v6696_v47 = vpack.c.bf16 %v5088_v45, %v5086_v43  ;;  %v6697_v48 = vpack.c.bf16 %v5301_v46, %v5299_v44 }
 0x4ce   : > { %5860 = vst [vmem:[%s9228_s27 + $0x110] sm:$0xff] %v6696_v47  ;;  %5861 = vst [vmem:[%s9228_s27 + $0x118] sm:$0xff] %v6697_v48 }
 0x4d0   : > { %v5092_v49 = vpop.f32.mrb[100].mxu0  ;;  %v5305_v51 = vpop.f32.mrb[100].mxu1 }
 0x4d1   : > { %v5094_v52 = vpop.f32.mrb[101].mxu0  ;;  %v5307_v53 = vpop.f32.mrb[101].mxu1 }
 0x4d2   : > { %v6698_v54 = vpack.c.bf16 %v5094_v52, %v5092_v49  ;;  %v6699_v55 = vpack.c.bf16 %v5307_v53, %v5305_v51  ;;  %v5096_v56 = vpop.f32.mrb[102].mxu0  ;;  %v5309_v57 = vpop.f32.mrb[102].mxu1 }
 0x4d3   : > { %v5098_v58 = vpop.f32.mrb[103].mxu0  ;;  %v5311_v59 = vpop.f32.mrb[103].mxu1 }
 0x4d4   : > { %5862 = vst [vmem:[%s9228_s27 + $0x120] sm:$0xff] %v6698_v54  ;;  %5863 = vst [vmem:[%s9228_s27 + $0x128] sm:$0xff] %v6699_v55  ;;  %v6700_v60 = vpack.c.bf16 %v5098_v58, %v5096_v56  ;;  %v6701_v61 = vpack.c.bf16 %v5311_v59, %v5309_v57 }
 0x4d6   : > { %5864 = vst [vmem:[%s9228_s27 + $0x130] sm:$0xff] %v6700_v60  ;;  %5865 = vst [vmem:[%s9228_s27 + $0x138] sm:$0xff] %v6701_v61 }
 0x4d8   : > { %v5102_v62 = vpop.f32.mrb[104].mxu0  ;;  %v5315_v63 = vpop.f32.mrb[104].mxu1 }
 0x4d9   : > { %v5104_v0 = vpop.f32.mrb[105].mxu0  ;;  %v5317_v1 = vpop.f32.mrb[105].mxu1 }
 0x4da   : > { %v6702_v2 = vpack.c.bf16 %v5104_v0, %v5102_v62  ;;  %v6703_v50 = vpack.c.bf16 %v5317_v1, %v5315_v63  ;;  %v5106_v3 = vpop.f32.mrb[106].mxu0  ;;  %v5319_v4 = vpop.f32.mrb[106].mxu1 }
 0x4db   : > { %v5108_v5 = vpop.f32.mrb[107].mxu0  ;;  %v5321_v6 = vpop.f32.mrb[107].mxu1 }
 0x4dc   : > { %5866 = vst [vmem:[%s9228_s27 + $0x140] sm:$0xff] %v6702_v2  ;;  %5867 = vst [vmem:[%s9228_s27 + $0x148] sm:$0xff] %v6703_v50  ;;  %v6704_v7 = vpack.c.bf16 %v5108_v5, %v5106_v3  ;;  %v6705_v8 = vpack.c.bf16 %v5321_v6, %v5319_v4 }
 0x4de   : > { %5868 = vst [vmem:[%s9228_s27 + $0x150] sm:$0xff] %v6704_v7  ;;  %5869 = vst [vmem:[%s9228_s27 + $0x158] sm:$0xff] %v6705_v8 }
 0x4e0   : > { %v5112_v9 = vpop.f32.mrb[108].mxu0  ;;  %v5325_v10 = vpop.f32.mrb[108].mxu1 }
 0x4e1   : > { %v5114_v11 = vpop.f32.mrb[109].mxu0  ;;  %v5327_v12 = vpop.f32.mrb[109].mxu1 }
 0x4e2   : > { %v6706_v13 = vpack.c.bf16 %v5114_v11, %v5112_v9  ;;  %v6707_v14 = vpack.c.bf16 %v5327_v12, %v5325_v10  ;;  %v5116_v15 = vpop.f32.mrb[110].mxu0  ;;  %v5329_v16 = vpop.f32.mrb[110].mxu1 }
 0x4e3   : > { %v5118_v17 = vpop.f32.mrb[111].mxu0  ;;  %v5331_v18 = vpop.f32.mrb[111].mxu1 }
 0x4e4   : > { %5870 = vst [vmem:[%s9228_s27 + $0x160] sm:$0xff] %v6706_v13  ;;  %5871 = vst [vmem:[%s9228_s27 + $0x168] sm:$0xff] %v6707_v14  ;;  %v6708_v19 = vpack.c.bf16 %v5118_v17, %v5116_v15  ;;  %v6709_v20 = vpack.c.bf16 %v5331_v18, %v5329_v16 }
 0x4e6   : > { %5872 = vst [vmem:[%s9228_s27 + $0x170] sm:$0xff] %v6708_v19  ;;  %5873 = vst [vmem:[%s9228_s27 + $0x178] sm:$0xff] %v6709_v20 }
 0x4e8   : > { %v5122_v21 = vpop.f32.mrb[112].mxu0  ;;  %v5335_v22 = vpop.f32.mrb[112].mxu1 }
 0x4e9   : > { %v5124_v23 = vpop.f32.mrb[113].mxu0  ;;  %v5337_v24 = vpop.f32.mrb[113].mxu1 }
 0x4ea   : > { %v6710_v25 = vpack.c.bf16 %v5124_v23, %v5122_v21  ;;  %v6711_v26 = vpack.c.bf16 %v5337_v24, %v5335_v22  ;;  %v5126_v27 = vpop.f32.mrb[114].mxu0  ;;  %v5339_v28 = vpop.f32.mrb[114].mxu1 }
 0x4eb   : > { %v5128_v29 = vpop.f32.mrb[115].mxu0  ;;  %v5341_v30 = vpop.f32.mrb[115].mxu1 }
 0x4ec   : > { %5874 = vst [vmem:[%s9228_s27 + $0x180] sm:$0xff] %v6710_v25  ;;  %5875 = vst [vmem:[%s9228_s27 + $0x188] sm:$0xff] %v6711_v26  ;;  %v6712_v31 = vpack.c.bf16 %v5128_v29, %v5126_v27  ;;  %v6713_v32 = vpack.c.bf16 %v5341_v30, %v5339_v28  ;;  %v5922_v29 = vld [vmem:[%s9228_s27] sm:$0xff] (%p7854_p6)  ;;  %v5924_v30 = vld [vmem:[%s9228_s27 + $0x8] sm:$0xff] (%p7854_p6) }
 0x4ed   : > { %5923 = vst [vmem:[%s9321_s18] sm:$0xff] (%p7854_p6), %v5922_v29  ;;  %5925 = vst [vmem:[%s9321_s18 + $0x8] sm:$0xff] (%p7854_p6), %v5924_v30 }
 0x4ee   : > { %5876 = vst [vmem:[%s9228_s27 + $0x190] sm:$0xff] %v6712_v31  ;;  %5877 = vst [vmem:[%s9228_s27 + $0x198] sm:$0xff] %v6713_v32  ;;  %v5926_v31 = vld [vmem:[%s9228_s27 + $0x10] sm:$0xff] (%p7854_p6)  ;;  %v5928_v32 = vld [vmem:[%s9228_s27 + $0x18] sm:$0xff] (%p7854_p6) }
 0x4ef   : > { %5927 = vst [vmem:[%s9321_s18 + $0x20] sm:$0xff] (%p7854_p6), %v5926_v31  ;;  %5929 = vst [vmem:[%s9321_s18 + $0x28] sm:$0xff] (%p7854_p6), %v5928_v32 }
 0x4f0   : > { %v5132_v33 = vpop.f32.mrb[116].mxu0  ;;  %v5345_v34 = vpop.f32.mrb[116].mxu1 }
 0x4f1   : > { %v5134_v35 = vpop.f32.mrb[117].mxu0  ;;  %v5347_v36 = vpop.f32.mrb[117].mxu1 }
 0x4f2   : > { %v6714_v37 = vpack.c.bf16 %v5134_v35, %v5132_v33  ;;  %v6715_v38 = vpack.c.bf16 %v5347_v36, %v5345_v34  ;;  %v5136_v39 = vpop.f32.mrb[118].mxu0  ;;  %v5349_v40 = vpop.f32.mrb[118].mxu1  ;;  %v5930_v33 = vld [vmem:[%s9228_s27 + $0x20] sm:$0xff] (%p7854_p6)  ;;  %v5932_v34 = vld [vmem:[%s9228_s27 + $0x28] sm:$0xff] (%p7854_p6)  ;;  %v5934_v35 = vld [vmem:[%s9228_s27 + $0x30] sm:$0xff] (%p7854_p6) }
 0x4f3   : > { %v5138_v41 = vpop.f32.mrb[119].mxu0  ;;  %v5351_v42 = vpop.f32.mrb[119].mxu1  ;;  %v5936_v36 = vld [vmem:[%s9228_s27 + $0x38] sm:$0xff] (%p7854_p6)  ;;  %5931 = vst [vmem:[%s9321_s18 + $0x40] sm:$0xff] (%p7854_p6), %v5930_v33  ;;  %5933 = vst [vmem:[%s9321_s18 + $0x48] sm:$0xff] (%p7854_p6), %v5932_v34 }
 0x4f4   : > { %5878 = vst [vmem:[%s9228_s27 + $0x1a0] sm:$0xff] %v6714_v37  ;;  %5879 = vst [vmem:[%s9228_s27 + $0x1a8] sm:$0xff] %v6715_v38  ;;  %v6716_v43 = vpack.c.bf16 %v5138_v41, %v5136_v39  ;;  %v6717_v44 = vpack.c.bf16 %v5351_v42, %v5349_v40  ;;  %v5938_v37 = vld [vmem:[%s9228_s27 + $0x40] sm:$0xff] (%p7854_p6)  ;;  %v5940_v38 = vld [vmem:[%s9228_s27 + $0x48] sm:$0xff] (%p7854_p6) }
 0x4f5   : > { %v5942_v39 = vld [vmem:[%s9228_s27 + $0x50] sm:$0xff] (%p7854_p6)  ;;  %v5944_v40 = vld [vmem:[%s9228_s27 + $0x58] sm:$0xff] (%p7854_p6)  ;;  %v5946_v41 = vld [vmem:[%s9228_s27 + $0x60] sm:$0xff] (%p7854_p6)  ;;  %5935 = vst [vmem:[%s9321_s18 + $0x60] sm:$0xff] (%p7854_p6), %v5934_v35 }
 0x4f6   : > { %5880 = vst [vmem:[%s9228_s27 + $0x1b0] sm:$0xff] %v6716_v43  ;;  %5881 = vst [vmem:[%s9228_s27 + $0x1b8] sm:$0xff] %v6717_v44  ;;  %v5948_v42 = vld [vmem:[%s9228_s27 + $0x68] sm:$0xff] (%p7854_p6)  ;;  %v5950_v43 = vld [vmem:[%s9228_s27 + $0x70] sm:$0xff] (%p7854_p6) }
 0x4f7   : > { %5937 = vst [vmem:[%s9321_s18 + $0x68] sm:$0xff] (%p7854_p6), %v5936_v36  ;;  %5939 = vst [vmem:[%s9321_s18 + $0x80] sm:$0xff] (%p7854_p6), %v5938_v37  ;;  %v5952_v44 = vld [vmem:[%s9228_s27 + $0x78] sm:$0xff] (%p7854_p6) }
 0x4f8   : > { %v5142_v45 = vpop.f32.mrb[120].mxu0  ;;  %v5355_v46 = vpop.f32.mrb[120].mxu1  ;;  %5941 = vst [vmem:[%s9321_s18 + $0x88] sm:$0xff] (%p7854_p6), %v5940_v38  ;;  %5943 = vst [vmem:[%s9321_s18 + $0xa0] sm:$0xff] (%p7854_p6), %v5942_v39 }
 0x4f9   : > { %v5144_v47 = vpop.f32.mrb[121].mxu0  ;;  %v5357_v48 = vpop.f32.mrb[121].mxu1  ;;  %5945 = vst [vmem:[%s9321_s18 + $0xa8] sm:$0xff] (%p7854_p6), %v5944_v40  ;;  %5947 = vst [vmem:[%s9321_s18 + $0xc0] sm:$0xff] (%p7854_p6), %v5946_v41 }
 0x4fa   : > { %v6718_v49 = vpack.c.bf16 %v5144_v47, %v5142_v45  ;;  %v6719_v51 = vpack.c.bf16 %v5357_v48, %v5355_v46  ;;  %v5146_v52 = vpop.f32.mrb[122].mxu0  ;;  %v5359_v53 = vpop.f32.mrb[122].mxu1  ;;  %5949 = vst [vmem:[%s9321_s18 + $0xc8] sm:$0xff] (%p7854_p6), %v5948_v42  ;;  %5951 = vst [vmem:[%s9321_s18 + $0xe0] sm:$0xff] (%p7854_p6), %v5950_v43  ;;  %v5954_v45 = vld [vmem:[%s9228_s27 + $0x80] sm:$0xff] (%p7854_p6)  ;;  %v5956_v46 = vld [vmem:[%s9228_s27 + $0x88] sm:$0xff] (%p7854_p6) }
 0x4fb   : > { %v5148_v54 = vpop.f32.mrb[123].mxu0  ;;  %v5361_v55 = vpop.f32.mrb[123].mxu1  ;;  %5953 = vst [vmem:[%s9321_s18 + $0xe8] sm:$0xff] (%p7854_p6), %v5952_v44  ;;  %5955 = vst [vmem:[%s9321_s18 + $0x100] sm:$0xff] (%p7854_p6), %v5954_v45  ;;  %v5958_v47 = vld [vmem:[%s9228_s27 + $0x90] sm:$0xff] (%p7854_p6)  ;;  %v5960_v48 = vld [vmem:[%s9228_s27 + $0x98] sm:$0xff] (%p7854_p6) }
 0x4fc   : > { %5882 = vst [vmem:[%s9228_s27 + $0x1c0] sm:$0xff] %v6718_v49  ;;  %5883 = vst [vmem:[%s9228_s27 + $0x1c8] sm:$0xff] %v6719_v51  ;;  %v6720_v56 = vpack.c.bf16 %v5148_v54, %v5146_v52  ;;  %v6721_v57 = vpack.c.bf16 %v5361_v55, %v5359_v53  ;;  %v5962_v49 = vld [vmem:[%s9228_s27 + $0xa0] sm:$0xff] (%p7854_p6)  ;;  %v5964_v51 = vld [vmem:[%s9228_s27 + $0xa8] sm:$0xff] (%p7854_p6) }
 0x4fd   : > { %5957 = vst [vmem:[%s9321_s18 + $0x108] sm:$0xff] (%p7854_p6), %v5956_v46  ;;  %5959 = vst [vmem:[%s9321_s18 + $0x120] sm:$0xff] (%p7854_p6), %v5958_v47  ;;  %v5966_v52 = vld [vmem:[%s9228_s27 + $0xb0] sm:$0xff] (%p7854_p6)  ;;  %v5968_v53 = vld [vmem:[%s9228_s27 + $0xb8] sm:$0xff] (%p7854_p6) }
 0x4fe   : > { %5884 = vst [vmem:[%s9228_s27 + $0x1d0] sm:$0xff] %v6720_v56  ;;  %5885 = vst [vmem:[%s9228_s27 + $0x1d8] sm:$0xff] %v6721_v57  ;;  %v5970_v54 = vld [vmem:[%s9228_s27 + $0xc0] sm:$0xff] (%p7854_p6)  ;;  %v5972_v55 = vld [vmem:[%s9228_s27 + $0xc8] sm:$0xff] (%p7854_p6) }
 0x4ff   : > { %5961 = vst [vmem:[%s9321_s18 + $0x128] sm:$0xff] (%p7854_p6), %v5960_v48  ;;  %5963 = vst [vmem:[%s9321_s18 + $0x140] sm:$0xff] (%p7854_p6), %v5962_v49  ;;  %v5974_v56 = vld [vmem:[%s9228_s27 + $0xd0] sm:$0xff] (%p7854_p6)  ;;  %v5976_v57 = vld [vmem:[%s9228_s27 + $0xd8] sm:$0xff] (%p7854_p6) }
 0x500   : > { %v5152_v58 = vpop.f32.mrb[124].mxu0  ;;  %v5365_v59 = vpop.f32.mrb[124].mxu1  ;;  %5965 = vst [vmem:[%s9321_s18 + $0x148] sm:$0xff] (%p7854_p6), %v5964_v51  ;;  %5967 = vst [vmem:[%s9321_s18 + $0x160] sm:$0xff] (%p7854_p6), %v5966_v52 }
 0x501   : > { %v5154_v60 = vpop.f32.mrb[125].mxu0  ;;  %v5367_v61 = vpop.f32.mrb[125].mxu1  ;;  %5969 = vst [vmem:[%s9321_s18 + $0x168] sm:$0xff] (%p7854_p6), %v5968_v53  ;;  %5971 = vst [vmem:[%s9321_s18 + $0x180] sm:$0xff] (%p7854_p6), %v5970_v54 }
 0x502   : > { %v6722_v62 = vpack.c.bf16 %v5154_v60, %v5152_v58  ;;  %v6723_v63 = vpack.c.bf16 %v5367_v61, %v5365_v59  ;;  %v5156_v0 = vpop.f32.mrb[126].mxu0  ;;  %v5369_v1 = vpop.f32.mrb[126].mxu1  ;;  %5973 = vst [vmem:[%s9321_s18 + $0x188] sm:$0xff] (%p7854_p6), %v5972_v55  ;;  %5975 = vst [vmem:[%s9321_s18 + $0x1a0] sm:$0xff] (%p7854_p6), %v5974_v56  ;;  %v5978_v58 = vld [vmem:[%s9228_s27 + $0xe0] sm:$0xff] (%p7854_p6)  ;;  %v5980_v59 = vld [vmem:[%s9228_s27 + $0xe8] sm:$0xff] (%p7854_p6) }
 0x503   : > { %v5158_v2 = vpop.f32.mrb[127].mxu0  ;;  %v5371_v50 = vpop.f32.mrb[127].mxu1  ;;  %5977 = vst [vmem:[%s9321_s18 + $0x1a8] sm:$0xff] (%p7854_p6), %v5976_v57  ;;  %5979 = vst [vmem:[%s9321_s18 + $0x1c0] sm:$0xff] (%p7854_p6), %v5978_v58  ;;  %v5982_v60 = vld [vmem:[%s9228_s27 + $0xf0] sm:$0xff] (%p7854_p6)  ;;  %v5984_v61 = vld [vmem:[%s9228_s27 + $0xf8] sm:$0xff] (%p7854_p6) }
 0x504   : > { %5886 = vst [vmem:[%s9228_s27 + $0x1e0] sm:$0xff] %v6722_v62  ;;  %5887 = vst [vmem:[%s9228_s27 + $0x1e8] sm:$0xff] %v6723_v63  ;;  %v6724_v3 = vpack.c.bf16 %v5158_v2, %v5156_v0  ;;  %v6725_v4 = vpack.c.bf16 %v5371_v50, %v5369_v1  ;;  %v5986_v62 = vld [vmem:[%s9228_s27 + $0x100] sm:$0xff] (%p7854_p6)  ;;  %v5988_v63 = vld [vmem:[%s9228_s27 + $0x108] sm:$0xff] (%p7854_p6) }
 0x505   : > { %5981 = vst [vmem:[%s9321_s18 + $0x1c8] sm:$0xff] (%p7854_p6), %v5980_v59  ;;  %5983 = vst [vmem:[%s9321_s18 + $0x1e0] sm:$0xff] (%p7854_p6), %v5982_v60  ;;  %v5990_v0 = vld [vmem:[%s9228_s27 + $0x110] sm:$0xff] (%p7854_p6)  ;;  %v5992_v1 = vld [vmem:[%s9228_s27 + $0x118] sm:$0xff] (%p7854_p6) }
 0x506   : > { %5888 = vst [vmem:[%s9228_s27 + $0x1f0] sm:$0xff] %v6724_v3  ;;  %5889 = vst [vmem:[%s9228_s27 + $0x1f8] sm:$0xff] %v6725_v4  ;;  %v5994_v2 = vld [vmem:[%s9228_s27 + $0x120] sm:$0xff] (%p7854_p6)  ;;  %v5996_v50 = vld [vmem:[%s9228_s27 + $0x128] sm:$0xff] (%p7854_p6) }
 0x507   : > { %5985 = vst [vmem:[%s9321_s18 + $0x1e8] sm:$0xff] (%p7854_p6), %v5984_v61  ;;  %5987 = vst [vmem:[%s9321_s18 + $0x200] sm:$0xff] (%p7854_p6), %v5986_v62  ;;  %v5998_v3 = vld [vmem:[%s9228_s27 + $0x130] sm:$0xff] (%p7854_p6)  ;;  %v6000_v4 = vld [vmem:[%s9228_s27 + $0x138] sm:$0xff] (%p7854_p6) }
 0x508   : > { %v5162_v5 = vpop.f32.mrb[128].mxu0  ;;  %v5375_v6 = vpop.f32.mrb[128].mxu1  ;;  %5989 = vst [vmem:[%s9321_s18 + $0x208] sm:$0xff] (%p7854_p6), %v5988_v63  ;;  %5991 = vst [vmem:[%s9321_s18 + $0x220] sm:$0xff] (%p7854_p6), %v5990_v0 }
 0x509   : > { %v5164_v7 = vpop.f32.mrb[129].mxu0  ;;  %v5377_v8 = vpop.f32.mrb[129].mxu1  ;;  %5993 = vst [vmem:[%s9321_s18 + $0x228] sm:$0xff] (%p7854_p6), %v5992_v1  ;;  %5995 = vst [vmem:[%s9321_s18 + $0x240] sm:$0xff] (%p7854_p6), %v5994_v2 }
 0x50a   : > { %v6726_v9 = vpack.c.bf16 %v5164_v7, %v5162_v5  ;;  %v6727_v10 = vpack.c.bf16 %v5377_v8, %v5375_v6  ;;  %v5166_v11 = vpop.f32.mrb[130].mxu0  ;;  %v5379_v12 = vpop.f32.mrb[130].mxu1  ;;  %5997 = vst [vmem:[%s9321_s18 + $0x248] sm:$0xff] (%p7854_p6), %v5996_v50  ;;  %5999 = vst [vmem:[%s9321_s18 + $0x260] sm:$0xff] (%p7854_p6), %v5998_v3  ;;  %v6002_v5 = vld [vmem:[%s9228_s27 + $0x140] sm:$0xff] (%p7854_p6)  ;;  %v6004_v6 = vld [vmem:[%s9228_s27 + $0x148] sm:$0xff] (%p7854_p6) }
 0x50b   : > { %v5168_v13 = vpop.f32.mrb[131].mxu0  ;;  %v5381_v14 = vpop.f32.mrb[131].mxu1  ;;  %6001 = vst [vmem:[%s9321_s18 + $0x268] sm:$0xff] (%p7854_p6), %v6000_v4  ;;  %6003 = vst [vmem:[%s9321_s18 + $0x280] sm:$0xff] (%p7854_p6), %v6002_v5  ;;  %v6006_v7 = vld [vmem:[%s9228_s27 + $0x150] sm:$0xff] (%p7854_p6)  ;;  %v6008_v8 = vld [vmem:[%s9228_s27 + $0x158] sm:$0xff] (%p7854_p6) }
 0x50c   : > { %5890 = vst [vmem:[%s9228_s27 + $0x200] sm:$0xff] %v6726_v9  ;;  %5891 = vst [vmem:[%s9228_s27 + $0x208] sm:$0xff] %v6727_v10  ;;  %v6728_v15 = vpack.c.bf16 %v5168_v13, %v5166_v11  ;;  %v6729_v16 = vpack.c.bf16 %v5381_v14, %v5379_v12  ;;  %v6010_v9 = vld [vmem:[%s9228_s27 + $0x160] sm:$0xff] (%p7854_p6)  ;;  %v6012_v10 = vld [vmem:[%s9228_s27 + $0x168] sm:$0xff] (%p7854_p6) }
 0x50d   : > { %6005 = vst [vmem:[%s9321_s18 + $0x288] sm:$0xff] (%p7854_p6), %v6004_v6  ;;  %6007 = vst [vmem:[%s9321_s18 + $0x2a0] sm:$0xff] (%p7854_p6), %v6006_v7  ;;  %v6014_v11 = vld [vmem:[%s9228_s27 + $0x170] sm:$0xff] (%p7854_p6)  ;;  %v6016_v12 = vld [vmem:[%s9228_s27 + $0x178] sm:$0xff] (%p7854_p6) }
 0x50e   : > { %5892 = vst [vmem:[%s9228_s27 + $0x210] sm:$0xff] %v6728_v15  ;;  %5893 = vst [vmem:[%s9228_s27 + $0x218] sm:$0xff] %v6729_v16  ;;  %v6018_v13 = vld [vmem:[%s9228_s27 + $0x180] sm:$0xff] (%p7854_p6)  ;;  %v6020_v14 = vld [vmem:[%s9228_s27 + $0x188] sm:$0xff] (%p7854_p6) }
 0x50f   : > { %6009 = vst [vmem:[%s9321_s18 + $0x2a8] sm:$0xff] (%p7854_p6), %v6008_v8  ;;  %6011 = vst [vmem:[%s9321_s18 + $0x2c0] sm:$0xff] (%p7854_p6), %v6010_v9  ;;  %v6022_v15 = vld [vmem:[%s9228_s27 + $0x190] sm:$0xff] (%p7854_p6)  ;;  %v6024_v16 = vld [vmem:[%s9228_s27 + $0x198] sm:$0xff] (%p7854_p6) }
 0x510   : > { %v5172_v17 = vpop.f32.mrb[132].mxu0  ;;  %v5385_v18 = vpop.f32.mrb[132].mxu1  ;;  %5904 = sbr.rel (!%p7854_p6) target bundleno = 1312 (0x520), region = 63  ;;  %6013 = vst [vmem:[%s9321_s18 + $0x2c8] sm:$0xff] (%p7854_p6), %v6012_v10  ;;  %6015 = vst [vmem:[%s9321_s18 + $0x2e0] sm:$0xff] (%p7854_p6), %v6014_v11 }
 0x511   : > { %v5174_v19 = vpop.f32.mrb[133].mxu0  ;;  %v5387_v20 = vpop.f32.mrb[133].mxu1  ;;  %6017 = vst [vmem:[%s9321_s18 + $0x2e8] sm:$0xff] (%p7854_p6), %v6016_v12  ;;  %6019 = vst [vmem:[%s9321_s18 + $0x300] sm:$0xff] (%p7854_p6), %v6018_v13 }
 0x512   : > { %v6730_v21 = vpack.c.bf16 %v5174_v19, %v5172_v17  ;;  %v6731_v22 = vpack.c.bf16 %v5387_v20, %v5385_v18  ;;  %v5176_v23 = vpop.f32.mrb[134].mxu0  ;;  %v5389_v24 = vpop.f32.mrb[134].mxu1  ;;  %6021 = vst [vmem:[%s9321_s18 + $0x308] sm:$0xff] (%p7854_p6), %v6020_v14  ;;  %6023 = vst [vmem:[%s9321_s18 + $0x320] sm:$0xff] (%p7854_p6), %v6022_v15  ;;  %v6026_v17 = vld [vmem:[%s9228_s27 + $0x1a0] sm:$0xff] (%p7854_p6)  ;;  %v6028_v18 = vld [vmem:[%s9228_s27 + $0x1a8] sm:$0xff] (%p7854_p6) }
 0x513   : > { %v5178_v25 = vpop.f32.mrb[135].mxu0  ;;  %v5391_v26 = vpop.f32.mrb[135].mxu1  ;;  %6025 = vst [vmem:[%s9321_s18 + $0x328] sm:$0xff] (%p7854_p6), %v6024_v16  ;;  %6027 = vst [vmem:[%s9321_s18 + $0x340] sm:$0xff] (%p7854_p6), %v6026_v17  ;;  %v6030_v19 = vld [vmem:[%s9228_s27 + $0x1b0] sm:$0xff] (%p7854_p6)  ;;  %v6032_v20 = vld [vmem:[%s9228_s27 + $0x1b8] sm:$0xff] (%p7854_p6) }
 0x514   : > { %5894 = vst [vmem:[%s9228_s27 + $0x220] sm:$0xff] %v6730_v21  ;;  %5895 = vst [vmem:[%s9228_s27 + $0x228] sm:$0xff] %v6731_v22  ;;  %v6732_v27 = vpack.c.bf16 %v5178_v25, %v5176_v23  ;;  %v6733_v28 = vpack.c.bf16 %v5391_v26, %v5389_v24  ;;  %v6034_v21 = vld [vmem:[%s9228_s27 + $0x1c0] sm:$0xff] (%p7854_p6)  ;;  %v6036_v22 = vld [vmem:[%s9228_s27 + $0x1c8] sm:$0xff] (%p7854_p6) }
 0x515   : > { %6029 = vst [vmem:[%s9321_s18 + $0x348] sm:$0xff] (%p7854_p6), %v6028_v18  ;;  %6031 = vst [vmem:[%s9321_s18 + $0x360] sm:$0xff] (%p7854_p6), %v6030_v19  ;;  %v6038_v23 = vld [vmem:[%s9228_s27 + $0x1d0] sm:$0xff] (%p7854_p6)  ;;  %v6040_v24 = vld [vmem:[%s9228_s27 + $0x1d8] sm:$0xff] (%p7854_p6) }
 0x516   : > { %5896 = vst [vmem:[%s9228_s27 + $0x230] sm:$0xff] %v6732_v27  ;;  %5897 = vst [vmem:[%s9228_s27 + $0x238] sm:$0xff] %v6733_v28  ;;  %v6042_v25 = vld [vmem:[%s9228_s27 + $0x1e0] sm:$0xff] (%p7854_p6)  ;;  %v6044_v26 = vld [vmem:[%s9228_s27 + $0x1e8] sm:$0xff] (%p7854_p6) }
 0x517   : > { %6033 = vst [vmem:[%s9321_s18 + $0x368] sm:$0xff] %v6032_v20  ;;  %6035 = vst [vmem:[%s9321_s18 + $0x380] sm:$0xff] %v6034_v21  ;;  %v6046_v27 = vld [vmem:[%s9228_s27 + $0x1f0] sm:$0xff]  ;;  %v6048_v28 = vld [vmem:[%s9228_s27 + $0x1f8] sm:$0xff] }
 0x518   : > { %6037 = vst [vmem:[%s9321_s18 + $0x388] sm:$0xff] %v6036_v22  ;;  %6039 = vst [vmem:[%s9321_s18 + $0x3a0] sm:$0xff] %v6038_v23  ;;  %v6050_v29 = vld [vmem:[%s9228_s27 + $0x200] sm:$0xff]  ;;  %v6052_v30 = vld [vmem:[%s9228_s27 + $0x208] sm:$0xff] }
 0x519   : > { %6041 = vst [vmem:[%s9321_s18 + $0x3a8] sm:$0xff] %v6040_v24  ;;  %6043 = vst [vmem:[%s9321_s18 + $0x3c0] sm:$0xff] %v6042_v25  ;;  %v6054_v31 = vld [vmem:[%s9228_s27 + $0x210] sm:$0xff]  ;;  %v6056_v32 = vld [vmem:[%s9228_s27 + $0x218] sm:$0xff] }
 0x51a   : > { %6045 = vst [vmem:[%s9321_s18 + $0x3c8] sm:$0xff] %v6044_v26  ;;  %6047 = vst [vmem:[%s9321_s18 + $0x3e0] sm:$0xff] %v6046_v27 }
 0x51b   : > { %6049 = vst [vmem:[%s9321_s18 + $0x3e8] sm:$0xff] %v6048_v28  ;;  %6051 = vst [vmem:[%s9321_s18 + $0x400] sm:$0xff] %v6050_v29  ;;  %v6058_v33 = vld [vmem:[%s9228_s27 + $0x220] sm:$0xff]  ;;  %v6060_v34 = vld [vmem:[%s9228_s27 + $0x228] sm:$0xff] }
 0x51c   : > { %6053 = vst [vmem:[%s9321_s18 + $0x408] sm:$0xff] %v6052_v30  ;;  %6055 = vst [vmem:[%s9321_s18 + $0x420] sm:$0xff] %v6054_v31 }
 0x51d   : > { %6057 = vst [vmem:[%s9321_s18 + $0x428] sm:$0xff] %v6056_v32  ;;  %6059 = vst [vmem:[%s9321_s18 + $0x440] sm:$0xff] %v6058_v33  ;;  %v6062_v35 = vld [vmem:[%s9228_s27 + $0x230] sm:$0xff]  ;;  %v6064_v36 = vld [vmem:[%s9228_s27 + $0x238] sm:$0xff] }
 0x51e   : > { %6061 = vst [vmem:[%s9321_s18 + $0x448] sm:$0xff] %v6060_v34  ;;  %6063 = vst [vmem:[%s9321_s18 + $0x460] sm:$0xff] %v6062_v35 }
 0x51f   : > { %6065 = vst [vmem:[%s9321_s18 + $0x468] sm:$0xff] %v6064_v36 }
 0x520 PF: > { %s14_s21 = sadd.s32 1, %s7778_s21   ;;  %s9482_s15 = smov %s7758_s16 }
 0x521   : > { %p11_p12 = scmp.ge.s32.totalorder %s14_s21, 6   ;;  %s9483_s16 = smov %s7862_s30 }
 0x522   : > { %s9484_s17 = smov %s7770_s19  ;;  %s9485_s18 = smov %s7774_s20 }
 0x523   : > { %s9486_s19 = smov %s9489_s22  ;;  %s9487_s20 = smov %s9493_s23 }
 0x524   :  { %13 = sbr.rel (!%p11_p12) target bundleno = 4 (0x4), region = 117 }

// kernel: yolo_face_detector_forward.3
= control target key start
LH: loop header
LB: loop body
LE: loop exit
PB: predicated region body
PF: predicated region fallthrough
CT: control target
= control target key end

     0   :  { %s1099_s15 = smov 0   ;;  %s1101_s16 = smov 0   ;;  %s1432_s0 = inlined_call_operand.vmem [shape: bf16[2,32,1024], index: 0, kind: input, shape index: {}]   ;;  %s1433_s1 = inlined_call_operand.vmem [shape: f32[2,32,1], index: 1, kind: input, shape index: {}]   ;;  %s1434_s2 = inlined_call_operand.vmem [shape: bf16[96,32], index: 2, kind: input, shape index: {}]   ;;  %s1435_s3 = inlined_call_operand.vmem [shape: f32[96,1], index: 3, kind: input, shape index: {}]   ;;  %s1436_s4 = inlined_call_operand.vmem [shape: f32[2,96,1024], index: 4, kind: output, shape index: {}]  }
   0x1   :  { %s1103_s17 = smov 0   ;;  %s1105_s18 = smov 0  }
   0x2   :  { %s1107_s19 = smov 0   ;;  %s1109_s20 = smov 0  }
   0x3   :  { %s1111_s21 = smov 0  }
   0x4 LB: > { %s23_s22 = sadd.s32 1, %s1063_s19  ;;  %s26_s23 = sadd.s32 1, %s1067_s20  ;;  %s1071_s21 = sphi %s1111_s21, %s14_s21   ;;  %s1067_s20 = sphi %s1109_s20, %s1443_s20   ;;  %s1063_s19 = sphi %s1107_s19, %s1442_s19   ;;  %s1059_s18 = sphi %s1105_s18, %s1441_s18   ;;  %s1055_s17 = sphi %s1103_s17, %s1440_s17   ;;  %s1051_s16 = sphi %s1101_s16, %s1439_s16   ;;  %s1047_s15 = sphi %s1099_s15, %s1438_s15  }
   0x5   : > { %p24_p0 = scmp.ge.s32.totalorder %s23_s22, 2  ;;  %s915_s24 = sadd.s32 4294967295, %s1071_s21  }
   0x6   : > { %p42_p1 = scmp.ne.s32.totalorder %s1051_s16, %s1047_s15  ;;  %p43_p2 = scmp.eq.s32.totalorder %s1071_s21, 0 }
   0x7   : > { %s1445_s22 = smov (%p24_p0, %s23_s22), 0  ;;  %s1447_s23 = smov (!%p24_p0, %s26_s23), %s1067_s20 }
   0x8   : > { %p28_p3 = scmp.ge.s32.totalorder %s1447_s23, 2  ;;  %p142_p4 = scmp.eq.s32.totalorder %s915_s24, 3 }
   0x9   : > { %s31_s25 = ssub.s32 %s1063_s19, %s1445_s22  ;;  %p44_p5 = por %p43_p2, %p42_p1 }
   0xa   : > { %s1449_s23 = smov (%p28_p3, %s1447_s23), 0  ;;  %p1147_p6 = por %p142_p4, %p42_p1 }
   0xb   : > { %s30_s27 = ssub.s32 %s1067_s20, %s1449_s23  ;;  %s35_s29 = sadd.s32 1, %s1051_s16 }
   0xc   : > { %s32_s28 = sor.u32 %s31_s25, %s30_s27  ;;  %p918_p8 = scmp.ge.s32.totalorder %s1071_s21, 4 }
   0xd   : > { %p33_p7 = scmp.eq.s32.totalorder %s32_s28, 0 }
   0xe   : > { %170 = sbr.rel (%p918_p8) target bundleno = 32 (0x20), region = 24 }
   0xf   : > { %s1155_s30 = scalar_select %p33_p7, %s1051_s16, %s35_s29  }
  0x15   : > { %173 = sbr.rel (!%p44_p5) target bundleno = 32 (0x20), region = 28  ;;  %s175_s5 = sand.u32 (%p44_p5), 1, %s1051_s16  }
  0x16   : > { %s920_s6 = sshll.u32 (%p44_p5), %s1063_s19, 2  ;;  %s919_s7 = sshll.u32 (%p44_p5), %s175_s5, 6 }
  0x17   : > { %s921_s8 = sshll.u32 (%p44_p5), %s1067_s20, 5  ;;  %s177_s14 = scalar_lea.vmem (%p44_p5), [#allocation2], %s919_s7 }
  0x18   : > { %s180_s9 = sadd.s32 (%p44_p5), %s921_s8, %s920_s6 }
  0x19   : > { %s922_s10 = sshll.u32 (%p44_p5), %s180_s9, 2 }
  0x1a   : > { %s182_s13 = scalar_lea.vmem (%p44_p5), %s1432_s0, %s922_s10 }
  0x1b   : > { %v195_v0 = vld [vmem:[%s182_s13] sm:$0xff] (%p44_p5)  ;;  %v197_v1 = vld [vmem:[%s182_s13 + $0x8] sm:$0xff] (%p44_p5) }
  0x1c   : > { %v199_v2 = vld [vmem:[%s182_s13 + $0x20] sm:$0xff]  ;;  %196 = vst [vmem:[%s177_s14] sm:$0xff] %v195_v0  ;;  %198 = vst [vmem:[%s177_s14 + $0x8] sm:$0xff] %v197_v1  ;;  %v201_v3 = vld [vmem:[%s182_s13 + $0x28] sm:$0xff] }
  0x1d   : > { %200 = vst [vmem:[%s177_s14 + $0x10] sm:$0xff] %v199_v2  ;;  %v203_v4 = vld [vmem:[%s182_s13 + $0x40] sm:$0xff]  ;;  %v205_v5 = vld [vmem:[%s182_s13 + $0x48] sm:$0xff]  ;;  %202 = vst [vmem:[%s177_s14 + $0x18] sm:$0xff] %v201_v3 }
  0x1e   : > { %204 = vst [vmem:[%s177_s14 + $0x20] sm:$0xff] %v203_v4  ;;  %206 = vst [vmem:[%s177_s14 + $0x28] sm:$0xff] %v205_v5  ;;  %v207_v6 = vld [vmem:[%s182_s13 + $0x60] sm:$0xff]  ;;  %v209_v7 = vld [vmem:[%s182_s13 + $0x68] sm:$0xff] }
  0x1f   : > { %208 = vst [vmem:[%s177_s14 + $0x30] sm:$0xff] %v207_v6  ;;  %210 = vst [vmem:[%s177_s14 + $0x38] sm:$0xff] %v209_v7 }
  0x20 PF: > { %p923_p9 = scmp.ge.s32.totalorder %s1071_s21, 1  ;;  %p223_p10 = scmp.lt.s32.totalorder %s1071_s21, 5 }
  0x22   : > { %p224_p11 = pnand %p923_p9, %p223_p10 }
  0x23   : > { %p260_p12 = scmp.lt.s32.totalorder (!%p224_p11), %s1059_s18, 1  ;;  %v1073_v8 = vmov (!%p224_p11), 0   ;;  %v352_v13 = vld [vmem:[%s1435_s3 + $0x8] sm:$0xff] (!%p224_p11)  ;;  %v351_v14 = vld [vmem:[%s1435_s3] sm:$0xff] (!%p224_p11)  ;;  %v354_v15 = vld [vmem:[%s1435_s3 + $0x18] sm:$0xff] (!%p224_p11)  ;;  %s230_s14 = sand.u32 (!%p224_p11), 1, %s1047_s15  }
  0x24   : > { %227 = sbr.rel (%p224_p11) target bundleno = 462 (0x1ce), region = 55  ;;  %1010 = vset.pattern.permute.xlu1 (!%p224_p11), %v1073_v8  ;;  %1009 = vset.pattern.permute.xlu0 (!%p224_p11), %v1073_v8  ;;  %v353_v16 = vld [vmem:[%s1435_s3 + $0x10] sm:$0xff] (!%p224_p11)  ;;  %v356_v17 = vld [vmem:[%s1435_s3 + $0x28] sm:$0xff] (!%p224_p11)  ;;  %v355_v18 = vld [vmem:[%s1435_s3 + $0x20] sm:$0xff] (!%p224_p11)  ;;  %vm453_vm0 = vcmask (!%p224_p11), 261120  }
  0x25   : > { %504 = vmatprep.mubr.bf16.mxu0 (!%p224_p11), %v1073_v8  ;;  %597 = vmatprep.mubr.bf16.mxu1 (!%p224_p11), %v1073_v8  ;;  %v358_v19 = vld [vmem:[%s1435_s3 + $0x38] sm:$0xff] (!%p224_p11)  ;;  %v357_v20 = vld [vmem:[%s1435_s3 + $0x30] sm:$0xff] (!%p224_p11)  ;;  %v360_v21 = vld [vmem:[%s1435_s3 + $0x48] sm:$0xff] (!%p224_p11) }
  0x26   : > { %v359_v22 = vld [vmem:[%s1435_s3 + $0x40] sm:$0xff] (!%p224_p11)  ;;  %v362_v23 = vld [vmem:[%s1435_s3 + $0x58] sm:$0xff] (!%p224_p11)  ;;  %v361_v24 = vld [vmem:[%s1435_s3 + $0x50] sm:$0xff] (!%p224_p11) }
  0x2b   : > { %s261_s24 = scalar_select %p260_p12, %s1059_s18, 1 }
  0x2c   : > { %s945_s15 = sshll.u32 (%p1147_p6), %s1055_s17, 2 }
  0x2d   : > { %s949_s25 = sshll.u32 %s261_s24, 5  ;;  %s924_s24 = sshll.u32 %s230_s14, 6 }
  0x2e   : > { %s264_s29 = scalar_lea.vmem %s1433_s1, %s949_s25  ;;  %s232_s25 = scalar_lea.vmem [#allocation2], %s924_s24 }
  0x2f   : > { %v293_v9 = vld [vmem:[%s264_s29 + $0x10] sm:$0xff]  ;;  %v291_v10 = vld [vmem:[%s264_s29] sm:$0xff]  ;;  %v294_v11 = vld [vmem:[%s264_s29 + $0x18] sm:$0xff]  ;;  %s950_s24 = smul.u32 384, %s230_s14 }
  0x30   : > { %307 = vperm.xlu1 %1010, %v293_v9   ;;  %297 = vperm.xlu0 %1009, %v291_v10   ;;  %v292_v12 = vld [vmem:[%s264_s29 + $0x8] sm:$0xff]  ;;  %v267_v25 = vld [vmem:[%s232_s25] sm:$0xff]  ;;  %v273_v29 = vld [vmem:[%s232_s25 + $0x30] sm:$0xff]  ;;  %s951_s14 = smul.u32 (%p1147_p6), 96, %s1059_s18 }
  0x31   : > { %v271_v26 = vld [vmem:[%s232_s25 + $0x20] sm:$0xff]  ;;  %v272_v27 = vld [vmem:[%s232_s25 + $0x28] sm:$0xff]  ;;  %v274_v30 = vld [vmem:[%s232_s25 + $0x38] sm:$0xff]  ;;  %v276_v37 = vunpack.c.h.bf16 %v267_v25  ;;  %v288_v39 = vunpack.c.h.bf16 %v273_v29  ;;  %v275_v41 = vunpack.c.l.bf16 %v267_v25  ;;  %v287_v49 = vunpack.c.l.bf16 %v273_v29 }
  0x32   : > { %v268_v28 = vld [vmem:[%s232_s25 + $0x8] sm:$0xff]  ;;  %v269_v31 = vld [vmem:[%s232_s25 + $0x10] sm:$0xff]  ;;  %v270_v32 = vld [vmem:[%s232_s25 + $0x18] sm:$0xff]  ;;  %v284_v34 = vunpack.c.h.bf16 %v271_v26  ;;  %v286_v35 = vunpack.c.h.bf16 %v272_v27  ;;  %v290_v40 = vunpack.c.h.bf16 %v274_v30  ;;  %v283_v47 = vunpack.c.l.bf16 %v271_v26  ;;  %s1256_s25 = scalar_lea.vmem [#allocation3], %s950_s24  ;;  %s715_s26 = sadd.s32 (%p1147_p6), %s951_s14, %s945_s15 }
  0x33   : > { %v278_v38 = vunpack.c.h.bf16 %v268_v28  ;;  %v277_v42 = vunpack.c.l.bf16 %v268_v28  ;;  %v280_v43 = vunpack.c.h.bf16 %v269_v31  ;;  %v282_v44 = vunpack.c.h.bf16 %v270_v32  ;;  %s946_s27 = sshll.u32 (%p1147_p6), %s715_s26, 3 }
  0x34   : > { %312 = vperm.xlu1 %1010, %v294_v11   ;;  %302 = vperm.xlu0 %1009, %v292_v12   ;;  %v279_v45 = vunpack.c.l.bf16 %v269_v31  ;;  %v281_v46 = vunpack.c.l.bf16 %v270_v32  ;;  %v285_v48 = vunpack.c.l.bf16 %v272_v27  ;;  %v289_v50 = vunpack.c.l.bf16 %v274_v30  ;;  %s1325_s18 = scalar_lea.vmem (%p1147_p6), %s1436_s4, %s946_s27 }
  0x38   : > { %370 = vperm.xlu1 %1010, %v352_v13   ;;  %365 = vperm.xlu0 %1009, %v351_v14   ;;  %v1011_v14 = vld [vmem:[%s1434_s2] sm:$0xff]  }
  0x3c   : > { %380 = vperm.xlu1 %1010, %v354_v15   ;;  %375 = vperm.xlu0 %1009, %v353_v16   ;;  %v1012_v15 = vld [vmem:[%s1434_s2 + $0x8] sm:$0xff]   ;;  %v1013_v16 = vld [vmem:[%s1434_s2 + $0x10] sm:$0xff]  }
  0x40   : > { %390 = vperm.xlu1 %1010, %v356_v17   ;;  %385 = vperm.xlu0 %1009, %v355_v18   ;;  %v1014_v17 = vld [vmem:[%s1434_s2 + $0x18] sm:$0xff]   ;;  %v1015_v18 = vld [vmem:[%s1434_s2 + $0x20] sm:$0xff]  }
  0x44   : > { %400 = vperm.xlu1 %1010, %v358_v19   ;;  %395 = vperm.xlu0 %1009, %v357_v20   ;;  %v1016_v19 = vld [vmem:[%s1434_s2 + $0x28] sm:$0xff]  }
  0x48   : > { %410 = vperm.xlu1 %1010, %v360_v21   ;;  %405 = vperm.xlu0 %1009, %v359_v22  }
  0x4c   : > { %420 = vperm.xlu1 %1010, %v362_v23   ;;  %415 = vperm.xlu0 %1009, %v361_v24  }
  0xaf   : > { %v308_v33 = vpop.permute.xlu1 %307  ;;  %v298_v36 = vpop.permute.xlu0 %297 }
  0xb0   : > { %v324_v51 = vmul.f32 %v308_v33, %v284_v34  ;;  %v326_v52 = vmul.f32 %v308_v33, %v286_v35  ;;  %v316_v55 = vmul.f32 %v298_v36, %v276_v37  ;;  %v318_v56 = vmul.f32 %v298_v36, %v278_v38 }
  0xb1   : > { %v315_v59 = vmul.f32 %v298_v36, %v275_v41  ;;  %v317_v60 = vmul.f32 %v298_v36, %v277_v42  ;;  %v323_v5 = vmul.f32 %v308_v33, %v283_v47  ;;  %v325_v6 = vmul.f32 %v308_v33, %v285_v48 }
  0xb3   : > { %v313_v53 = vpop.permute.xlu1 %312  ;;  %v303_v54 = vpop.permute.xlu0 %302 }
  0xb4   : > { %v328_v57 = vmul.f32 %v313_v53, %v288_v39  ;;  %v330_v58 = vmul.f32 %v313_v53, %v290_v40  ;;  %v320_v61 = vmul.f32 %v303_v54, %v280_v43  ;;  %v322_v62 = vmul.f32 %v303_v54, %v282_v44 }
  0xb5   : > { %v319_v63 = vmul.f32 %v303_v54, %v279_v45  ;;  %v321_v0 = vmul.f32 %v303_v54, %v281_v46  ;;  %v327_v7 = vmul.f32 %v313_v53, %v287_v49  ;;  %v329_v9 = vmul.f32 %v313_v53, %v289_v50 }
  0xb6   : > { %v332_v1 = vpack.c.bf16 %v320_v61, %v316_v55  ;;  %v334_v2 = vpack.c.bf16 %v322_v62, %v318_v56  ;;  %v336_v10 = vpack.c.bf16 %v328_v57, %v324_v51  ;;  %v338_v11 = vpack.c.bf16 %v330_v58, %v326_v52 }
  0xb7   : > { %v331_v3 = vpack.c.bf16 %v319_v63, %v315_v59  ;;  %v333_v4 = vpack.c.bf16 %v321_v0, %v317_v60  ;;  %v335_v12 = vpack.c.bf16 %v327_v7, %v323_v5  ;;  %v337_v13 = vpack.c.bf16 %v329_v9, %v325_v6  ;;  %v371_v20 = vpop.permute.xlu1 %370  ;;  %v366_v21 = vpop.permute.xlu0 %365 }
  0xb8   : > { %472 = vmatprep.subr.bf16.mxu0 %v332_v1  ;;  %565 = vmatprep.subr.bf16.mxu1 %v334_v2 }
  0xb9   : > { %473 = vmatpush1.bf16.msra.mxu0 %v331_v3  ;;  %566 = vmatpush1.bf16.msra.mxu1 %v333_v4 }
  0xba   : > { %474 = vmatprep.subr.bf16.mxu0 %v336_v10  ;;  %567 = vmatprep.subr.bf16.mxu1 %v338_v11 }
  0xbb   : > { %v381_v37 = vpop.permute.xlu1 %380  ;;  %v376_v38 = vpop.permute.xlu0 %375 }
  0xbd   : > { %475 = vmatpush1.bf16.msra.mxu0 %v335_v12  ;;  %568 = vmatpush1.bf16.msra.mxu1 %v337_v13 }
  0xbf   : > { %v391_v55 = vpop.permute.xlu1 %390  ;;  %v386_v56 = vpop.permute.xlu0 %385 }
  0xc0   : > { %933 = vmatmul.mubr.msk.bf16.vlgmr.msra.gmra.mrb[0].mxu0 %vm453_vm0, %v1011_v14  ;;  %939 = vmatmul.mubr.msk.bf16.vlgmr.msra.gmra.mrb[0].mxu1 %vm453_vm0, %v1011_v14 }
  0xc1   : > { %514 = vmatprep.mubr.bf16.mxu0 %v1073_v8  ;;  %607 = vmatprep.mubr.bf16.mxu1 %v1073_v8 }
  0xc3   : > { %v401_v10 = vpop.permute.xlu1 %400  ;;  %v396_v11 = vpop.permute.xlu0 %395 }
  0xc8   : > { %934 = vmatmul.mubr.msk.bf16.gmra.mrb[4].mxu0 %vm453_vm0, %v1012_v15  ;;  %940 = vmatmul.mubr.msk.bf16.gmra.mrb[4].mxu1 %vm453_vm0, %v1012_v15 }
  0xc9   : > { %524 = vmatprep.mubr.bf16.mxu0 %v1073_v8  ;;  %617 = vmatprep.mubr.bf16.mxu1 %v1073_v8 }
  0xd0   : > { %935 = vmatmul.mubr.msk.bf16.gmra.mrb[8].mxu0 %vm453_vm0, %v1013_v16  ;;  %941 = vmatmul.mubr.msk.bf16.gmra.mrb[8].mxu1 %vm453_vm0, %v1013_v16 }
  0xd1   : > { %534 = vmatprep.mubr.bf16.mxu0 %v1073_v8  ;;  %627 = vmatprep.mubr.bf16.mxu1 %v1073_v8 }
  0xd8   : > { %936 = vmatmul.mubr.msk.bf16.gmra.mrb[12].mxu0 %vm453_vm0, %v1014_v17  ;;  %942 = vmatmul.mubr.msk.bf16.gmra.mrb[12].mxu1 %vm453_vm0, %v1014_v17 }
  0xd9   : > { %544 = vmatprep.mubr.bf16.mxu0 %v1073_v8  ;;  %637 = vmatprep.mubr.bf16.mxu1 %v1073_v8 }
  0xe0   : > { %937 = vmatmul.mubr.msk.bf16.gmra.mrb[16].mxu0 %vm453_vm0, %v1015_v18  ;;  %943 = vmatmul.mubr.msk.bf16.gmra.mrb[16].mxu1 %vm453_vm0, %v1015_v18 }
  0xe1   : > { %554 = vmatprep.mubr.bf16.mxu0 %v1073_v8  ;;  %647 = vmatprep.mubr.bf16.mxu1 %v1073_v8 }
  0xe8   : > { %938 = vmatmul.mubr.msk.bf16.gmra.mrb[20].mxu0 %vm453_vm0, %v1016_v19  ;;  %944 = vmatmul.mubr.msk.bf16.gmra.mrb[20].mxu1 %vm453_vm0, %v1016_v19 }
 0x193   : > { %v506_v22 = vpop.f32.mrb[0].mxu0  ;;  %v599_v23 = vpop.f32.mrb[0].mxu1 }
 0x194   : > { %v507_v24 = vadd.f32 %v506_v22, %v366_v21  ;;  %v600_v25 = vadd.f32 %v599_v23, %v366_v21  ;;  %v508_v26 = vpop.f32.mrb[1].mxu0  ;;  %v601_v27 = vpop.f32.mrb[1].mxu1 }
 0x195   : > { %v509_v28 = vadd.f32 %v508_v26, %v366_v21  ;;  %v602_v8 = vadd.f32 %v601_v27, %v366_v21  ;;  %v510_v29 = vpop.f32.mrb[2].mxu0  ;;  %v603_v30 = vpop.f32.mrb[2].mxu1 }
 0x196   : > { %658 = vst [vmem:[%s1256_s25] sm:$0xff] %v507_v24  ;;  %660 = vst [vmem:[%s1256_s25 + $0x10] sm:$0xff] %v600_v25  ;;  %v511_v31 = vadd.f32 %v510_v29, %v371_v20  ;;  %v604_v32 = vadd.f32 %v603_v30, %v371_v20  ;;  %v512_v33 = vpop.f32.mrb[3].mxu0  ;;  %v605_v34 = vpop.f32.mrb[3].mxu1 }
 0x197   : > { %659 = vst [vmem:[%s1256_s25 + $0x8] sm:$0xff] %v509_v28  ;;  %661 = vst [vmem:[%s1256_s25 + $0x18] sm:$0xff] %v602_v8  ;;  %v513_v35 = vadd.f32 %v512_v33, %v371_v20  ;;  %v606_v36 = vadd.f32 %v605_v34, %v371_v20  ;;  %v411_v28 = vpop.permute.xlu1 %410  ;;  %v406_v8 = vpop.permute.xlu0 %405 }
 0x198   : > { %662 = vst [vmem:[%s1256_s25 + $0x20] sm:$0xff] %v511_v31  ;;  %664 = vst [vmem:[%s1256_s25 + $0x30] sm:$0xff] %v604_v32 }
 0x199   : > { %663 = vst [vmem:[%s1256_s25 + $0x28] sm:$0xff] %v513_v35  ;;  %665 = vst [vmem:[%s1256_s25 + $0x38] sm:$0xff] %v606_v36 }
 0x19b   : > { %v516_v39 = vpop.f32.mrb[4].mxu0  ;;  %v609_v40 = vpop.f32.mrb[4].mxu1 }
 0x19c   : > { %v517_v41 = vadd.f32 %v516_v39, %v376_v38  ;;  %v610_v42 = vadd.f32 %v609_v40, %v376_v38  ;;  %v518_v43 = vpop.f32.mrb[5].mxu0  ;;  %v611_v44 = vpop.f32.mrb[5].mxu1 }
 0x19d   : > { %v519_v45 = vadd.f32 %v518_v43, %v376_v38  ;;  %v612_v46 = vadd.f32 %v611_v44, %v376_v38  ;;  %v520_v47 = vpop.f32.mrb[6].mxu0  ;;  %v613_v48 = vpop.f32.mrb[6].mxu1 }
 0x19e   : > { %666 = vst [vmem:[%s1256_s25 + $0x40] sm:$0xff] %v517_v41  ;;  %668 = vst [vmem:[%s1256_s25 + $0x50] sm:$0xff] %v610_v42  ;;  %v521_v49 = vadd.f32 %v520_v47, %v381_v37  ;;  %v614_v50 = vadd.f32 %v613_v48, %v381_v37  ;;  %v522_v51 = vpop.f32.mrb[7].mxu0  ;;  %v615_v52 = vpop.f32.mrb[7].mxu1 }
 0x19f   : > { %667 = vst [vmem:[%s1256_s25 + $0x48] sm:$0xff] %v519_v45  ;;  %669 = vst [vmem:[%s1256_s25 + $0x58] sm:$0xff] %v612_v46  ;;  %v523_v53 = vadd.f32 %v522_v51, %v381_v37  ;;  %v616_v54 = vadd.f32 %v615_v52, %v381_v37  ;;  %v421_v45 = vpop.permute.xlu1 %420  ;;  %v416_v46 = vpop.permute.xlu0 %415 }
 0x1a0   : > { %670 = vst [vmem:[%s1256_s25 + $0x60] sm:$0xff] %v521_v49  ;;  %672 = vst [vmem:[%s1256_s25 + $0x70] sm:$0xff] %v614_v50 }
 0x1a1   : > { %671 = vst [vmem:[%s1256_s25 + $0x68] sm:$0xff] %v523_v53  ;;  %673 = vst [vmem:[%s1256_s25 + $0x78] sm:$0xff] %v616_v54 }
 0x1a3   : > { %v526_v57 = vpop.f32.mrb[8].mxu0  ;;  %v619_v58 = vpop.f32.mrb[8].mxu1 }
 0x1a4   : > { %v527_v59 = vadd.f32 %v526_v57, %v386_v56  ;;  %v620_v60 = vadd.f32 %v619_v58, %v386_v56  ;;  %v528_v61 = vpop.f32.mrb[9].mxu0  ;;  %v621_v62 = vpop.f32.mrb[9].mxu1 }
 0x1a5   : > { %v529_v63 = vadd.f32 %v528_v61, %v386_v56  ;;  %v622_v0 = vadd.f32 %v621_v62, %v386_v56  ;;  %v530_v1 = vpop.f32.mrb[10].mxu0  ;;  %v623_v2 = vpop.f32.mrb[10].mxu1 }
 0x1a6   : > { %674 = vst [vmem:[%s1256_s25 + $0x80] sm:$0xff] %v527_v59  ;;  %676 = vst [vmem:[%s1256_s25 + $0x90] sm:$0xff] %v620_v60  ;;  %v531_v3 = vadd.f32 %v530_v1, %v391_v55  ;;  %v624_v4 = vadd.f32 %v623_v2, %v391_v55  ;;  %v532_v5 = vpop.f32.mrb[11].mxu0  ;;  %v625_v6 = vpop.f32.mrb[11].mxu1  ;;  %v734_v1 = vld [vmem:[%s1256_s25 + $0x10] sm:$0xff] (%p1147_p6)  ;;  %v736_v2 = vld [vmem:[%s1256_s25 + $0x18] sm:$0xff] (%p1147_p6) }
 0x1a7   : > { %675 = vst [vmem:[%s1256_s25 + $0x88] sm:$0xff] %v529_v63  ;;  %677 = vst [vmem:[%s1256_s25 + $0x98] sm:$0xff] %v622_v0  ;;  %v533_v7 = vadd.f32 %v532_v5, %v391_v55  ;;  %v626_v9 = vadd.f32 %v625_v6, %v391_v55  ;;  %v730_v63 = vld [vmem:[%s1256_s25] sm:$0xff] (%p1147_p6)  ;;  %v732_v0 = vld [vmem:[%s1256_s25 + $0x8] sm:$0xff] (%p1147_p6) }
 0x1a8   : > { %678 = vst [vmem:[%s1256_s25 + $0xa0] sm:$0xff] %v531_v3  ;;  %680 = vst [vmem:[%s1256_s25 + $0xb0] sm:$0xff] %v624_v4  ;;  %v738_v3 = vld [vmem:[%s1256_s25 + $0x20] sm:$0xff] (%p1147_p6)  ;;  %v740_v4 = vld [vmem:[%s1256_s25 + $0x28] sm:$0xff] (%p1147_p6) }
 0x1a9   : > { %679 = vst [vmem:[%s1256_s25 + $0xa8] sm:$0xff] %v533_v7  ;;  %681 = vst [vmem:[%s1256_s25 + $0xb8] sm:$0xff] %v626_v9  ;;  %v742_v5 = vld [vmem:[%s1256_s25 + $0x30] sm:$0xff] (%p1147_p6)  ;;  %v744_v6 = vld [vmem:[%s1256_s25 + $0x38] sm:$0xff] (%p1147_p6) }
 0x1aa   : > { %v746_v7 = vld [vmem:[%s1256_s25 + $0x40] sm:$0xff] (%p1147_p6)  ;;  %v748_v9 = vld [vmem:[%s1256_s25 + $0x48] sm:$0xff] (%p1147_p6)  ;;  %731 = vst [vmem:[%s1325_s18] sm:$0xff] (%p1147_p6), %v730_v63  ;;  %733 = vst [vmem:[%s1325_s18 + $0x8] sm:$0xff] (%p1147_p6), %v732_v0 }
 0x1ab   : > { %v536_v12 = vpop.f32.mrb[12].mxu0  ;;  %v629_v13 = vpop.f32.mrb[12].mxu1  ;;  %735 = vst [vmem:[%s1325_s18 + $0x10] sm:$0xff] (%p1147_p6), %v734_v1  ;;  %737 = vst [vmem:[%s1325_s18 + $0x18] sm:$0xff] (%p1147_p6), %v736_v2 }
 0x1ac   : > { %v537_v14 = vadd.f32 %v536_v12, %v396_v11  ;;  %v630_v15 = vadd.f32 %v629_v13, %v396_v11  ;;  %v538_v16 = vpop.f32.mrb[13].mxu0  ;;  %v631_v17 = vpop.f32.mrb[13].mxu1  ;;  %v754_v12 = vld [vmem:[%s1256_s25 + $0x60] sm:$0xff] (%p1147_p6)  ;;  %v756_v13 = vld [vmem:[%s1256_s25 + $0x68] sm:$0xff] (%p1147_p6)  ;;  %739 = vst [vmem:[%s1325_s18 + $0x40] sm:$0xff] (%p1147_p6), %v738_v3  ;;  %741 = vst [vmem:[%s1325_s18 + $0x48] sm:$0xff] (%p1147_p6), %v740_v4 }
 0x1ad   : > { %v539_v18 = vadd.f32 %v538_v16, %v396_v11  ;;  %v632_v19 = vadd.f32 %v631_v17, %v396_v11  ;;  %v540_v20 = vpop.f32.mrb[14].mxu0  ;;  %v633_v21 = vpop.f32.mrb[14].mxu1  ;;  %v752_v11 = vld [vmem:[%s1256_s25 + $0x58] sm:$0xff] (%p1147_p6)  ;;  %743 = vst [vmem:[%s1325_s18 + $0x50] sm:$0xff] (%p1147_p6), %v742_v5  ;;  %745 = vst [vmem:[%s1325_s18 + $0x58] sm:$0xff] (%p1147_p6), %v744_v6  ;;  %v762_v16 = vld [vmem:[%s1256_s25 + $0x80] sm:$0xff] (%p1147_p6) }
 0x1ae   : > { %682 = vst [vmem:[%s1256_s25 + $0xc0] sm:$0xff] %v537_v14  ;;  %684 = vst [vmem:[%s1256_s25 + $0xd0] sm:$0xff] %v630_v15  ;;  %v541_v22 = vadd.f32 %v540_v20, %v401_v10  ;;  %v634_v23 = vadd.f32 %v633_v21, %v401_v10  ;;  %v542_v24 = vpop.f32.mrb[15].mxu0  ;;  %v635_v25 = vpop.f32.mrb[15].mxu1  ;;  %v758_v14 = vld [vmem:[%s1256_s25 + $0x70] sm:$0xff] (%p1147_p6)  ;;  %v760_v15 = vld [vmem:[%s1256_s25 + $0x78] sm:$0xff] (%p1147_p6) }
 0x1af   : > { %683 = vst [vmem:[%s1256_s25 + $0xc8] sm:$0xff] %v539_v18  ;;  %685 = vst [vmem:[%s1256_s25 + $0xd8] sm:$0xff] %v632_v19  ;;  %v543_v26 = vadd.f32 %v542_v24, %v401_v10  ;;  %v636_v27 = vadd.f32 %v635_v25, %v401_v10  ;;  %v750_v10 = vld [vmem:[%s1256_s25 + $0x50] sm:$0xff] (%p1147_p6)  ;;  %v764_v17 = vld [vmem:[%s1256_s25 + $0x88] sm:$0xff] (%p1147_p6) }
 0x1b0   : > { %686 = vst [vmem:[%s1256_s25 + $0xe0] sm:$0xff] %v541_v22  ;;  %688 = vst [vmem:[%s1256_s25 + $0xf0] sm:$0xff] %v634_v23  ;;  %v766_v18 = vld [vmem:[%s1256_s25 + $0x90] sm:$0xff] (%p1147_p6)  ;;  %v768_v19 = vld [vmem:[%s1256_s25 + $0x98] sm:$0xff] (%p1147_p6) }
 0x1b1   : > { %687 = vst [vmem:[%s1256_s25 + $0xe8] sm:$0xff] %v543_v26  ;;  %689 = vst [vmem:[%s1256_s25 + $0xf8] sm:$0xff] %v636_v27  ;;  %v770_v20 = vld [vmem:[%s1256_s25 + $0xa0] sm:$0xff] (%p1147_p6)  ;;  %v772_v21 = vld [vmem:[%s1256_s25 + $0xa8] sm:$0xff] (%p1147_p6) }
 0x1b2   : > { %747 = vst [vmem:[%s1325_s18 + $0x80] sm:$0xff] (%p1147_p6), %v746_v7  ;;  %749 = vst [vmem:[%s1325_s18 + $0x88] sm:$0xff] (%p1147_p6), %v748_v9  ;;  %v774_v22 = vld [vmem:[%s1256_s25 + $0xb0] sm:$0xff] (%p1147_p6)  ;;  %v776_v23 = vld [vmem:[%s1256_s25 + $0xb8] sm:$0xff] (%p1147_p6) }
 0x1b3   : > { %v546_v29 = vpop.f32.mrb[16].mxu0  ;;  %v639_v30 = vpop.f32.mrb[16].mxu1  ;;  %751 = vst [vmem:[%s1325_s18 + $0x90] sm:$0xff] (%p1147_p6), %v750_v10  ;;  %753 = vst [vmem:[%s1325_s18 + $0x98] sm:$0xff] (%p1147_p6), %v752_v11 }
 0x1b4   : > { %v547_v31 = vadd.f32 %v546_v29, %v406_v8  ;;  %v640_v32 = vadd.f32 %v639_v30, %v406_v8  ;;  %v548_v33 = vpop.f32.mrb[17].mxu0  ;;  %v641_v34 = vpop.f32.mrb[17].mxu1  ;;  %755 = vst [vmem:[%s1325_s18 + $0xc0] sm:$0xff] (%p1147_p6), %v754_v12  ;;  %757 = vst [vmem:[%s1325_s18 + $0xc8] sm:$0xff] (%p1147_p6), %v756_v13 }
 0x1b5   : > { %v549_v35 = vadd.f32 %v548_v33, %v406_v8  ;;  %v642_v36 = vadd.f32 %v641_v34, %v406_v8  ;;  %v550_v37 = vpop.f32.mrb[18].mxu0  ;;  %v643_v38 = vpop.f32.mrb[18].mxu1  ;;  %759 = vst [vmem:[%s1325_s18 + $0xd0] sm:$0xff] (%p1147_p6), %v758_v14  ;;  %761 = vst [vmem:[%s1325_s18 + $0xd8] sm:$0xff] (%p1147_p6), %v760_v15  ;;  %v778_v24 = vld [vmem:[%s1256_s25 + $0xc0] sm:$0xff] (%p1147_p6)  ;;  %v782_v26 = vld [vmem:[%s1256_s25 + $0xd0] sm:$0xff] (%p1147_p6) }
 0x1b6   : > { %690 = vst [vmem:[%s1256_s25 + $0x100] sm:$0xff] %v547_v31  ;;  %692 = vst [vmem:[%s1256_s25 + $0x110] sm:$0xff] %v640_v32  ;;  %v551_v39 = vadd.f32 %v550_v37, %v411_v28  ;;  %v644_v40 = vadd.f32 %v643_v38, %v411_v28  ;;  %v552_v41 = vpop.f32.mrb[19].mxu0  ;;  %v645_v42 = vpop.f32.mrb[19].mxu1  ;;  %v780_v25 = vld [vmem:[%s1256_s25 + $0xc8] sm:$0xff] (%p1147_p6)  ;;  %v784_v27 = vld [vmem:[%s1256_s25 + $0xd8] sm:$0xff] (%p1147_p6) }
 0x1b7   : > { %691 = vst [vmem:[%s1256_s25 + $0x108] sm:$0xff] %v549_v35  ;;  %693 = vst [vmem:[%s1256_s25 + $0x118] sm:$0xff] %v642_v36  ;;  %v553_v43 = vadd.f32 %v552_v41, %v411_v28  ;;  %v646_v44 = vadd.f32 %v645_v42, %v411_v28  ;;  %v786_v28 = vld [vmem:[%s1256_s25 + $0xe0] sm:$0xff] (%p1147_p6)  ;;  %v790_v29 = vld [vmem:[%s1256_s25 + $0xf0] sm:$0xff] (%p1147_p6) }
 0x1b8   : > { %694 = vst [vmem:[%s1256_s25 + $0x120] sm:$0xff] %v551_v39  ;;  %696 = vst [vmem:[%s1256_s25 + $0x130] sm:$0xff] %v644_v40  ;;  %v788_v8 = vld [vmem:[%s1256_s25 + $0xe8] sm:$0xff] (%p1147_p6)  ;;  %v792_v30 = vld [vmem:[%s1256_s25 + $0xf8] sm:$0xff] (%p1147_p6) }
 0x1b9   : > { %695 = vst [vmem:[%s1256_s25 + $0x128] sm:$0xff] %v553_v43  ;;  %697 = vst [vmem:[%s1256_s25 + $0x138] sm:$0xff] %v646_v44 }
 0x1ba   : > { %763 = vst [vmem:[%s1325_s18 + $0x100] sm:$0xff] (%p1147_p6), %v762_v16  ;;  %765 = vst [vmem:[%s1325_s18 + $0x108] sm:$0xff] (%p1147_p6), %v764_v17 }
 0x1bb   : > { %v556_v47 = vpop.f32.mrb[20].mxu0  ;;  %v649_v48 = vpop.f32.mrb[20].mxu1  ;;  %712 = sbr.rel (!%p1147_p6) target bundleno = 462 (0x1ce), region = 63  ;;  %767 = vst [vmem:[%s1325_s18 + $0x110] sm:$0xff] (%p1147_p6), %v766_v18  ;;  %769 = vst [vmem:[%s1325_s18 + $0x118] sm:$0xff] (%p1147_p6), %v768_v19 }
 0x1bc   : > { %v557_v49 = vadd.f32 %v556_v47, %v416_v46  ;;  %v650_v50 = vadd.f32 %v649_v48, %v416_v46  ;;  %v558_v51 = vpop.f32.mrb[21].mxu0  ;;  %v651_v52 = vpop.f32.mrb[21].mxu1  ;;  %771 = vst [vmem:[%s1325_s18 + $0x140] sm:$0xff] (%p1147_p6), %v770_v20  ;;  %773 = vst [vmem:[%s1325_s18 + $0x148] sm:$0xff] (%p1147_p6), %v772_v21 }
 0x1bd   : > { %v559_v53 = vadd.f32 %v558_v51, %v416_v46  ;;  %v652_v54 = vadd.f32 %v651_v52, %v416_v46  ;;  %v560_v55 = vpop.f32.mrb[22].mxu0  ;;  %v653_v56 = vpop.f32.mrb[22].mxu1  ;;  %775 = vst [vmem:[%s1325_s18 + $0x150] sm:$0xff] (%p1147_p6), %v774_v22  ;;  %777 = vst [vmem:[%s1325_s18 + $0x158] sm:$0xff] (%p1147_p6), %v776_v23  ;;  %v794_v31 = vld [vmem:[%s1256_s25 + $0x100] sm:$0xff] (%p1147_p6)  ;;  %v798_v33 = vld [vmem:[%s1256_s25 + $0x110] sm:$0xff] (%p1147_p6) }
 0x1be   : > { %698 = vst [vmem:[%s1256_s25 + $0x140] sm:$0xff] %v557_v49  ;;  %700 = vst [vmem:[%s1256_s25 + $0x150] sm:$0xff] %v650_v50  ;;  %v561_v57 = vadd.f32 %v560_v55, %v421_v45  ;;  %v654_v58 = vadd.f32 %v653_v56, %v421_v45  ;;  %v562_v59 = vpop.f32.mrb[23].mxu0  ;;  %v655_v60 = vpop.f32.mrb[23].mxu1  ;;  %v796_v32 = vld [vmem:[%s1256_s25 + $0x108] sm:$0xff] (%p1147_p6)  ;;  %v800_v34 = vld [vmem:[%s1256_s25 + $0x118] sm:$0xff] (%p1147_p6) }
 0x1bf   : > { %699 = vst [vmem:[%s1256_s25 + $0x148] sm:$0xff] %v559_v53  ;;  %701 = vst [vmem:[%s1256_s25 + $0x158] sm:$0xff] %v652_v54  ;;  %v563_v61 = vadd.f32 %v562_v59, %v421_v45  ;;  %v656_v62 = vadd.f32 %v655_v60, %v421_v45  ;;  %v802_v35 = vld [vmem:[%s1256_s25 + $0x120] sm:$0xff] (%p1147_p6)  ;;  %v806_v37 = vld [vmem:[%s1256_s25 + $0x130] sm:$0xff] (%p1147_p6) }
 0x1c0   : > { %702 = vst [vmem:[%s1256_s25 + $0x160] sm:$0xff] %v561_v57  ;;  %704 = vst [vmem:[%s1256_s25 + $0x170] sm:$0xff] %v654_v58  ;;  %v804_v36 = vld [vmem:[%s1256_s25 + $0x128] sm:$0xff] (%p1147_p6)  ;;  %v808_v38 = vld [vmem:[%s1256_s25 + $0x138] sm:$0xff] (%p1147_p6) }
 0x1c1   : > { %703 = vst [vmem:[%s1256_s25 + $0x168] sm:$0xff] %v563_v61  ;;  %705 = vst [vmem:[%s1256_s25 + $0x178] sm:$0xff] %v656_v62 }
 0x1c2   : > { %779 = vst [vmem:[%s1325_s18 + $0x180] sm:$0xff] %v778_v24  ;;  %781 = vst [vmem:[%s1325_s18 + $0x188] sm:$0xff] %v780_v25 }
 0x1c3   : > { %783 = vst [vmem:[%s1325_s18 + $0x190] sm:$0xff] %v782_v26  ;;  %785 = vst [vmem:[%s1325_s18 + $0x198] sm:$0xff] %v784_v27 }
 0x1c4   : > { %787 = vst [vmem:[%s1325_s18 + $0x1c0] sm:$0xff] %v786_v28  ;;  %789 = vst [vmem:[%s1325_s18 + $0x1c8] sm:$0xff] %v788_v8 }
 0x1c5   : > { %791 = vst [vmem:[%s1325_s18 + $0x1d0] sm:$0xff] %v790_v29  ;;  %793 = vst [vmem:[%s1325_s18 + $0x1d8] sm:$0xff] %v792_v30  ;;  %v810_v39 = vld [vmem:[%s1256_s25 + $0x140] sm:$0xff]  ;;  %v814_v41 = vld [vmem:[%s1256_s25 + $0x150] sm:$0xff] }
 0x1c6   : > { %795 = vst [vmem:[%s1325_s18 + $0x200] sm:$0xff] %v794_v31  ;;  %797 = vst [vmem:[%s1325_s18 + $0x208] sm:$0xff] %v796_v32  ;;  %v812_v40 = vld [vmem:[%s1256_s25 + $0x148] sm:$0xff]  ;;  %v816_v42 = vld [vmem:[%s1256_s25 + $0x158] sm:$0xff] }
 0x1c7   : > { %799 = vst [vmem:[%s1325_s18 + $0x210] sm:$0xff] %v798_v33  ;;  %801 = vst [vmem:[%s1325_s18 + $0x218] sm:$0xff] %v800_v34  ;;  %v818_v43 = vld [vmem:[%s1256_s25 + $0x160] sm:$0xff]  ;;  %v822_v45 = vld [vmem:[%s1256_s25 + $0x170] sm:$0xff] }
 0x1c8   : > { %803 = vst [vmem:[%s1325_s18 + $0x240] sm:$0xff] %v802_v35  ;;  %805 = vst [vmem:[%s1325_s18 + $0x248] sm:$0xff] %v804_v36  ;;  %v820_v44 = vld [vmem:[%s1256_s25 + $0x168] sm:$0xff]  ;;  %v824_v46 = vld [vmem:[%s1256_s25 + $0x178] sm:$0xff] }
 0x1c9   : > { %807 = vst [vmem:[%s1325_s18 + $0x250] sm:$0xff] %v806_v37  ;;  %809 = vst [vmem:[%s1325_s18 + $0x258] sm:$0xff] %v808_v38 }
 0x1ca   : > { %811 = vst [vmem:[%s1325_s18 + $0x280] sm:$0xff] %v810_v39  ;;  %813 = vst [vmem:[%s1325_s18 + $0x288] sm:$0xff] %v812_v40 }
 0x1cb   : > { %815 = vst [vmem:[%s1325_s18 + $0x290] sm:$0xff] %v814_v41  ;;  %817 = vst [vmem:[%s1325_s18 + $0x298] sm:$0xff] %v816_v42 }
 0x1cc   : > { %819 = vst [vmem:[%s1325_s18 + $0x2c0] sm:$0xff] %v818_v43  ;;  %821 = vst [vmem:[%s1325_s18 + $0x2c8] sm:$0xff] %v820_v44 }
 0x1cd   : > { %823 = vst [vmem:[%s1325_s18 + $0x2d0] sm:$0xff] %v822_v45  ;;  %825 = vst [vmem:[%s1325_s18 + $0x2d8] sm:$0xff] %v824_v46 }
 0x1ce PF: > { %s14_s21 = sadd.s32 1, %s1071_s21   ;;  %s1438_s15 = smov %s1051_s16 }
 0x1cf   : > { %p11_p13 = scmp.ge.s32.totalorder %s14_s21, 6   ;;  %s1439_s16 = smov %s1155_s30 }
 0x1d0   : > { %s1440_s17 = smov %s1063_s19  ;;  %s1441_s18 = smov %s1067_s20 }
 0x1d1   : > { %s1442_s19 = smov %s1445_s22  ;;  %s1443_s20 = smov %s1449_s23 }
 0x1d2   :  { %13 = sbr.rel (!%p11_p13) target bundleno = 4 (0x4), region = 120 }

</bundles_post_ra>
